<compile_context>
chip_gen: v7x
topology: tpu7x:2x2x1
jax: 0.10.0
libtpu: 0.0.40
codegen_flags: <defaults>
</compile_context>

<pallas_src>
import functools
import math

import numpy as np
import jax
import jax.numpy as jnp
from jax import lax
from jax.experimental import pallas as pl
from jax.experimental.pallas import tpu as pltpu


# ----------------------------------------------------------------------------
# Config (mirrors the PyTorch FeaturizerConfig, no torch dependency).
# ----------------------------------------------------------------------------
class FeaturizerConfig:
    def __init__(self, g1_param_ranges=None, g2_param_ranges=None,
                 g3_param_ranges=None, g4_param_ranges=None, g5_param_ranges=None):
        self.g1_param_ranges = g1_param_ranges
        self.g2_param_ranges = g2_param_ranges
        self.g3_param_ranges = g3_param_ranges
        self.g4_param_ranges = g4_param_ranges
        self.g5_param_ranges = g5_param_ranges
        self.set_params()

    @property
    def num_features(self):
        n = 0
        for params in [self.g1_params, self.g2_params, self.g3_params,
                       self.g4_params, self.g5_params]:
            if params is not None:
                n += len(params)
        return n

    def set_params(self):
        self.g1_params = []
        if self.g1_param_ranges is not None:
            for rc in self.g1_param_ranges['cutoff_radius']:
                self.g1_params.append({'cutoff_radius': rc})
        self.g2_params = []
        if self.g2_param_ranges is not None:
            for rc in self.g2_param_ranges['cutoff_radius']:
                for rs in self.g2_param_ranges['radial_shift']:
                    for eta in self.g2_param_ranges['eta']:
                        self.g2_params.append(
                            {'cutoff_radius': rc, 'radial_shift': rs, 'eta': eta})
        self.g3_params = []
        if self.g3_param_ranges is not None:
            for rc in self.g3_param_ranges['cutoff_radius']:
                for kappa in self.g3_param_ranges['kappa']:
                    self.g3_params.append({'cutoff_radius': rc, 'kappa': kappa})
        self.g4_params = []
        if self.g4_param_ranges is not None:
            for rc in self.g4_param_ranges['cutoff_radius']:
                for eta in self.g4_param_ranges['eta']:
                    for zeta in self.g4_param_ranges['zeta']:
                        for lambda_ in self.g4_param_ranges['lambda_']:
                            self.g4_params.append({'cutoff_radius': rc, 'eta': eta,
                                                   'zeta': zeta, 'lambda_': lambda_})
        self.g5_params = []
        if self.g5_param_ranges is not None:
            for rc in self.g5_param_ranges['cutoff_radius']:
                for rs in self.g5_param_ranges['radial_shift']:
                    for ths in self.g5_param_ranges['angular_shift']:
                        for eta in self.g5_param_ranges['eta']:
                            for zeta in self.g5_param_ranges['zeta']:
                                self.g5_params.append(
                                    {'cutoff_radius': rc, 'radial_shift': rs,
                                     'angular_shift': ths, 'eta': eta, 'zeta': zeta})


def _flatten_params(config):
    """Flatten config into static python tuples (compile-time constants)."""
    rad = []
    # G1/G2/G3 unified as  exp(-eta (d - Rs)^2) * cos(kappa d) * fc(d, rc)
    for p in config.g1_params:
        rad.append((float(p['cutoff_radius']), 0.0, 0.0, 0.0))
    for p in config.g2_params:
        rad.append((float(p['cutoff_radius']), float(p['eta']),
                    float(p['radial_shift']), 0.0))
    for p in config.g3_params:
        rad.append((float(p['cutoff_radius']), 0.0, 0.0, float(p['kappa'])))
    g4 = tuple((float(p['cutoff_radius']), float(p['eta']),
                float(p['zeta']), float(p['lambda_'])) for p in config.g4_params)
    g5 = tuple((float(p['cutoff_radius']), float(p['radial_shift']),
                float(p['angular_shift']), float(p['eta']), float(p['zeta']))
               for p in config.g5_params)
    return tuple(rad), g4, g5


def _ipow(x, zeta):
    """Integer powers unrolled on the VPU (avoids pow lowering / EUP for common zetas)."""
    if float(zeta) == int(zeta) and 1 <= int(zeta) <= 8:
        r = x
        for _ in range(int(zeta) - 1):
            r = r * x
        return r
    return jnp.power(x, zeta)


def _round_up(x, m):
    return ((x + m - 1) // m) * m


# ----------------------------------------------------------------------------
# Pallas kernel: one (batch, i-tile, k-block) step per grid point.
# ----------------------------------------------------------------------------
def _featurizer_kernel(ca_ref, ci_ref, caT_ref, ckT_ref, out_ref, acc_ref, *,
                       rad_params, g4_groups, g5_groups, ang_scales, n_ang):
    f32 = jnp.float32
    ti = ci_ref.shape[1]        # i-tile rows
    npad = caT_ref.shape[2]     # total (padded) atom count = j extent
    kb = ckT_ref.shape[2]       # k-block lanes
    f_pad = out_ref.shape[2]

    k_idx = pl.program_id(2)
    n_k = pl.num_programs(2)
    i0 = pl.program_id(1) * ti
    k0 = k_idx * kb

    ci = ci_ref[0]              # (ti, 3)   i-atoms as rows
    caT = caT_ref[0]            # (3, npad) all atoms on lanes
    ckT = ckT_ref[0]            # (3, kb)   k-block atoms on lanes

    # ---- pair displacements / distances, strictly 2-D ----------------------
    dij = [ci[:, d:d + 1] - caT[d:d + 1, :] for d in range(3)]       # (ti, npad)
    d2_ij = dij[0] * dij[0] + dij[1] * dij[1] + dij[2] * dij[2]
    d_ij = jnp.sqrt(d2_ij)

    # 0/1 float mask excluding i == j (built from global atom indices)
    row_i = lax.broadcasted_iota(jnp.int32, (ti, npad), 0) + i0
    col_j = lax.broadcasted_iota(jnp.int32, (ti, npad), 1)
    m_ij = (row_i != col_j).astype(f32)

    def fcut(d, rc):
        return jnp.where(d < rc, 0.5 * (jnp.cos((math.pi / rc) * d) + 1.0), 0.0)

    # ---- angular (G4/G5) accumulation over this k block --------------------
    if n_ang > 0:
        @pl.when(k_idx == 0)
        def _zero():
            acc_ref[...] = jnp.zeros_like(acc_ref)

        dik = [ci[:, d:d + 1] - ckT[d:d + 1, :] for d in range(3)]   # (ti, kb)
        d2_ik = dik[0] * dik[0] + dik[1] * dik[1] + dik[2] * dik[2]
        d_ik = jnp.sqrt(d2_ik)

        row_i2 = lax.broadcasted_iota(jnp.int32, (ti, kb), 0) + i0
        col_k2 = lax.broadcasted_iota(jnp.int32, (ti, kb), 1) + k0
        m_ik = (row_i2 != col_k2).astype(f32)

        row_j3 = lax.broadcasted_iota(jnp.int32, (npad, kb), 0)
        col_k3 = lax.broadcasted_iota(jnp.int32, (npad, kb), 1) + k0
        m_jk = (row_j3 != col_k3).astype(f32)

        # 2-D masked reciprocals (replaces the former N^3 divide).
        inv_ij = m_ij / jnp.maximum(d_ij, 1e-12)                     # (ti, npad)
        inv_ik = m_ik / jnp.maximum(d_ik, 1e-12)                     # (ti, kb)

        # cos(theta_ijk) slab, (ti, npad, kb); masks make it 0 for i==j / i==k.
        dot_ijk = (dij[0][:, :, None] * dik[0][:, None, :]
                   + dij[1][:, :, None] * dik[1][:, None, :]
                   + dij[2][:, :, None] * dik[2][:, None, :])
        cos_t = jnp.clip(dot_ijk * inv_ij[:, :, None] * inv_ik[:, None, :],
                         -1.0, 1.0)

        # ---- G4: Gaussian factorizes per unique (rc, eta) into 2-D factors --
        if g4_groups:
            ca = ca_ref[0]                                           # (npad, 3)
            djk = [ca[:, d:d + 1] - ckT[d:d + 1, :] for d in range(3)]  # (npad, kb)
            d2_jk = djk[0] * djk[0] + djk[1] * djk[1] + djk[2] * djk[2]
            d_jk = jnp.sqrt(d2_jk)
            for (rc, eta), plist in g4_groups:
                a_ij = fcut(d_ij, rc) * m_ij                         # (ti, npad)
                a_ik = fcut(d_ik, rc) * m_ik                         # (ti, kb)
                b_jk = fcut(d_jk, rc) * m_jk                         # (npad, kb)
                if eta != 0.0:
                    a_ij = a_ij * jnp.exp(-eta * d2_ij)
                    a_ik = a_ik * jnp.exp(-eta * d2_ik)
                    b_jk = b_jk * jnp.exp(-eta * d2_jk)
                w = a_ij[:, :, None] * a_ik[:, None, :] * b_jk[None, :, :]
                for (zeta, lam, fidx) in plist:
                    term = _ipow(1.0 + lam * cos_t, zeta) * w
                    acc_ref[fidx] += jnp.sum(term, axis=1)           # (ti, kb)

        # ---- G5: cutoffs hoisted per unique rc, Gaussian per unique (eta,rs)
        if g5_groups:
            need_sin = any(abs(math.sin(ths)) > 1e-12
                           for _rc, egs in g5_groups
                           for _er, tl in egs
                           for (ths, _z, _f) in tl)
            sin_t = (jnp.sqrt(jnp.maximum(1.0 - cos_t * cos_t, 0.0))
                     if need_sin else None)
            half_sum = 0.5 * (d_ij[:, :, None] + d_ik[:, None, :])   # (ti, npad, kb)
            m_jk3 = m_jk[None, :, :]
            for rc, eta_groups in g5_groups:
                fc_ij = fcut(d_ij, rc) * m_ij
                fc_ik = fcut(d_ik, rc) * m_ik
                fc3 = fc_ij[:, :, None] * fc_ik[:, None, :] * m_jk3  # j != k mask
                for (eta, rs), tlist in eta_groups:
                    if eta != 0.0:
                        gauss = jnp.exp(-eta * (half_sum - rs) ** 2) * fc3
                    else:
                        gauss = fc3
                    for (ths, zeta, fidx) in tlist:
                        c = math.cos(ths)
                        s = math.sin(ths)
                        if abs(s) > 1e-12:
                            base = 1.0 + c * cos_t + s * sin_t
                        elif c == 1.0:
                            base = 1.0 + cos_t
                        else:
                            base = 1.0 + c * cos_t
                        term = _ipow(base, zeta) * gauss
                        acc_ref[fidx] += jnp.sum(term, axis=1)       # (ti, kb)

    # ---- last k step: finish reductions on the MXU, one dense store --------
    @pl.when(k_idx == n_k - 1)
    def _write():
        ones_j = jnp.ones((npad, 1), f32)
        cols = []
        fc_cache = {}
        for (rc, eta, rs, kappa) in rad_params:
            if rc not in fc_cache:
                fc_cache[rc] = fcut(d_ij, rc) * m_ij
            v = fc_cache[rc]
            if eta != 0.0:
                v = v * jnp.exp(-eta * (d_ij - rs) ** 2)
            if kappa != 0.0:
                v = v * jnp.cos(kappa * d_ij)
            cols.append(lax.dot_general(v, ones_j, (((1,), (0,)), ((), ())),
                                        preferred_element_type=f32))   # (ti, 1)
        if n_ang > 0:
            ones_k = jnp.ones((kb, 1), f32)
            for fidx in range(n_ang):
                s = lax.dot_general(acc_ref[fidx], ones_k,
                                    (((1,), (0,)), ((), ())),
                                    preferred_element_type=f32)         # (ti, 1)
                cols.append(ang_scales[fidx] * s)
        feats = cols[0] if len(cols) == 1 else jnp.concatenate(cols, axis=1)
        pad_cols = f_pad - feats.shape[1]
        if pad_cols > 0:
            feats = jnp.concatenate([feats, jnp.zeros((ti, pad_cols), f32)], axis=1)
        out_ref[0] = feats


# ----------------------------------------------------------------------------
# Wrapper (forward pass of Featurizer)
# ----------------------------------------------------------------------------
def featurize(coordinates, config):
    coordinates = jnp.asarray(coordinates, jnp.float32)
    B, N, _ = coordinates.shape
    rad_params, g4_list, g5_list = _flatten_params(config)
    n_rad = len(rad_params)
    n_ang = len(g4_list) + len(g5_list)
    F = n_rad + n_ang
    assert F == config.num_features and F > 0

    # group angular params so 2-D factors are hoisted per unique (rc, eta) / rc
    g4_map = {}
    for idx, (rc, eta, zeta, lam) in enumerate(g4_list):
        g4_map.setdefault((rc, eta), []).append((zeta, lam, idx))
    g4_groups = tuple((key, tuple(v)) for key, v in g4_map.items())

    off = len(g4_list)
    g5_map = {}
    for idx, (rc, rs, ths, eta, zeta) in enumerate(g5_list):
        g5_map.setdefault(rc, {}).setdefault((eta, rs), []).append((ths, zeta, off + idx))
    g5_groups = tuple((rc, tuple((er, tuple(tl)) for er, tl in sub.items()))
                      for rc, sub in g5_map.items())

    ang_scales = tuple([2.0 ** (1.0 - z) for (_rc, _e, z, _l) in g4_list]
                       + [2.0 ** (1.0 - z) for (_rc, _rs, _t, _e, z) in g5_list])

    # ---- tile selection: (ti) i-rows x (kb) k-lanes of the angular slabs ----
    ti = min(32, _round_up(N, 8))
    n_pad = _round_up(N, ti)
    if n_pad <= 128:
        kb = n_pad
    else:
        n_pad = _round_up(n_pad, 128)
        kb = 128
        # shrink i-tile as N grows so ~8 live (ti, n_pad, kb) slabs fit v7x VMEM
        ti = 32 if n_pad <= 256 else (16 if n_pad <= 512 else 8)
    if n_ang == 0:          # radial-only: no k sweep needed
        kb = n_pad
    f_pad = _round_up(F, 128)

    # pad atoms placed far beyond every cutoff so they contribute exactly zero
    if n_pad > N:
        extra = n_pad - N
        far = 1.0e6 * (jnp.arange(extra, dtype=jnp.float32) + 1.0)
        pad_xyz = jnp.broadcast_to(jnp.stack([far, far, far], axis=-1)[None],
                                   (B, extra, 3))
        coords_pad = jnp.concatenate([coordinates, pad_xyz], axis=1)
    else:
        coords_pad = coordinates
    coords_t = jnp.transpose(coords_pad, (0, 2, 1))          # (B, 3, n_pad)

    kernel = functools.partial(
        _featurizer_kernel, rad_params=rad_params, g4_groups=g4_groups,
        g5_groups=g5_groups, ang_scales=ang_scales, n_ang=n_ang)

    # explicit VMEM budget: ~8 live (ti, n_pad, kb) f32 slabs + accumulators + I/O
    slab = ti * n_pad * kb * 4
    est = (8 * slab + max(n_ang, 1) * ti * kb * 4 + 8 * n_pad * 4 * 4
           + 2 * ti * f_pad * 4 + (8 << 20))
    vmem_limit = int(min(max(est, 32 << 20), 96 << 20))

    grid = (B, n_pad // ti, n_pad // kb)
    out = pl.pallas_call(
        kernel,
        out_shape=jax.ShapeDtypeStruct((B, n_pad, f_pad), jnp.float32),
        grid=grid,
        in_specs=[
            pl.BlockSpec((1, n_pad, 3), lambda b, i, k: (b, 0, 0)),  # all atoms (rows)
            pl.BlockSpec((1, ti, 3),    lambda b, i, k: (b, i, 0)),  # i tile  (rows)
            pl.BlockSpec((1, 3, n_pad), lambda b, i, k: (b, 0, 0)),  # all atoms (lanes)
            pl.BlockSpec((1, 3, kb),    lambda b, i, k: (b, 0, k)),  # k block (lanes)
        ],
        out_specs=pl.BlockSpec((1, ti, f_pad), lambda b, i, k: (b, i, 0)),
        scratch_shapes=[pltpu.VMEM((max(n_ang, 1), ti, kb), jnp.float32)],
        compiler_params=pltpu.CompilerParams(
            dimension_semantics=("parallel", "parallel", "arbitrary"),
            vmem_limit_bytes=vmem_limit),
    )(coords_pad, coords_pad, coords_t, coords_t)
    return out[:, :N, :F]


# ----------------------------------------------------------------------------
# Pure-JAX reference (mirrors the PyTorch forward: cdist + per-atom sums)
# ----------------------------------------------------------------------------
def featurize_reference(coordinates, config):
    rad_params, g4_params, g5_params = _flatten_params(config)

    def one(c):
        diff = c[:, None, :] - c[None, :, :]                        # (N, N, 3)
        dist2 = jnp.sum(diff ** 2, axis=-1)
        dist = jnp.sqrt(dist2)
        n = c.shape[0]
        eye = jnp.eye(n, dtype=bool)
        offdiag = ~eye

        def fcut(d, rc):
            return jnp.where(d < rc, 0.5 * (jnp.cos(jnp.pi * d / rc) + 1.0), 0.0)

        cols = []
        for (rc, eta, rs, kappa) in rad_params:
            v = jnp.exp(-eta * (dist - rs) ** 2) * jnp.cos(kappa * dist) * fcut(dist, rc)
            cols.append(jnp.sum(jnp.where(offdiag, v, 0.0), axis=1))

        dot_ijk = jnp.einsum('ijd,ikd->ijk', diff, diff)
        d_ij = dist[:, :, None]
        d_ik = dist[:, None, :]
        d_jk = dist[None, :, :]
        valid = offdiag[:, :, None] & offdiag[:, None, :] & offdiag[None, :, :]
        cos_t = jnp.where(valid, dot_ijk / jnp.where(valid, d_ij * d_ik, 1.0), 0.0)
        cos_t = jnp.clip(cos_t, -1.0, 1.0)
        sin_t = jnp.sqrt(jnp.clip(1.0 - cos_t ** 2, 0.0, 1.0))

        for (rc, eta, zeta, lam) in g4_params:
            term = (1.0 + lam * cos_t) ** zeta
            term = term * jnp.exp(-eta * (d_ij ** 2 + d_ik ** 2 + d_jk ** 2))
            term = term * fcut(d_ij, rc) * fcut(d_ik, rc) * fcut(d_jk, rc)
            cols.append((2.0 ** (1.0 - zeta)) *
                        jnp.sum(jnp.where(valid, term, 0.0), axis=(1, 2)))

        for (rc, rs, ths, eta, zeta) in g5_params:
            cs = cos_t * np.cos(ths) + sin_t * np.sin(ths)
            term = (1.0 + cs) ** zeta
            term = term * jnp.exp(-eta * (0.5 * (d_ij + d_ik) - rs) ** 2)
            term = term * fcut(d_ij, rc) * fcut(d_ik, rc)
            cols.append((2.0 ** (1.0 - zeta)) *
                        jnp.sum(jnp.where(valid, term, 0.0), axis=(1, 2)))

        return jnp.stack(cols, axis=-1)

    return jax.vmap(one)(coordinates.astype(jnp.float32))


if __name__ == "__main__":
    config = FeaturizerConfig(
        g1_param_ranges={'cutoff_radius': [3.0, 4.0]},
        g2_param_ranges={'cutoff_radius': [4.0], 'radial_shift': [0.0, 1.0],
                         'eta': [0.5, 1.0]},
        g3_param_ranges={'cutoff_radius': [4.0], 'kappa': [1.0, 2.0]},
        g4_param_ranges={'cutoff_radius': [4.0], 'eta': [0.1],
                         'zeta': [1.0, 2.0], 'lambda_': [1.0, -1.0]},
        g5_param_ranges={'cutoff_radius': [4.0], 'radial_shift': [1.0],
                         'angular_shift': [0.0], 'eta': [0.3], 'zeta': [1.0, 2.0]},
    )

    key = jax.random.PRNGKey(0)
    B, N = 2, 8
    coordinates = jax.random.uniform(key, (B, N, 3), dtype=jnp.float32) * 3.0

    out = featurize(coordinates, config)
    jax.block_until_ready(out)
    ref = featurize_reference(coordinates, config)
    assert out.shape == (B, N, config.num_features), out.shape
    np.testing.assert_allclose(np.asarray(out), np.asarray(ref), rtol=2e-3, atol=2e-3)

    # exercises atom padding + i-tiling
    coords2 = jax.random.uniform(jax.random.PRNGKey(1), (1, 40, 3),
                                 dtype=jnp.float32) * 4.0
    out2 = featurize(coords2, config)
    jax.block_until_ready(out2)
    ref2 = featurize_reference(coords2, config)
    np.testing.assert_allclose(np.asarray(out2), np.asarray(ref2), rtol=2e-3, atol=2e-3)

    # exercises the k-block sweep (multiple accumulation steps) + padding
    coords3 = jax.random.uniform(jax.random.PRNGKey(2), (1, 130, 3),
                                 dtype=jnp.float32) * 6.0
    out3 = featurize(coords3, config)
    jax.block_until_ready(out3)
    ref3 = featurize_reference(coords3, config)
    np.testing.assert_allclose(np.asarray(out3), np.asarray(ref3), rtol=2e-3, atol=2e-3)

    print("KERNEL_OK")
</pallas_src>

<mosaic_0001>
module attributes {stable_mosaic.version = 11 : i64} {
  func.func @_featurizer_kernel(%arg0: i32, %arg1: i32, %arg2: i32, %arg3: memref<1x8x3xf32, #tpu.memory_space<vmem>>, %arg4: memref<1x8x3xf32, #tpu.memory_space<vmem>>, %arg5: memref<1x3x8xf32, #tpu.memory_space<vmem>>, %arg6: memref<1x3x8xf32, #tpu.memory_space<vmem>>, %arg7: memref<1x8x128xf32, #tpu.memory_space<vmem>>, %arg8: memref<6x8x8xf32, #tpu.memory_space<vmem>>) attributes {dimension_semantics = [#tpu.dimension_semantics<parallel>, #tpu.dimension_semantics<parallel>, #tpu.dimension_semantics<arbitrary>], iteration_bounds = array<i64: 2, 1, 1>, scalar_prefetch = 0 : i64, scratch_operands = 1 : i64, tpu.core_type = #tpu.core_type<tc>, window_params = [{transform_indices = @transform_0, window_bounds = array<i64: 1, 8, 3>}, {transform_indices = @transform_1, window_bounds = array<i64: 1, 8, 3>}, {transform_indices = @transform_2, window_bounds = array<i64: 1, 3, 8>}, {transform_indices = @transform_3, window_bounds = array<i64: 1, 3, 8>}, {transform_indices = @transform_4, window_bounds = array<i64: 1, 8, 128>}]} {
    %c8_i32 = arith.constant 8 : i32
    %0 = arith.muli %arg1, %c8_i32 : i32
    %c8_i32_0 = arith.constant 8 : i32
    %1 = arith.muli %arg2, %c8_i32_0 : i32
    %c0 = arith.constant 0 : index
    %c0_1 = arith.constant 0 : index
    %c0_2 = arith.constant 0 : index
    %2 = vector.load %arg4[%c0, %c0_1, %c0_2] : memref<1x8x3xf32, #tpu.memory_space<vmem>>, vector<1x8x3xf32>
    %3 = vector.shape_cast %2 : vector<1x8x3xf32> to vector<8x3xf32>
    %c0_3 = arith.constant 0 : index
    %c0_4 = arith.constant 0 : index
    %c0_5 = arith.constant 0 : index
    %4 = vector.load %arg5[%c0_3, %c0_4, %c0_5] : memref<1x3x8xf32, #tpu.memory_space<vmem>>, vector<1x3x8xf32>
    %5 = vector.shape_cast %4 : vector<1x3x8xf32> to vector<3x8xf32>
    %c0_6 = arith.constant 0 : index
    %c0_7 = arith.constant 0 : index
    %c0_8 = arith.constant 0 : index
    %6 = vector.load %arg6[%c0_6, %c0_7, %c0_8] : memref<1x3x8xf32, #tpu.memory_space<vmem>>, vector<1x3x8xf32>
    %7 = vector.shape_cast %6 : vector<1x3x8xf32> to vector<3x8xf32>
    %8 = vector.extract_strided_slice %3 {offsets = [0, 0], sizes = [8, 1], strides = [1, 1]} : vector<8x3xf32> to vector<8x1xf32>
    %9 = vector.extract_strided_slice %5 {offsets = [0, 0], sizes = [1, 8], strides = [1, 1]} : vector<3x8xf32> to vector<1x8xf32>
    %10 = vector.broadcast %8 : vector<8x1xf32> to vector<8x8xf32>
    %11 = vector.broadcast %9 : vector<1x8xf32> to vector<8x8xf32>
    %12 = arith.subf %10, %11 : vector<8x8xf32>
    %13 = vector.extract_strided_slice %3 {offsets = [0, 1], sizes = [8, 1], strides = [1, 1]} : vector<8x3xf32> to vector<8x1xf32>
    %14 = vector.extract_strided_slice %5 {offsets = [1, 0], sizes = [1, 8], strides = [1, 1]} : vector<3x8xf32> to vector<1x8xf32>
    %15 = vector.broadcast %13 : vector<8x1xf32> to vector<8x8xf32>
    %16 = vector.broadcast %14 : vector<1x8xf32> to vector<8x8xf32>
    %17 = arith.subf %15, %16 : vector<8x8xf32>
    %18 = vector.extract_strided_slice %3 {offsets = [0, 2], sizes = [8, 1], strides = [1, 1]} : vector<8x3xf32> to vector<8x1xf32>
    %19 = vector.extract_strided_slice %5 {offsets = [2, 0], sizes = [1, 8], strides = [1, 1]} : vector<3x8xf32> to vector<1x8xf32>
    %20 = vector.broadcast %18 : vector<8x1xf32> to vector<8x8xf32>
    %21 = vector.broadcast %19 : vector<1x8xf32> to vector<8x8xf32>
    %22 = arith.subf %20, %21 : vector<8x8xf32>
    %23 = arith.mulf %12, %12 : vector<8x8xf32>
    %24 = arith.mulf %17, %17 : vector<8x8xf32>
    %25 = arith.addf %23, %24 : vector<8x8xf32>
    %26 = arith.mulf %22, %22 : vector<8x8xf32>
    %27 = arith.addf %25, %26 : vector<8x8xf32>
    %28 = math.sqrt %27 : vector<8x8xf32>
    %29 = tpu.iota {dimensions = array<i32: 0>} : vector<8x8xi32>
    %30 = vector.broadcast %0 : i32 to vector<8x8xi32>
    %31 = arith.addi %29, %30 : vector<8x8xi32>
    %32 = tpu.iota {dimensions = array<i32: 1>} : vector<8x8xi32>
    %33 = arith.cmpi ne, %31, %32 : vector<8x8xi32>
    %34 = arith.extui %33 : vector<8x8xi1> to vector<8x8xi32>
    %35 = arith.sitofp %34 : vector<8x8xi32> to vector<8x8xf32>
    %c0_i32 = arith.constant 0 : i32
    %36 = arith.cmpi eq, %arg2, %c0_i32 : i32
    %37 = arith.extui %36 : i1 to i32
    %c0_i32_9 = arith.constant 0 : i32
    %38 = arith.cmpi ne, %37, %c0_i32_9 : i32
    scf.if %38 {
      %cst_96 = arith.constant 0.000000e+00 : f32
      %308 = vector.broadcast %cst_96 : f32 to vector<6x8x8xf32>
      %c0_97 = arith.constant 0 : index
      %c0_98 = arith.constant 0 : index
      %c0_99 = arith.constant 0 : index
      %309 = vector.load %arg8[%c0_97, %c0_98, %c0_99] : memref<6x8x8xf32, #tpu.memory_space<vmem>>, vector<6x8x8xf32>
      tpu.vector_store %arg8[%c0_97, %c0_98, %c0_99], %308 {strides = array<i32>} : memref<6x8x8xf32, #tpu.memory_space<vmem>>, vector<6x8x8xf32>,
    } else {
    }
    %39 = vector.extract_strided_slice %3 {offsets = [0, 0], sizes = [8, 1], strides = [1, 1]} : vector<8x3xf32> to vector<8x1xf32>
    %40 = vector.extract_strided_slice %7 {offsets = [0, 0], sizes = [1, 8], strides = [1, 1]} : vector<3x8xf32> to vector<1x8xf32>
    %41 = vector.broadcast %39 : vector<8x1xf32> to vector<8x8xf32>
    %42 = vector.broadcast %40 : vector<1x8xf32> to vector<8x8xf32>
    %43 = arith.subf %41, %42 : vector<8x8xf32>
    %44 = vector.extract_strided_slice %3 {offsets = [0, 1], sizes = [8, 1], strides = [1, 1]} : vector<8x3xf32> to vector<8x1xf32>
    %45 = vector.extract_strided_slice %7 {offsets = [1, 0], sizes = [1, 8], strides = [1, 1]} : vector<3x8xf32> to vector<1x8xf32>
    %46 = vector.broadcast %44 : vector<8x1xf32> to vector<8x8xf32>
    %47 = vector.broadcast %45 : vector<1x8xf32> to vector<8x8xf32>
    %48 = arith.subf %46, %47 : vector<8x8xf32>
    %49 = vector.extract_strided_slice %3 {offsets = [0, 2], sizes = [8, 1], strides = [1, 1]} : vector<8x3xf32> to vector<8x1xf32>
    %50 = vector.extract_strided_slice %7 {offsets = [2, 0], sizes = [1, 8], strides = [1, 1]} : vector<3x8xf32> to vector<1x8xf32>
    %51 = vector.broadcast %49 : vector<8x1xf32> to vector<8x8xf32>
    %52 = vector.broadcast %50 : vector<1x8xf32> to vector<8x8xf32>
    %53 = arith.subf %51, %52 : vector<8x8xf32>
    %54 = arith.mulf %43, %43 : vector<8x8xf32>
    %55 = arith.mulf %48, %48 : vector<8x8xf32>
    %56 = arith.addf %54, %55 : vector<8x8xf32>
    %57 = arith.mulf %53, %53 : vector<8x8xf32>
    %58 = arith.addf %56, %57 : vector<8x8xf32>
    %59 = math.sqrt %58 : vector<8x8xf32>
    %60 = tpu.iota {dimensions = array<i32: 0>} : vector<8x8xi32>
    %61 = vector.broadcast %0 : i32 to vector<8x8xi32>
    %62 = arith.addi %60, %61 : vector<8x8xi32>
    %63 = tpu.iota {dimensions = array<i32: 1>} : vector<8x8xi32>
    %64 = vector.broadcast %1 : i32 to vector<8x8xi32>
    %65 = arith.addi %63, %64 : vector<8x8xi32>
    %66 = arith.cmpi ne, %62, %65 : vector<8x8xi32>
    %67 = arith.extui %66 : vector<8x8xi1> to vector<8x8xi32>
    %68 = arith.sitofp %67 : vector<8x8xi32> to vector<8x8xf32>
    %69 = tpu.iota {dimensions = array<i32: 0>} : vector<8x8xi32>
    %70 = tpu.iota {dimensions = array<i32: 1>} : vector<8x8xi32>
    %71 = vector.broadcast %1 : i32 to vector<8x8xi32>
    %72 = arith.addi %70, %71 : vector<8x8xi32>
    %73 = arith.cmpi ne, %69, %72 : vector<8x8xi32>
    %74 = arith.extui %73 : vector<8x8xi1> to vector<8x8xi32>
    %75 = arith.sitofp %74 : vector<8x8xi32> to vector<8x8xf32>
    %cst = arith.constant 9.99999996E-13 : f32
    %76 = vector.broadcast %cst : f32 to vector<8x8xf32>
    %77 = arith.maximumf %28, %76 : vector<8x8xf32>
    %78 = arith.divf %35, %77 : vector<8x8xf32>
    %cst_10 = arith.constant 9.99999996E-13 : f32
    %79 = vector.broadcast %cst_10 : f32 to vector<8x8xf32>
    %80 = arith.maximumf %59, %79 : vector<8x8xf32>
    %81 = arith.divf %68, %80 : vector<8x8xf32>
    %82 = vector.shape_cast %12 : vector<8x8xf32> to vector<8x8x1xf32>
    %83 = vector.shape_cast %43 : vector<8x8xf32> to vector<8x1x8xf32>
    %84 = vector.broadcast %82 : vector<8x8x1xf32> to vector<8x8x8xf32>
    %85 = vector.broadcast %83 : vector<8x1x8xf32> to vector<8x8x8xf32>
    %86 = arith.mulf %84, %85 : vector<8x8x8xf32>
    %87 = vector.shape_cast %17 : vector<8x8xf32> to vector<8x8x1xf32>
    %88 = vector.shape_cast %48 : vector<8x8xf32> to vector<8x1x8xf32>
    %89 = vector.broadcast %87 : vector<8x8x1xf32> to vector<8x8x8xf32>
    %90 = vector.broadcast %88 : vector<8x1x8xf32> to vector<8x8x8xf32>
    %91 = arith.mulf %89, %90 : vector<8x8x8xf32>
    %92 = arith.addf %86, %91 : vector<8x8x8xf32>
    %93 = vector.shape_cast %22 : vector<8x8xf32> to vector<8x8x1xf32>
    %94 = vector.shape_cast %53 : vector<8x8xf32> to vector<8x1x8xf32>
    %95 = vector.broadcast %93 : vector<8x8x1xf32> to vector<8x8x8xf32>
    %96 = vector.broadcast %94 : vector<8x1x8xf32> to vector<8x8x8xf32>
    %97 = arith.mulf %95, %96 : vector<8x8x8xf32>
    %98 = arith.addf %92, %97 : vector<8x8x8xf32>
    %99 = vector.shape_cast %78 : vector<8x8xf32> to vector<8x8x1xf32>
    %100 = vector.broadcast %99 : vector<8x8x1xf32> to vector<8x8x8xf32>
    %101 = arith.mulf %98, %100 : vector<8x8x8xf32>
    %102 = vector.shape_cast %81 : vector<8x8xf32> to vector<8x1x8xf32>
    %103 = vector.broadcast %102 : vector<8x1x8xf32> to vector<8x8x8xf32>
    %104 = arith.mulf %101, %103 : vector<8x8x8xf32>
    %cst_11 = arith.constant -1.000000e+00 : f32
    %cst_12 = arith.constant 1.000000e+00 : f32
    %105 = vector.broadcast %cst_11 : f32 to vector<8x8x8xf32>
    %106 = arith.maximumf %105, %104 : vector<8x8x8xf32>
    %107 = vector.broadcast %cst_12 : f32 to vector<8x8x8xf32>
    %108 = arith.minimumf %107, %106 : vector<8x8x8xf32>
    %c0_13 = arith.constant 0 : index
    %c0_14 = arith.constant 0 : index
    %c0_15 = arith.constant 0 : index
    %109 = vector.load %arg3[%c0_13, %c0_14, %c0_15] : memref<1x8x3xf32, #tpu.memory_space<vmem>>, vector<1x8x3xf32>
    %110 = vector.shape_cast %109 : vector<1x8x3xf32> to vector<8x3xf32>
    %111 = vector.extract_strided_slice %110 {offsets = [0, 0], sizes = [8, 1], strides = [1, 1]} : vector<8x3xf32> to vector<8x1xf32>
    %112 = vector.extract_strided_slice %7 {offsets = [0, 0], sizes = [1, 8], strides = [1, 1]} : vector<3x8xf32> to vector<1x8xf32>
    %113 = vector.broadcast %111 : vector<8x1xf32> to vector<8x8xf32>
    %114 = vector.broadcast %112 : vector<1x8xf32> to vector<8x8xf32>
    %115 = arith.subf %113, %114 : vector<8x8xf32>
    %116 = vector.extract_strided_slice %110 {offsets = [0, 1], sizes = [8, 1], strides = [1, 1]} : vector<8x3xf32> to vector<8x1xf32>
    %117 = vector.extract_strided_slice %7 {offsets = [1, 0], sizes = [1, 8], strides = [1, 1]} : vector<3x8xf32> to vector<1x8xf32>
    %118 = vector.broadcast %116 : vector<8x1xf32> to vector<8x8xf32>
    %119 = vector.broadcast %117 : vector<1x8xf32> to vector<8x8xf32>
    %120 = arith.subf %118, %119 : vector<8x8xf32>
    %121 = vector.extract_strided_slice %110 {offsets = [0, 2], sizes = [8, 1], strides = [1, 1]} : vector<8x3xf32> to vector<8x1xf32>
    %122 = vector.extract_strided_slice %7 {offsets = [2, 0], sizes = [1, 8], strides = [1, 1]} : vector<3x8xf32> to vector<1x8xf32>
    %123 = vector.broadcast %121 : vector<8x1xf32> to vector<8x8xf32>
    %124 = vector.broadcast %122 : vector<1x8xf32> to vector<8x8xf32>
    %125 = arith.subf %123, %124 : vector<8x8xf32>
    %126 = arith.mulf %115, %115 : vector<8x8xf32>
    %127 = arith.mulf %120, %120 : vector<8x8xf32>
    %128 = arith.addf %126, %127 : vector<8x8xf32>
    %129 = arith.mulf %125, %125 : vector<8x8xf32>
    %130 = arith.addf %128, %129 : vector<8x8xf32>
    %131 = math.sqrt %130 : vector<8x8xf32>
    %cst_16 = arith.constant 4.000000e+00 : f32
    %132 = vector.broadcast %cst_16 : f32 to vector<8x8xf32>
    %133 = arith.cmpf olt, %28, %132 : vector<8x8xf32>
    %cst_17 = arith.constant 0.785398185 : f32
    %134 = vector.broadcast %cst_17 : f32 to vector<8x8xf32>
    %135 = arith.mulf %134, %28 : vector<8x8xf32>
    %136 = math.cos %135 : vector<8x8xf32>
    %cst_18 = arith.constant 1.000000e+00 : f32
    %137 = vector.broadcast %cst_18 : f32 to vector<8x8xf32>
    %138 = arith.addf %136, %137 : vector<8x8xf32>
    %cst_19 = arith.constant 5.000000e-01 : f32
    %139 = vector.broadcast %cst_19 : f32 to vector<8x8xf32>
    %140 = arith.mulf %139, %138 : vector<8x8xf32>
    %cst_20 = arith.constant 0.000000e+00 : f32
    %141 = vector.broadcast %cst_20 : f32 to vector<8x8xf32>
    %142 = arith.select %133, %140, %141 : vector<8x8xi1>, vector<8x8xf32>
    %143 = arith.mulf %142, %35 : vector<8x8xf32>
    %cst_21 = arith.constant 4.000000e+00 : f32
    %144 = vector.broadcast %cst_21 : f32 to vector<8x8xf32>
    %145 = arith.cmpf olt, %59, %144 : vector<8x8xf32>
    %cst_22 = arith.constant 0.785398185 : f32
    %146 = vector.broadcast %cst_22 : f32 to vector<8x8xf32>
    %147 = arith.mulf %146, %59 : vector<8x8xf32>
    %148 = math.cos %147 : vector<8x8xf32>
    %cst_23 = arith.constant 1.000000e+00 : f32
    %149 = vector.broadcast %cst_23 : f32 to vector<8x8xf32>
    %150 = arith.addf %148, %149 : vector<8x8xf32>
    %cst_24 = arith.constant 5.000000e-01 : f32
    %151 = vector.broadcast %cst_24 : f32 to vector<8x8xf32>
    %152 = arith.mulf %151, %150 : vector<8x8xf32>
    %cst_25 = arith.constant 0.000000e+00 : f32
    %153 = vector.broadcast %cst_25 : f32 to vector<8x8xf32>
    %154 = arith.select %145, %152, %153 : vector<8x8xi1>, vector<8x8xf32>
    %155 = arith.mulf %154, %68 : vector<8x8xf32>
    %cst_26 = arith.constant 4.000000e+00 : f32
    %156 = vector.broadcast %cst_26 : f32 to vector<8x8xf32>
    %157 = arith.cmpf olt, %131, %156 : vector<8x8xf32>
    %cst_27 = arith.constant 0.785398185 : f32
    %158 = vector.broadcast %cst_27 : f32 to vector<8x8xf32>
    %159 = arith.mulf %158, %131 : vector<8x8xf32>
    %160 = math.cos %159 : vector<8x8xf32>
    %cst_28 = arith.constant 1.000000e+00 : f32
    %161 = vector.broadcast %cst_28 : f32 to vector<8x8xf32>
    %162 = arith.addf %160, %161 : vector<8x8xf32>
    %cst_29 = arith.constant 5.000000e-01 : f32
    %163 = vector.broadcast %cst_29 : f32 to vector<8x8xf32>
    %164 = arith.mulf %163, %162 : vector<8x8xf32>
    %cst_30 = arith.constant 0.000000e+00 : f32
    %165 = vector.broadcast %cst_30 : f32 to vector<8x8xf32>
    %166 = arith.select %157, %164, %165 : vector<8x8xi1>, vector<8x8xf32>
    %167 = arith.mulf %166, %75 : vector<8x8xf32>
    %cst_31 = arith.constant -1.000000e-01 : f32
    %168 = vector.broadcast %cst_31 : f32 to vector<8x8xf32>
    %169 = arith.mulf %168, %27 : vector<8x8xf32>
    %170 = math.exp %169 : vector<8x8xf32>
    %171 = arith.mulf %143, %170 : vector<8x8xf32>
    %cst_32 = arith.constant -1.000000e-01 : f32
    %172 = vector.broadcast %cst_32 : f32 to vector<8x8xf32>
    %173 = arith.mulf %172, %58 : vector<8x8xf32>
    %174 = math.exp %173 : vector<8x8xf32>
    %175 = arith.mulf %155, %174 : vector<8x8xf32>
    %cst_33 = arith.constant -1.000000e-01 : f32
    %176 = vector.broadcast %cst_33 : f32 to vector<8x8xf32>
    %177 = arith.mulf %176, %130 : vector<8x8xf32>
    %178 = math.exp %177 : vector<8x8xf32>
    %179 = arith.mulf %167, %178 : vector<8x8xf32>
    %180 = vector.shape_cast %171 : vector<8x8xf32> to vector<8x8x1xf32>
    %181 = vector.shape_cast %175 : vector<8x8xf32> to vector<8x1x8xf32>
    %182 = vector.broadcast %180 : vector<8x8x1xf32> to vector<8x8x8xf32>
    %183 = vector.broadcast %181 : vector<8x1x8xf32> to vector<8x8x8xf32>
    %184 = arith.mulf %182, %183 : vector<8x8x8xf32>
    %185 = vector.shape_cast %179 : vector<8x8xf32> to vector<1x8x8xf32>
    %186 = vector.broadcast %185 : vector<1x8x8xf32> to vector<8x8x8xf32>
    %187 = arith.mulf %184, %186 : vector<8x8x8xf32>
    %cst_34 = arith.constant 1.000000e+00 : f32
    %188 = vector.broadcast %cst_34 : f32 to vector<8x8x8xf32>
    %189 = arith.mulf %188, %108 : vector<8x8x8xf32>
    %cst_35 = arith.constant 1.000000e+00 : f32
    %190 = vector.broadcast %cst_35 : f32 to vector<8x8x8xf32>
    %191 = arith.addf %190, %189 : vector<8x8x8xf32>
    %192 = arith.mulf %191, %187 : vector<8x8x8xf32>
    %c0_36 = arith.constant 0 : index
    %c0_37 = arith.constant 0 : index
    %c0_38 = arith.constant 0 : index
    %193 = vector.load %arg8[%c0_36, %c0_37, %c0_38] : memref<6x8x8xf32, #tpu.memory_space<vmem>>, vector<1x8x8xf32>
    %194 = vector.shape_cast %193 : vector<1x8x8xf32> to vector<8x8xf32>
    %cst_39 = arith.constant dense<0.000000e+00> : vector<8x8xf32>
    %195 = vector.multi_reduction <add>, %192, %cst_39 [1] : vector<8x8x8xf32> to vector<8x8xf32>
    %196 = arith.addf %194, %195 : vector<8x8xf32>
    %c0_40 = arith.constant 0 : index
    %c0_41 = arith.constant 0 : index
    %c0_42 = arith.constant 0 : index
    %197 = vector.load %arg8[%c0_40, %c0_41, %c0_42] : memref<6x8x8xf32, #tpu.memory_space<vmem>>, vector<1x8x8xf32>
    %198 = vector.shape_cast %197 : vector<1x8x8xf32> to vector<8x8xf32>
    %199 = vector.shape_cast %196 : vector<8x8xf32> to vector<1x8x8xf32>
    tpu.vector_store %arg8[%c0_40, %c0_41, %c0_42], %199 {strides = array<i32>} : memref<6x8x8xf32, #tpu.memory_space<vmem>>, vector<1x8x8xf32>,
    %cst_43 = arith.constant -1.000000e+00 : f32
    %200 = vector.broadcast %cst_43 : f32 to vector<8x8x8xf32>
    %201 = arith.mulf %200, %108 : vector<8x8x8xf32>
    %cst_44 = arith.constant 1.000000e+00 : f32
    %202 = vector.broadcast %cst_44 : f32 to vector<8x8x8xf32>
    %203 = arith.addf %202, %201 : vector<8x8x8xf32>
    %204 = arith.mulf %203, %187 : vector<8x8x8xf32>
    %c1 = arith.constant 1 : index
    %c0_45 = arith.constant 0 : index
    %c0_46 = arith.constant 0 : index
    %205 = vector.load %arg8[%c1, %c0_45, %c0_46] : memref<6x8x8xf32, #tpu.memory_space<vmem>>, vector<1x8x8xf32>
    %206 = vector.shape_cast %205 : vector<1x8x8xf32> to vector<8x8xf32>
    %cst_47 = arith.constant dense<0.000000e+00> : vector<8x8xf32>
    %207 = vector.multi_reduction <add>, %204, %cst_47 [1] : vector<8x8x8xf32> to vector<8x8xf32>
    %208 = arith.addf %206, %207 : vector<8x8xf32>
    %c1_48 = arith.constant 1 : index
    %c0_49 = arith.constant 0 : index
    %c0_50 = arith.constant 0 : index
    %209 = vector.load %arg8[%c1_48, %c0_49, %c0_50] : memref<6x8x8xf32, #tpu.memory_space<vmem>>, vector<1x8x8xf32>
    %210 = vector.shape_cast %209 : vector<1x8x8xf32> to vector<8x8xf32>
    %211 = vector.shape_cast %208 : vector<8x8xf32> to vector<1x8x8xf32>
    tpu.vector_store %arg8[%c1_48, %c0_49, %c0_50], %211 {strides = array<i32>} : memref<6x8x8xf32, #tpu.memory_space<vmem>>, vector<1x8x8xf32>,
    %cst_51 = arith.constant 1.000000e+00 : f32
    %212 = vector.broadcast %cst_51 : f32 to vector<8x8x8xf32>
    %213 = arith.mulf %212, %108 : vector<8x8x8xf32>
    %cst_52 = arith.constant 1.000000e+00 : f32
    %214 = vector.broadcast %cst_52 : f32 to vector<8x8x8xf32>
    %215 = arith.addf %214, %213 : vector<8x8x8xf32>
    %216 = arith.mulf %215, %215 : vector<8x8x8xf32>
    %217 = arith.mulf %216, %187 : vector<8x8x8xf32>
    %c2 = arith.constant 2 : index
    %c0_53 = arith.constant 0 : index
    %c0_54 = arith.constant 0 : index
    %218 = vector.load %arg8[%c2, %c0_53, %c0_54] : memref<6x8x8xf32, #tpu.memory_space<vmem>>, vector<1x8x8xf32>
    %219 = vector.shape_cast %218 : vector<1x8x8xf32> to vector<8x8xf32>
    %cst_55 = arith.constant dense<0.000000e+00> : vector<8x8xf32>
    %220 = vector.multi_reduction <add>, %217, %cst_55 [1] : vector<8x8x8xf32> to vector<8x8xf32>
    %221 = arith.addf %219, %220 : vector<8x8xf32>
    %c2_56 = arith.constant 2 : index
    %c0_57 = arith.constant 0 : index
    %c0_58 = arith.constant 0 : index
    %222 = vector.load %arg8[%c2_56, %c0_57, %c0_58] : memref<6x8x8xf32, #tpu.memory_space<vmem>>, vector<1x8x8xf32>
    %223 = vector.shape_cast %222 : vector<1x8x8xf32> to vector<8x8xf32>
    %224 = vector.shape_cast %221 : vector<8x8xf32> to vector<1x8x8xf32>
    tpu.vector_store %arg8[%c2_56, %c0_57, %c0_58], %224 {strides = array<i32>} : memref<6x8x8xf32, #tpu.memory_space<vmem>>, vector<1x8x8xf32>,
    %cst_59 = arith.constant -1.000000e+00 : f32
    %225 = vector.broadcast %cst_59 : f32 to vector<8x8x8xf32>
    %226 = arith.mulf %225, %108 : vector<8x8x8xf32>
    %cst_60 = arith.constant 1.000000e+00 : f32
    %227 = vector.broadcast %cst_60 : f32 to vector<8x8x8xf32>
    %228 = arith.addf %227, %226 : vector<8x8x8xf32>
    %229 = arith.mulf %228, %228 : vector<8x8x8xf32>
    %230 = arith.mulf %229, %187 : vector<8x8x8xf32>
    %c3 = arith.constant 3 : index
    %c0_61 = arith.constant 0 : index
    %c0_62 = arith.constant 0 : index
    %231 = vector.load %arg8[%c3, %c0_61, %c0_62] : memref<6x8x8xf32, #tpu.memory_space<vmem>>, vector<1x8x8xf32>
    %232 = vector.shape_cast %231 : vector<1x8x8xf32> to vector<8x8xf32>
    %cst_63 = arith.constant dense<0.000000e+00> : vector<8x8xf32>
    %233 = vector.multi_reduction <add>, %230, %cst_63 [1] : vector<8x8x8xf32> to vector<8x8xf32>
    %234 = arith.addf %232, %233 : vector<8x8xf32>
    %c3_64 = arith.constant 3 : index
    %c0_65 = arith.constant 0 : index
    %c0_66 = arith.constant 0 : index
    %235 = vector.load %arg8[%c3_64, %c0_65, %c0_66] : memref<6x8x8xf32, #tpu.memory_space<vmem>>, vector<1x8x8xf32>
    %236 = vector.shape_cast %235 : vector<1x8x8xf32> to vector<8x8xf32>
    %237 = vector.shape_cast %234 : vector<8x8xf32> to vector<1x8x8xf32>
    tpu.vector_store %arg8[%c3_64, %c0_65, %c0_66], %237 {strides = array<i32>} : memref<6x8x8xf32, #tpu.memory_space<vmem>>, vector<1x8x8xf32>,
    %238 = vector.shape_cast %28 : vector<8x8xf32> to vector<8x8x1xf32>
    %239 = vector.shape_cast %59 : vector<8x8xf32> to vector<8x1x8xf32>
    %240 = vector.broadcast %238 : vector<8x8x1xf32> to vector<8x8x8xf32>
    %241 = vector.broadcast %239 : vector<8x1x8xf32> to vector<8x8x8xf32>
    %242 = arith.addf %240, %241 : vector<8x8x8xf32>
    %cst_67 = arith.constant 5.000000e-01 : f32
    %243 = vector.broadcast %cst_67 : f32 to vector<8x8x8xf32>
    %244 = arith.mulf %243, %242 : vector<8x8x8xf32>
    %245 = vector.shape_cast %75 : vector<8x8xf32> to vector<1x8x8xf32>
    %cst_68 = arith.constant 4.000000e+00 : f32
    %246 = vector.broadcast %cst_68 : f32 to vector<8x8xf32>
    %247 = arith.cmpf olt, %28, %246 : vector<8x8xf32>
    %cst_69 = arith.constant 0.785398185 : f32
    %248 = vector.broadcast %cst_69 : f32 to vector<8x8xf32>
    %249 = arith.mulf %248, %28 : vector<8x8xf32>
    %250 = math.cos %249 : vector<8x8xf32>
    %cst_70 = arith.constant 1.000000e+00 : f32
    %251 = vector.broadcast %cst_70 : f32 to vector<8x8xf32>
    %252 = arith.addf %250, %251 : vector<8x8xf32>
    %cst_71 = arith.constant 5.000000e-01 : f32
    %253 = vector.broadcast %cst_71 : f32 to vector<8x8xf32>
    %254 = arith.mulf %253, %252 : vector<8x8xf32>
    %cst_72 = arith.constant 0.000000e+00 : f32
    %255 = vector.broadcast %cst_72 : f32 to vector<8x8xf32>
    %256 = arith.select %247, %254, %255 : vector<8x8xi1>, vector<8x8xf32>
    %257 = arith.mulf %256, %35 : vector<8x8xf32>
    %cst_73 = arith.constant 4.000000e+00 : f32
    %258 = vector.broadcast %cst_73 : f32 to vector<8x8xf32>
    %259 = arith.cmpf olt, %59, %258 : vector<8x8xf32>
    %cst_74 = arith.constant 0.785398185 : f32
    %260 = vector.broadcast %cst_74 : f32 to vector<8x8xf32>
    %261 = arith.mulf %260, %59 : vector<8x8xf32>
    %262 = math.cos %261 : vector<8x8xf32>
    %cst_75 = arith.constant 1.000000e+00 : f32
    %263 = vector.broadcast %cst_75 : f32 to vector<8x8xf32>
    %264 = arith.addf %262, %263 : vector<8x8xf32>
    %cst_76 = arith.constant 5.000000e-01 : f32
    %265 = vector.broadcast %cst_76 : f32 to vector<8x8xf32>
    %266 = arith.mulf %265, %264 : vector<8x8xf32>
    %cst_77 = arith.constant 0.000000e+00 : f32
    %267 = vector.broadcast %cst_77 : f32 to vector<8x8xf32>
    %268 = arith.select %259, %266, %267 : vector<8x8xi1>, vector<8x8xf32>
    %269 = arith.mulf %268, %68 : vector<8x8xf32>
    %270 = vector.shape_cast %257 : vector<8x8xf32> to vector<8x8x1xf32>
    %271 = vector.shape_cast %269 : vector<8x8xf32> to vector<8x1x8xf32>
    %272 = vector.broadcast %270 : vector<8x8x1xf32> to vector<8x8x8xf32>
    %273 = vector.broadcast %271 : vector<8x1x8xf32> to vector<8x8x8xf32>
    %274 = arith.mulf %272, %273 : vector<8x8x8xf32>
    %275 = vector.broadcast %245 : vector<1x8x8xf32> to vector<8x8x8xf32>
    %276 = arith.mulf %274, %275 : vector<8x8x8xf32>
    %cst_78 = arith.constant 1.000000e+00 : f32
    %277 = vector.broadcast %cst_78 : f32 to vector<8x8x8xf32>
    %278 = arith.subf %244, %277 : vector<8x8x8xf32>
    %279 = arith.mulf %278, %278 : vector<8x8x8xf32>
    %cst_79 = arith.constant -3.000000e-01 : f32
    %280 = vector.broadcast %cst_79 : f32 to vector<8x8x8xf32>
    %281 = arith.mulf %280, %279 : vector<8x8x8xf32>
    %282 = math.exp %281 : vector<8x8x8xf32>
    %283 = arith.mulf %282, %276 : vector<8x8x8xf32>
    %cst_80 = arith.constant 1.000000e+00 : f32
    %284 = vector.broadcast %cst_80 : f32 to vector<8x8x8xf32>
    %285 = arith.addf %284, %108 : vector<8x8x8xf32>
    %286 = arith.mulf %285, %283 : vector<8x8x8xf32>
    %c4 = arith.constant 4 : index
    %c0_81 = arith.constant 0 : index
    %c0_82 = arith.constant 0 : index
    %287 = vector.load %arg8[%c4, %c0_81, %c0_82] : memref<6x8x8xf32, #tpu.memory_space<vmem>>, vector<1x8x8xf32>
    %288 = vector.shape_cast %287 : vector<1x8x8xf32> to vector<8x8xf32>
    %cst_83 = arith.constant dense<0.000000e+00> : vector<8x8xf32>
    %289 = vector.multi_reduction <add>, %286, %cst_83 [1] : vector<8x8x8xf32> to vector<8x8xf32>
    %290 = arith.addf %288, %289 : vector<8x8xf32>
    %c4_84 = arith.constant 4 : index
    %c0_85 = arith.constant 0 : index
    %c0_86 = arith.constant 0 : index
    %291 = vector.load %arg8[%c4_84, %c0_85, %c0_86] : memref<6x8x8xf32, #tpu.memory_space<vmem>>, vector<1x8x8xf32>
    %292 = vector.shape_cast %291 : vector<1x8x8xf32> to vector<8x8xf32>
    %293 = vector.shape_cast %290 : vector<8x8xf32> to vector<1x8x8xf32>
    tpu.vector_store %arg8[%c4_84, %c0_85, %c0_86], %293 {strides = array<i32>} : memref<6x8x8xf32, #tpu.memory_space<vmem>>, vector<1x8x8xf32>,
    %cst_87 = arith.constant 1.000000e+00 : f32
    %294 = vector.broadcast %cst_87 : f32 to vector<8x8x8xf32>
    %295 = arith.addf %294, %108 : vector<8x8x8xf32>
    %296 = arith.mulf %295, %295 : vector<8x8x8xf32>
    %297 = arith.mulf %296, %283 : vector<8x8x8xf32>
    %c5 = arith.constant 5 : index
    %c0_88 = arith.constant 0 : index
    %c0_89 = arith.constant 0 : index
    %298 = vector.load %arg8[%c5, %c0_88, %c0_89] : memref<6x8x8xf32, #tpu.memory_space<vmem>>, vector<1x8x8xf32>
    %299 = vector.shape_cast %298 : vector<1x8x8xf32> to vector<8x8xf32>
    %cst_90 = arith.constant dense<0.000000e+00> : vector<8x8xf32>
    %300 = vector.multi_reduction <add>, %297, %cst_90 [1] : vector<8x8x8xf32> to vector<8x8xf32>
    %301 = arith.addf %299, %300 : vector<8x8xf32>
    %c5_91 = arith.constant 5 : index
    %c0_92 = arith.constant 0 : index
    %c0_93 = arith.constant 0 : index
    %302 = vector.load %arg8[%c5_91, %c0_92, %c0_93] : memref<6x8x8xf32, #tpu.memory_space<vmem>>, vector<1x8x8xf32>
    %303 = vector.shape_cast %302 : vector<1x8x8xf32> to vector<8x8xf32>
    %304 = vector.shape_cast %301 : vector<8x8xf32> to vector<1x8x8xf32>
    tpu.vector_store %arg8[%c5_91, %c0_92, %c0_93], %304 {strides = array<i32>} : memref<6x8x8xf32, #tpu.memory_space<vmem>>, vector<1x8x8xf32>,
    %c0_i32_94 = arith.constant 0 : i32
    %305 = arith.cmpi eq, %arg2, %c0_i32_94 : i32
    %306 = arith.extui %305 : i1 to i32
    %c0_i32_95 = arith.constant 0 : i32
    %307 = arith.cmpi ne, %306, %c0_i32_95 : i32
    scf.if %307 {
      %cst_96 = arith.constant 1.000000e+00 : f32
      %308 = vector.broadcast %cst_96 : f32 to vector<8x1xf32>
      %cst_97 = arith.constant 3.000000e+00 : f32
      %309 = vector.broadcast %cst_97 : f32 to vector<8x8xf32>
      %310 = arith.cmpf olt, %28, %309 : vector<8x8xf32>
      %cst_98 = arith.constant 1.04719758 : f32
      %311 = vector.broadcast %cst_98 : f32 to vector<8x8xf32>
      %312 = arith.mulf %311, %28 : vector<8x8xf32>
      %313 = math.cos %312 : vector<8x8xf32>
      %cst_99 = arith.constant 1.000000e+00 : f32
      %314 = vector.broadcast %cst_99 : f32 to vector<8x8xf32>
      %315 = arith.addf %313, %314 : vector<8x8xf32>
      %cst_100 = arith.constant 5.000000e-01 : f32
      %316 = vector.broadcast %cst_100 : f32 to vector<8x8xf32>
      %317 = arith.mulf %316, %315 : vector<8x8xf32>
      %cst_101 = arith.constant 0.000000e+00 : f32
      %318 = vector.broadcast %cst_101 : f32 to vector<8x8xf32>
      %319 = arith.select %310, %317, %318 : vector<8x8xi1>, vector<8x8xf32>
      %320 = arith.mulf %319, %35 : vector<8x8xf32>
      %cst_102 = arith.constant dense<0.000000e+00> : vector<8x1xf32>
      %321 = tpu.matmul %320, %308, %cst_102 {dimension_numbers = #tpu.dot_dimension_numbers<[1], [0], [0], [1], [0, 0, 1, 1], [], []>} : vector<8x8xf32>, vector<8x1xf32>, vector<8x1xf32> -> vector<8x1xf32>
      %cst_103 = arith.constant 4.000000e+00 : f32
      %322 = vector.broadcast %cst_103 : f32 to vector<8x8xf32>
      %323 = arith.cmpf olt, %28, %322 : vector<8x8xf32>
      %cst_104 = arith.constant 0.785398185 : f32
      %324 = vector.broadcast %cst_104 : f32 to vector<8x8xf32>
      %325 = arith.mulf %324, %28 : vector<8x8xf32>
      %326 = math.cos %325 : vector<8x8xf32>
      %cst_105 = arith.constant 1.000000e+00 : f32
      %327 = vector.broadcast %cst_105 : f32 to vector<8x8xf32>
      %328 = arith.addf %326, %327 : vector<8x8xf32>
      %cst_106 = arith.constant 5.000000e-01 : f32
      %329 = vector.broadcast %cst_106 : f32 to vector<8x8xf32>
      %330 = arith.mulf %329, %328 : vector<8x8xf32>
      %cst_107 = arith.constant 0.000000e+00 : f32
      %331 = vector.broadcast %cst_107 : f32 to vector<8x8xf32>
      %332 = arith.select %323, %330, %331 : vector<8x8xi1>, vector<8x8xf32>
      %333 = arith.mulf %332, %35 : vector<8x8xf32>
      %cst_108 = arith.constant dense<0.000000e+00> : vector<8x1xf32>
      %334 = tpu.matmul %333, %308, %cst_108 {dimension_numbers = #tpu.dot_dimension_numbers<[1], [0], [0], [1], [0, 0, 1, 1], [], []>} : vector<8x8xf32>, vector<8x1xf32>, vector<8x1xf32> -> vector<8x1xf32>
      %cst_109 = arith.constant 0.000000e+00 : f32
      %335 = vector.broadcast %cst_109 : f32 to vector<8x8xf32>
      %336 = arith.subf %28, %335 : vector<8x8xf32>
      %337 = arith.mulf %336, %336 : vector<8x8xf32>
      %cst_110 = arith.constant -5.000000e-01 : f32
      %338 = vector.broadcast %cst_110 : f32 to vector<8x8xf32>
      %339 = arith.mulf %338, %337 : vector<8x8xf32>
      %340 = math.exp %339 : vector<8x8xf32>
      %341 = arith.mulf %333, %340 : vector<8x8xf32>
      %cst_111 = arith.constant dense<0.000000e+00> : vector<8x1xf32>
      %342 = tpu.matmul %341, %308, %cst_111 {dimension_numbers = #tpu.dot_dimension_numbers<[1], [0], [0], [1], [0, 0, 1, 1], [], []>} : vector<8x8xf32>, vector<8x1xf32>, vector<8x1xf32> -> vector<8x1xf32>
      %cst_112 = arith.constant 0.000000e+00 : f32
      %343 = vector.broadcast %cst_112 : f32 to vector<8x8xf32>
      %344 = arith.subf %28, %343 : vector<8x8xf32>
      %345 = arith.mulf %344, %344 : vector<8x8xf32>
      %cst_113 = arith.constant -1.000000e+00 : f32
      %346 = vector.broadcast %cst_113 : f32 to vector<8x8xf32>
      %347 = arith.mulf %346, %345 : vector<8x8xf32>
      %348 = math.exp %347 : vector<8x8xf32>
      %349 = arith.mulf %333, %348 : vector<8x8xf32>
      %cst_114 = arith.constant dense<0.000000e+00> : vector<8x1xf32>
      %350 = tpu.matmul %349, %308, %cst_114 {dimension_numbers = #tpu.dot_dimension_numbers<[1], [0], [0], [1], [0, 0, 1, 1], [], []>} : vector<8x8xf32>, vector<8x1xf32>, vector<8x1xf32> -> vector<8x1xf32>
      %cst_115 = arith.constant 1.000000e+00 : f32
      %351 = vector.broadcast %cst_115 : f32 to vector<8x8xf32>
      %352 = arith.subf %28, %351 : vector<8x8xf32>
      %353 = arith.mulf %352, %352 : vector<8x8xf32>
      %cst_116 = arith.constant -5.000000e-01 : f32
      %354 = vector.broadcast %cst_116 : f32 to vector<8x8xf32>
      %355 = arith.mulf %354, %353 : vector<8x8xf32>
      %356 = math.exp %355 : vector<8x8xf32>
      %357 = arith.mulf %333, %356 : vector<8x8xf32>
      %cst_117 = arith.constant dense<0.000000e+00> : vector<8x1xf32>
      %358 = tpu.matmul %357, %308, %cst_117 {dimension_numbers = #tpu.dot_dimension_numbers<[1], [0], [0], [1], [0, 0, 1, 1], [], []>} : vector<8x8xf32>, vector<8x1xf32>, vector<8x1xf32> -> vector<8x1xf32>
      %cst_118 = arith.constant 1.000000e+00 : f32
      %359 = vector.broadcast %cst_118 : f32 to vector<8x8xf32>
      %360 = arith.subf %28, %359 : vector<8x8xf32>
      %361 = arith.mulf %360, %360 : vector<8x8xf32>
      %cst_119 = arith.constant -1.000000e+00 : f32
      %362 = vector.broadcast %cst_119 : f32 to vector<8x8xf32>
      %363 = arith.mulf %362, %361 : vector<8x8xf32>
      %364 = math.exp %363 : vector<8x8xf32>
      %365 = arith.mulf %333, %364 : vector<8x8xf32>
      %cst_120 = arith.constant dense<0.000000e+00> : vector<8x1xf32>
      %366 = tpu.matmul %365, %308, %cst_120 {dimension_numbers = #tpu.dot_dimension_numbers<[1], [0], [0], [1], [0, 0, 1, 1], [], []>} : vector<8x8xf32>, vector<8x1xf32>, vector<8x1xf32> -> vector<8x1xf32>
      %cst_121 = arith.constant 1.000000e+00 : f32
      %367 = vector.broadcast %cst_121 : f32 to vector<8x8xf32>
      %368 = arith.mulf %367, %28 : vector<8x8xf32>
      %369 = math.cos %368 : vector<8x8xf32>
      %370 = arith.mulf %333, %369 : vector<8x8xf32>
      %cst_122 = arith.constant dense<0.000000e+00> : vector<8x1xf32>
      %371 = tpu.matmul %370, %308, %cst_122 {dimension_numbers = #tpu.dot_dimension_numbers<[1], [0], [0], [1], [0, 0, 1, 1], [], []>} : vector<8x8xf32>, vector<8x1xf32>, vector<8x1xf32> -> vector<8x1xf32>
      %cst_123 = arith.constant 2.000000e+00 : f32
      %372 = vector.broadcast %cst_123 : f32 to vector<8x8xf32>
      %373 = arith.mulf %372, %28 : vector<8x8xf32>
      %374 = math.cos %373 : vector<8x8xf32>
      %375 = arith.mulf %333, %374 : vector<8x8xf32>
      %cst_124 = arith.constant dense<0.000000e+00> : vector<8x1xf32>
      %376 = tpu.matmul %375, %308, %cst_124 {dimension_numbers = #tpu.dot_dimension_numbers<[1], [0], [0], [1], [0, 0, 1, 1], [], []>} : vector<8x8xf32>, vector<8x1xf32>, vector<8x1xf32> -> vector<8x1xf32>
      %cst_125 = arith.constant 1.000000e+00 : f32
      %377 = vector.broadcast %cst_125 : f32 to vector<8x1xf32>
      %c0_126 = arith.constant 0 : index
      %c0_127 = arith.constant 0 : index
      %c0_128 = arith.constant 0 : index
      %378 = vector.load %arg8[%c0_126, %c0_127, %c0_128] : memref<6x8x8xf32, #tpu.memory_space<vmem>>, vector<1x8x8xf32>
      %379 = vector.shape_cast %378 : vector<1x8x8xf32> to vector<8x8xf32>
      %cst_129 = arith.constant dense<0.000000e+00> : vector<8x1xf32>
      %380 = tpu.matmul %379, %377, %cst_129 {dimension_numbers = #tpu.dot_dimension_numbers<[1], [0], [0], [1], [0, 0, 1, 1], [], []>} : vector<8x8xf32>, vector<8x1xf32>, vector<8x1xf32> -> vector<8x1xf32>
      %cst_130 = arith.constant 1.000000e+00 : f32
      %381 = vector.broadcast %cst_130 : f32 to vector<8x1xf32>
      %382 = arith.mulf %381, %380 : vector<8x1xf32>
      %c1_131 = arith.constant 1 : index
      %c0_132 = arith.constant 0 : index
      %c0_133 = arith.constant 0 : index
      %383 = vector.load %arg8[%c1_131, %c0_132, %c0_133] : memref<6x8x8xf32, #tpu.memory_space<vmem>>, vector<1x8x8xf32>
      %384 = vector.shape_cast %383 : vector<1x8x8xf32> to vector<8x8xf32>
      %cst_134 = arith.constant dense<0.000000e+00> : vector<8x1xf32>
      %385 = tpu.matmul %384, %377, %cst_134 {dimension_numbers = #tpu.dot_dimension_numbers<[1], [0], [0], [1], [0, 0, 1, 1], [], []>} : vector<8x8xf32>, vector<8x1xf32>, vector<8x1xf32> -> vector<8x1xf32>
      %cst_135 = arith.constant 1.000000e+00 : f32
      %386 = vector.broadcast %cst_135 : f32 to vector<8x1xf32>
      %387 = arith.mulf %386, %385 : vector<8x1xf32>
      %c2_136 = arith.constant 2 : index
      %c0_137 = arith.constant 0 : index
      %c0_138 = arith.constant 0 : index
      %388 = vector.load %arg8[%c2_136, %c0_137, %c0_138] : memref<6x8x8xf32, #tpu.memory_space<vmem>>, vector<1x8x8xf32>
      %389 = vector.shape_cast %388 : vector<1x8x8xf32> to vector<8x8xf32>
      %cst_139 = arith.constant dense<0.000000e+00> : vector<8x1xf32>
      %390 = tpu.matmul %389, %377, %cst_139 {dimension_numbers = #tpu.dot_dimension_numbers<[1], [0], [0], [1], [0, 0, 1, 1], [], []>} : vector<8x8xf32>, vector<8x1xf32>, vector<8x1xf32> -> vector<8x1xf32>
      %cst_140 = arith.constant 5.000000e-01 : f32
      %391 = vector.broadcast %cst_140 : f32 to vector<8x1xf32>
      %392 = arith.mulf %391, %390 : vector<8x1xf32>
      %c3_141 = arith.constant 3 : index
      %c0_142 = arith.constant 0 : index
      %c0_143 = arith.constant 0 : index
      %393 = vector.load %arg8[%c3_141, %c0_142, %c0_143] : memref<6x8x8xf32, #tpu.memory_space<vmem>>, vector<1x8x8xf32>
      %394 = vector.shape_cast %393 : vector<1x8x8xf32> to vector<8x8xf32>
      %cst_144 = arith.constant dense<0.000000e+00> : vector<8x1xf32>
      %395 = tpu.matmul %394, %377, %cst_144 {dimension_numbers = #tpu.dot_dimension_numbers<[1], [0], [0], [1], [0, 0, 1, 1], [], []>} : vector<8x8xf32>, vector<8x1xf32>, vector<8x1xf32> -> vector<8x1xf32>
      %cst_145 = arith.constant 5.000000e-01 : f32
      %396 = vector.broadcast %cst_145 : f32 to vector<8x1xf32>
      %397 = arith.mulf %396, %395 : vector<8x1xf32>
      %c4_146 = arith.constant 4 : index
      %c0_147 = arith.constant 0 : index
      %c0_148 = arith.constant 0 : index
      %398 = vector.load %arg8[%c4_146, %c0_147, %c0_148] : memref<6x8x8xf32, #tpu.memory_space<vmem>>, vector<1x8x8xf32>
      %399 = vector.shape_cast %398 : vector<1x8x8xf32> to vector<8x8xf32>
      %cst_149 = arith.constant dense<0.000000e+00> : vector<8x1xf32>
      %400 = tpu.matmul %399, %377, %cst_149 {dimension_numbers = #tpu.dot_dimension_numbers<[1], [0], [0], [1], [0, 0, 1, 1], [], []>} : vector<8x8xf32>, vector<8x1xf32>, vector<8x1xf32> -> vector<8x1xf32>
      %cst_150 = arith.constant 1.000000e+00 : f32
      %401 = vector.broadcast %cst_150 : f32 to vector<8x1xf32>
      %402 = arith.mulf %401, %400 : vector<8x1xf32>
      %c5_151 = arith.constant 5 : index
      %c0_152 = arith.constant 0 : index
      %c0_153 = arith.constant 0 : index
      %403 = vector.load %arg8[%c5_151, %c0_152, %c0_153] : memref<6x8x8xf32, #tpu.memory_space<vmem>>, vector<1x8x8xf32>
      %404 = vector.shape_cast %403 : vector<1x8x8xf32> to vector<8x8xf32>
      %cst_154 = arith.constant dense<0.000000e+00> : vector<8x1xf32>
      %405 = tpu.matmul %404, %377, %cst_154 {dimension_numbers = #tpu.dot_dimension_numbers<[1], [0], [0], [1], [0, 0, 1, 1], [], []>} : vector<8x8xf32>, vector<8x1xf32>, vector<8x1xf32> -> vector<8x1xf32>
      %cst_155 = arith.constant 5.000000e-01 : f32
      %406 = vector.broadcast %cst_155 : f32 to vector<8x1xf32>
      %407 = arith.mulf %406, %405 : vector<8x1xf32>
      %408 = tpu.concatenate %321, %334, %342, %350, %358, %366, %371, %376, %382, %387, %392, %397, %402, %407 in 1 : vector<8x1xf32>, vector<8x1xf32>, vector<8x1xf32>, vector<8x1xf32>, vector<8x1xf32>, vector<8x1xf32>, vector<8x1xf32>, vector<8x1xf32>, vector<8x1xf32>, vector<8x1xf32>, vector<8x1xf32>, vector<8x1xf32>, vector<8x1xf32>, vector<8x1xf32> -> vector<8x14xf32>
      %cst_156 = arith.constant 0.000000e+00 : f32
      %409 = vector.broadcast %cst_156 : f32 to vector<8x114xf32>
      %410 = tpu.concatenate %408, %409 in 1 : vector<8x14xf32>, vector<8x114xf32> -> vector<8x128xf32>
      %c0_157 = arith.constant 0 : index
      %c0_158 = arith.constant 0 : index
      %c0_159 = arith.constant 0 : index
      %411 = vector.load %arg7[%c0_157, %c0_158, %c0_159] : memref<1x8x128xf32, #tpu.memory_space<vmem>>, vector<1x8x128xf32>
      %412 = vector.shape_cast %411 : vector<1x8x128xf32> to vector<8x128xf32>
      %413 = vector.shape_cast %410 : vector<8x128xf32> to vector<1x8x128xf32>
      tpu.vector_store %arg7[%c0_157, %c0_158, %c0_159], %413 {strides = array<i32>} : memref<1x8x128xf32, #tpu.memory_space<vmem>>, vector<1x8x128xf32>,
    } else {
    }
    return
  }
  func.func @transform_0(%arg0: i32, %arg1: i32, %arg2: i32) -> (i32, i32, i32) {
    %c0_i32 = arith.constant 0 : i32
    %c0_i32_0 = arith.constant 0 : i32
    %c0_i32_1 = arith.constant 0 : i32
    return %arg0, %c0_i32, %c0_i32_0 : i32, i32, i32
  }
  func.func @transform_1(%arg0: i32, %arg1: i32, %arg2: i32) -> (i32, i32, i32) {
    %c0_i32 = arith.constant 0 : i32
    %c0_i32_0 = arith.constant 0 : i32
    return %arg0, %arg1, %c0_i32 : i32, i32, i32
  }
  func.func @transform_2(%arg0: i32, %arg1: i32, %arg2: i32) -> (i32, i32, i32) {
    %c0_i32 = arith.constant 0 : i32
    %c0_i32_0 = arith.constant 0 : i32
    %c0_i32_1 = arith.constant 0 : i32
    return %arg0, %c0_i32, %c0_i32_0 : i32, i32, i32
  }
  func.func @transform_3(%arg0: i32, %arg1: i32, %arg2: i32) -> (i32, i32, i32) {
    %c0_i32 = arith.constant 0 : i32
    %c0_i32_0 = arith.constant 0 : i32
    return %arg0, %c0_i32, %arg2 : i32, i32, i32
  }
  func.func @transform_4(%arg0: i32, %arg1: i32, %arg2: i32) -> (i32, i32, i32) {
    %c0_i32 = arith.constant 0 : i32
    %c0_i32_0 = arith.constant 0 : i32
    return %arg0, %arg1, %c0_i32 : i32, i32, i32
  }
}

</mosaic_0001>

<bundles_post_ra>
// kernel: tpu_custom_call.1
= control target key start
LH: loop header
LB: loop body
LE: loop exit
PB: predicated region body
PF: predicated region fallthrough
CT: control target
= control target key end

     0   :  { %9 = vsyncpa [#allocation4], 0  ;;  %s6321_s0 = inlined_call_operand.vmem [shape: f32[2,8,3], index: 0, kind: input, shape index: {}]   ;;  %s6322_s1 = inlined_call_operand.vmem [shape: f32[2,8,3], index: 1, kind: input, shape index: {}]   ;;  %s6323_s2 = inlined_call_operand.vmem [shape: f32[2,3,8], index: 2, kind: input, shape index: {}]   ;;  %s6324_s3 = inlined_call_operand.vmem [shape: f32[2,3,8], index: 3, kind: input, shape index: {}]   ;;  %s6325_s4 = inlined_call_operand.hbm [shape: f32[2,8,128], index: 4, kind: output, shape index: {}]  }
   0x1   :  { %11 = vsyncpa [#allocation4 + $0x1], 0  ;;  %s4558_s15 = smov 0   ;;  %s4560_s16 = smov 0  }
   0x2   :  { %s4562_s17 = smov 0   ;;  %s4564_s18 = smov 0  }
   0x3   :  { %s4566_s19 = smov 0   ;;  %s4568_s20 = smov 0  }
   0x4 LB: > { %s4081_s21 = sadd.s32 4294967295, %s4504_s20   ;;  %s4082_s22 = sadd.s32 4294967294, %s4504_s20   ;;  %s4504_s20 = sphi %s4568_s20, %s17_s20   ;;  %s4500_s19 = sphi %s4566_s19, %s6497_s19   ;;  %s4496_s18 = sphi %s4564_s18, %s6496_s18   ;;  %s4492_s17 = sphi %s4562_s17, %s6495_s17   ;;  %s4488_s16 = sphi %s4560_s16, %s6494_s16   ;;  %s4484_s15 = sphi %s4558_s15, %s6493_s15  }
   0x5   : > { %s36_s23 = sadd.s32 1, %s4500_s19  ;;  %s153_s24 = sadd.s32 1, %s4492_s17 }
   0x6   : > { %p38_p0 = scmp.ge.s32.totalorder %s36_s23, 2  ;;  %p163_p1 = scmp.ne.s32.totalorder %s4492_s17, %s4488_s16 }
   0x7   : > { %p164_p2 = scmp.eq.s32.totalorder %s4081_s21, 1  ;;  %p169_p3 = scmp.ne.s32.totalorder %s4488_s16, %s4484_s15 }
   0x8   : > { %s6499_s23 = smov (%p38_p0, %s36_s23), 0  ;;  %p170_p5 = scmp.eq.s32.totalorder %s4082_s22, 1 }
   0x9   : > { %p4598_p4 = por %p164_p2, %p163_p1  ;;  %s148_s26 = ssub.s32 %s4500_s19, %s6499_s23 }
   0xa   : > { %p4085_p6 = scmp.ge.s32.totalorder %s4504_s20, 1  ;;  %p151_p7 = scmp.eq.s32.totalorder %s148_s26, 0 }
   0xb   : > { %p4605_p8 = por %p170_p5, %p169_p3  ;;  %p222_p9 = scmp.lt.s32.totalorder %s4504_s20, 3 }
   0xc   : > { %s4611_s28 = scalar_select %p151_p7, %s4492_s17, %s153_s24  }
   0xd   : > { %p223_p10 = pnand %p4085_p6, %p222_p9 }
   0xf   : > { %226 = sbr.rel (%p223_p10) target bundleno = 953 (0x3b9), region = 36 }
  0x16   : > { %p265_p11 = scmp.lt.s32.totalorder %s4496_s18, 1  ;;  %v4506_v0 = vmov 0   ;;  %v4507_v1 = vmov 2   ;;  %v4508_v4 = vmov 1   ;;  %v297_v5 = vlaneseq  ;;  %s4519_s26 = smov 1  }
  0x17   : > { %4356 = vset.pattern.permute.xlu0 %v4506_v0  ;;  %4358 = vset.pattern.permute.xlu1 %v4507_v1  ;;  %v6327_v8 = vmov 0.0   ;;  %v4510_v9 = vmov 1966171168   ;;  %v6329_v43 = vmov 1.0   ;;  %vm4512_vm1 = vmmov 0   ;;  %s4522_s5 = smov 2  }
  0x18   : > { %s266_s29 = scalar_select %p265_p11, %s4496_s18, 1  ;;  %v4621_v6 = vshrl.u32 %v297_v5, 7  ;;  %v4623_v7 = vand.u32 127, %v297_v5  ;;  %4181 = vmatprep.subr.mxu0 %v6327_v8  ;;  %4186 = vmatprep.subr.mxu1 %v6327_v8  ;;  %v452_v10 = vunpack.c.l.s4 %v4510_v9  ;;  %vm345_vm2 = vcmask 64512  }
  0x19   : > { %4182 = vmatpush3.msra.mxu0 %v6329_v43  ;;  %4187 = vmatpush3.msra.mxu1 %v6329_v43  ;;  %346 = vst.msk [vmem:[#allocation2] sm:$0xff] %vm345_vm2, %v6327_v8  ;;  %347 = vst.msk [vmem:[#allocation2 + $0x8] sm:$0xff] %vm345_vm2, %v6327_v8  ;;  %s4523_s6 = smov 4   ;;  %s4525_s8 = smov 7  }
  0x1a   : > { %s4087_s30 = sshll.u32 %s266_s29, 3  ;;  %vm338_vm0 = vcmp.ne.s32.totalorder %v4621_v6, %v4623_v7  ;;  %s4089_s11 = sshll.u32 %s266_s29, 2  ;;  %v4636_v11 = vsub.s32 0, %v4621_v6  ;;  %v453_v14 = vunpack.c.0.s8 %v452_v10  ;;  %v4639_v15 = vsub.s32 2, %v4621_v6  ;;  %4191 = vmatprep.subr.mxu0 %v6327_v8  ;;  %4196 = vmatprep.subr.mxu1 %v6327_v8  ;;  %348 = vst.msk [vmem:[#allocation2 + $0x10] sm:$0xff] %vm345_vm2, %v6327_v8  ;;  %349 = vst.msk [vmem:[#allocation2 + $0x18] sm:$0xff] %vm345_vm2, %v6327_v8 }
  0x1b   : > { %s275_s7 = scalar_lea.vmem %s6322_s1, %s4087_s30  ;;  %s268_s10 = scalar_lea.vmem %s6321_s0, %s4087_s30  ;;  %v4645_v19 = vsub.s32 1, %v4621_v6  ;;  %v4698_v54 = vsub.s32 3, %v4621_v6  ;;  %4183 = vmatprep.mubr.msk.f32.mxu0 %vm4512_vm1, %v6327_v8  ;;  %4188 = vmatprep.mubr.msk.f32.mxu1 %vm4512_vm1, %v6327_v8  ;;  %350 = vst.msk [vmem:[#allocation2 + $0x20] sm:$0xff] %vm345_vm2, %v6327_v8  ;;  %351 = vst.msk [vmem:[#allocation2 + $0x28] sm:$0xff] %vm345_vm2, %v6327_v8 }
  0x1c   : > { %v289_v2 = vld [vmem:[%s275_s7] sm:$0xff]  ;;  %s279_s14 = scalar_lea.vmem %s6323_s2, %s4089_s11  ;;  %s286_s24 = scalar_lea.vmem %s6324_s3, %s4089_s11  ;;  %v4648_v20 = vsub.s32 %v453_v14, %v4621_v6 }
  0x1d   : > { %294 = vperm.xlu0 %4356, %v289_v2   ;;  %312 = vperm.xlu1 %4358, %v289_v2   ;;  %v1049_v3 = vld [vmem:[%s268_s10] sm:$0xff]  ;;  %s4520_s29 = smov 3   ;;  %s4521_s30 = smov 5  }
  0x1e   : > { %v290_v12 = vld [vmem:[%s279_s14] sm:$0x7]  ;;  %6384 = vst [vmem:[#allocation6_spill] sm:$0xff] %v4648_v20  ;;  %s4524_s7 = smov 6   ;;  %s4526_s9 = smov 8  }
  0x1f   : > { %v291_v13 = vld [vmem:[%s286_s24] sm:$0x7]  ;;  %v300_v16 = vrot.slane %v290_v12, %v4636_v11  ;;  %v318_v21 = vrot.slane %v290_v12, %v4639_v15  ;;  %v309_v27 = vrot.slane %v290_v12, %v4645_v19  ;;  %s4527_s10 = smov 9   ;;  %s4528_s11 = smov 11  }
  0x20   : > { %v355_v17 = vrot.slane %v291_v13, %v4636_v11  ;;  %v365_v18 = vrot.slane %v291_v13, %v4639_v15  ;;  %v360_v28 = vrot.slane %v291_v13, %v4645_v19  ;;  %s4529_s12 = smov 10   ;;  %s4530_s13 = smov 12  }
  0x21   : > { %4357 = vset.pattern.permute.xlu0 %v4508_v4  ;;  %4359 = vset.pattern.permute.xlu1 %v4506_v0  ;;  %s4531_s14 = smov 13   ;;  %s262_s21 = sand.u32 1, %s4488_s16  }
  0x22   : > { %303 = vperm.xlu0 %4357, %v289_v2   ;;  %1052 = vperm.xlu1 %4359, %v1049_v3   ;;  %s4086_s22 = sshll.u32 %s262_s21, 3  ;;  %s4150_s24 = sshll.u32 %s4496_s18, 7 }
  0x23   : > { %s4532_s18 = smov [#allocation3]  }
  0x26   : > { %4360 = vset.pattern.permute.xlu1 %v4508_v4  ;;  %4361 = vset.pattern.permute.xlu0 %v4507_v1 }
  0x27   : > { %1057 = vperm.xlu1 %4360, %v1049_v3   ;;  %1062 = vperm.xlu0 %4361, %v1049_v3  }
  0x9c   : > { %v295_v22 = vpop.permute.xlu0 %294  ;;  %v313_v23 = vpop.permute.xlu1 %312 }
  0x9d   : > { %v4651_v24 = vsub.f32 %v295_v22, %v300_v16  ;;  %v4653_v25 = vsub.f32 %v295_v22, %v355_v17  ;;  %v366_v26 = vsub.f32 %v313_v23, %v365_v18  ;;  %v4661_v30 = vsub.f32 %v313_v23, %v318_v21 }
  0x9e   : > { %v4748_v16 = vsub.s32 4, %v4621_v6 }
  0x9f   : > { %v4659_v29 = vrot.slane %v4653_v25, %v4648_v20  ;;  %v396_v31 = vrot.slane %v4651_v24, %v4636_v11  ;;  %v403_v32 = vrot.slane %v4651_v24, %v4645_v19  ;;  %v766_v34 = vcombine.high %v366_v26, %v366_v26 }
  0xa0   : > { %v4668_v35 = vrot.slane %v366_v26, %v4648_v20  ;;  %v320_v39 = vmul.f32 %v4651_v24, %v4651_v24  ;;  %v367_v40 = vmul.f32 %v4653_v25, %v4653_v25  ;;  %v323_v41 = vmul.f32 %v4661_v30, %v4661_v30 }
  0xa1   : > { %v304_v33 = vpop.permute.xlu0 %303  ;;  %v1053_v36 = vpop.permute.xlu1 %1052  ;;  %398 = vbcast.lane.b32.xlu0 %v396_v31, 256  ;;  %405 = vbcast.lane.b32.xlu1 %v403_v32, 256  ;;  %v4681_v42 = vrot.slane %v766_v34, %v4648_v20  ;;  %v370_v47 = vmul.f32 %v366_v26, %v366_v26  ;;  %v410_v61 = vrot.slane %v4651_v24, %v4639_v15 }
  0xa2   : > { %v4670_v37 = vsub.f32 %v304_v33, %v309_v27  ;;  %v4672_v38 = vsub.f32 %v304_v33, %v360_v28  ;;  %v1055_v55 = vsub.f32 %v1053_v36, %v355_v17  ;;  %v417_v1 = vrot.slane %v4651_v24, %v4698_v54 }
  0xa3   : > { %6385 = vst [vmem:[#allocation7_spill] sm:$0xff] %v4681_v42  ;;  %v4731_v4 = vrot.slane %v4659_v29, %v4648_v20  ;;  %v465_v5 = vcombine.high %v4659_v29, %v4659_v29  ;;  %v4740_v12 = vrot.slane %v4668_v35, %v4648_v20  ;;  %v712_v22 = vrot.slane %v4661_v30, %v4636_v11 }
  0xa4   : > { %v321_v44 = vmul.f32 %v4670_v37, %v4670_v37  ;;  %v368_v45 = vmul.f32 %v4672_v38, %v4672_v38  ;;  %v611_v46 = vrot.slane %v4672_v38, %v4648_v20  ;;  %v550_v48 = vrot.slane %v4670_v37, %v4636_v11 }
  0xa5   : > { %v557_v49 = vrot.slane %v4670_v37, %v4645_v19  ;;  %v564_v60 = vrot.slane %v4670_v37, %v4639_v15  ;;  %v1066_v62 = vmul.f32 %v1055_v55, %v1055_v55  ;;  %v571_v2 = vrot.slane %v4670_v37, %v4698_v54 }
  0xa6   : > { %v322_v50 = vadd.f32 %v321_v44, %v320_v39  ;;  %v369_v51 = vadd.f32 %v368_v45, %v367_v40  ;;  %v1058_v52 = vpop.permute.xlu1 %1057  ;;  %v1063_v53 = vpop.permute.xlu0 %1062  ;;  %552 = vbcast.lane.b32.xlu0 %v550_v48, 256  ;;  %v4736_v9 = vrot.slane %v611_v46, %v4648_v20  ;;  %v619_v10 = vcombine.high %v611_v46, %v611_v46 }
  0xa7   : > { %559 = vbcast.lane.b32.xlu1 %v557_v49, 256  ;;  %v1060_v58 = vsub.f32 %v1058_v52, %v360_v28  ;;  %v1065_v59 = vsub.f32 %v1063_v53, %v365_v18  ;;  %v4745_v14 = vrot.slane %v465_v5, %v4648_v20  ;;  %v781_v18 = vcombine.high %v4668_v35, %v4668_v35 }
  0xa8   : > { %v4700_v56 = vadd.f32 %v323_v41, %v322_v50  ;;  %v4702_v57 = vadd.f32 %v370_v47, %v369_v51  ;;  %v4751_v17 = vrot.slane %v619_v10, %v4648_v20  ;;  %v604_v21 = vcombine.high %v4672_v38, %v4672_v38 }
  0xa9   : > { %v1067_v63 = vmul.f32 %v1060_v58, %v1060_v58  ;;  %v1069_v0 = vmul.f32 %v1065_v59, %v1065_v59  ;;  %v719_v23 = vrot.slane %v4661_v30, %v4645_v19  ;;  %v450_v26 = vcombine.high %v4653_v25, %v4653_v25 }
  0xaa   : > { %6386 = vst [vmem:[#allocation8_spill] sm:$0xff] %v4702_v57  ;;  %4362 = vrsqrt.f32 %v4700_v56  ;;  %566 = vbcast.lane.b32.xlu0 %v564_v60, 256  ;;  %v4765_v28 = vrot.slane %v781_v18, %v4648_v20  ;;  %v578_v31 = vrot.slane %v4670_v37, %v4748_v16  ;;  %v424_v32 = vrot.slane %v4651_v24, %v4748_v16 }
  0xab   : > { %412 = vbcast.lane.b32.xlu1 %v410_v61, 256  ;;  %v1068_v3 = vadd.f32 %v1067_v63, %v1066_v62  ;;  %v4773_v33 = vrot.slane %v604_v21, %v4648_v20  ;;  %vm327_vm3 = vcmp.eq.f32.partialorder %v4700_v56, inf  ;;  %v330_v25 = vand.u32 2147483648, %v4700_v56 }
  0xac   : > { %v4778_v34 = vrot.slane %v450_v26, %v4648_v20  ;;  %vm329_vm4 = vcmp.eq.f32.partialorder %v4700_v56, 0.0  ;;  %v4783_v36 = vsub.s32 5, %v4621_v6  ;;  %v726_v44 = vrot.slane %v4661_v30, %v4639_v15 }
  0xad   : > { %v4742_v13 = vadd.f32 %v1069_v0, %v1068_v3  ;;  %v4787_v38 = vrot.slane %v4773_v33, %v4648_v20  ;;  %v4803_v46 = vsub.s32 6, %v4621_v6  ;;  %v4812_v52 = vsub.s32 7, %v4621_v6 }
  0xae   : > { %419 = vbcast.lane.b32.xlu0 %v417_v1, 256  ;;  %6388 = vst [vmem:[#allocation10_spill] sm:$0xff] %v4778_v34  ;;  %v4793_v40 = vrot.slane %v4778_v34, %v4648_v20  ;;  %v585_v41 = vrot.slane %v4670_v37, %v4783_v36  ;;  %v431_v55 = vrot.slane %v4651_v24, %v4783_v36  ;;  %v4828_v62 = vsel %vm338_vm0, 1.0, %v6327_v8 }
  0xaf   : > { %573 = vbcast.lane.b32.xlu1 %v571_v2, 256  ;;  %6387 = vst [vmem:[#allocation9_spill] sm:$0xff] %v4742_v13  ;;  %4364 = vrsqrt.f32 %v4742_v13  ;;  %6390 = vst [vmem:[#allocation12_spill] sm:$0xff] %v4803_v46  ;;  %vm1073_vm5 = vcmp.eq.f32.partialorder %v4742_v13, inf  ;;  %v1076_v50 = vand.u32 2147483648, %v4742_v13  ;;  %vm1075_vm6 = vcmp.eq.f32.partialorder %v4742_v13, 0.0 }
  0xb0   : > { %6391 = vst [vmem:[#allocation13_spill] sm:$0xff] %v4812_v52  ;;  %v592_v53 = vrot.slane %v4670_v37, %v4803_v46  ;;  %6392 = vst [vmem:[#allocation14_spill] sm:$0xff] %v4828_v62  ;;  %v599_v2 = vrot.slane %v4670_v37, %v4812_v52  ;;  %v733_v5 = vrot.slane %v4661_v30, %v4698_v54 }
  0xb1   : > { %v754_v10 = vrot.slane %v4661_v30, %v4803_v46  ;;  %v438_v6 = vrot.slane %v4651_v24, %v4803_v46  ;;  %v740_v26 = vrot.slane %v4661_v30, %v4748_v16 }
  0xb2   : > { %714 = vbcast.lane.b32.xlu0 %v712_v22, 256 }
  0xb3   : > { %721 = vbcast.lane.b32.xlu1 %v719_v23, 256  ;;  %v761_v23 = vrot.slane %v4661_v30, %v4812_v52 }
  0xb4   : > { %v4363_v27 = vpop.eup %4362 }
  0xb5   : > { %v326_v29 = vmul.f32 %v4363_v27, %v4700_v56 }
  0xb6   : > { %580 = vbcast.lane.b32.xlu0 %v578_v31, 256  ;;  %v445_v31 = vrot.slane %v4651_v24, %v4812_v52 }
  0xb7   : > { %v328_v35 = vsel %vm327_vm3, %v4700_v56, %v326_v29  ;;  %426 = vbcast.lane.b32.xlu1 %v424_v32, 256 }
  0xb8   : > { %v4789_v39 = vsel %vm329_vm4, %v330_v25, %v328_v35 }
  0xb9   : > { %6389 = vst [vmem:[#allocation11_spill] sm:$0xff] %v4789_v39  ;;  %v4800_v45 = vmul.f32 0.7853982, %v4789_v39  ;;  %v4365_v47 = vpop.eup %4364  ;;  %v4822_v61 = vmul.f32 1.0471976, %v4789_v39  ;;  %v1979_v35 = vrot.slane %v4789_v39, %v4639_v15 }
  0xba   : > { %587 = vbcast.lane.b32.xlu0 %v585_v41, 256  ;;  %v1072_v51 = vmul.f32 %v4365_v47, %v4742_v13  ;;  %v387_v21 = vmax.f32 %v4789_v39, 1e-12 }
  0xbb   : > { %728 = vbcast.lane.b32.xlu1 %v726_v44, 256  ;;  %v6331_v48 = vand.u32 2147483647, %v4800_v45  ;;  %v1083_v49 = vand.u32 2139095040, %v4800_v45  ;;  %v2510_v22 = vand.u32 2139095040, %v4822_v61 }
  0xbc   : > { %v1074_v60 = vsel %vm1073_vm5, %v4742_v13, %v1072_v51  ;;  %v4860_v44 = vmul.f32 -0.1, %v4700_v56  ;;  %4366 = vrcp.f32 %v387_v21 }
  0xbd   : > { %v1084_v58 = vshrl.u32 %v1083_v49, 23  ;;  %v1087_v59 = vand.u32 8388607, %v6331_v48  ;;  %v4830_v0 = vsel %vm1075_vm6, %v1076_v50, %v1074_v60  ;;  %v4866_v24 = vshrl.u32 %v2510_v22, 23 }
  0xbe   : > { %594 = vbcast.lane.b32.xlu0 %v592_v53, 256  ;;  %6393 = vst [vmem:[#allocation15_spill] sm:$0xff] %v4830_v0  ;;  %v4833_v1 = vmul.f32 0.7853982, %v4830_v0 }
  0xbf   : > { %433 = vbcast.lane.b32.xlu1 %v431_v55, 256  ;;  %v4102_v63 = vadd.s32 4294967169, %v1084_v58  ;;  %v1088_v7 = vor.u32 8388608, %v1087_v59  ;;  %v6338_v58 = vmov 683565275  }
  0xc0   : > { %6394 = vst [vmem:[#allocation16_spill] sm:$0xff] %v4833_v1  ;;  %v1301_v18 = vand.u32 2139095040, %v4833_v1  ;;  %v6326_v37 = vand.u32 2147483647, %v4833_v1  ;;  %v6334_v59 = vmov 2475754826  }
  0xc1   : > { %v1090_v3 = vadd.s32 1, %v4102_v63  ;;  %v4862_v49 = vshll.u32 %v1088_v7, 8  ;;  %v6332_v63 = vmov 2131351028  }
  0xc2   : > { %601 = vbcast.lane.b32.xlu0 %v599_v2, 256  ;;  %v1302_v29 = vshrl.u32 %v1301_v18, 23  ;;  %v4870_v55 = vand.u32 8388607, %v6326_v37 }
  0xc3   : > { %vm1091_vm7 = vcmp.gt.s32.totalorder %v1090_v3, 0  ;;  %735 = vbcast.lane.b32.xlu1 %v733_v5, 256 }
  0xc4   : > { %v1092_v27 = vsel %vm1091_vm7, %v1090_v3, 0  ;;  %v4110_v53 = vadd.s32 4294967169, %v1302_v29  ;;  %v6336_v3 = vmov 2102212464   ;;  %v6356_v29 = vmov 1326507024  }
  0xc5   : > { %v1094_v25 = vand.u32 31, %v1092_v27  ;;  %v1093_v47 = vshrl.u32 %v1092_v27, 5 }
  0xc6   : > { %756 = vbcast.lane.b32.xlu0 %v754_v10, 256  ;;  %v1308_v50 = vadd.s32 1, %v4110_v53 }
  0xc7   : > { %v1095_v51 = vsub.s32 32, %v1094_v25  ;;  %440 = vbcast.lane.b32.xlu1 %v438_v6, 256  ;;  %v1097_v56 = vshll.u32 %v6338_v58, %v1094_v25  ;;  %v1100_v60 = vshll.u32 %v6334_v59, %v1094_v25  ;;  %v1103_v2 = vshll.u32 %v6332_v63, %v1094_v25 }
  0xc8   : > { %v1106_v5 = vshll.u32 %v6336_v3, %v1094_v25  ;;  %v6340_v6 = vmov 920167782   ;;  %vm1112_vm8 = vcmp.lt.s32.totalorder %v1093_v47, 1  ;;  %vm1114_vm9 = vcmp.lt.s32.totalorder %v1093_v47, 3 }
  0xc9   : > { %v1098_v7 = vshrl.u32 %v6334_v59, %v1095_v51  ;;  %v1101_v18 = vshrl.u32 %v6332_v63, %v1095_v51  ;;  %v1104_v10 = vshrl.u32 %v6336_v3, %v1095_v51  ;;  %v1109_v21 = vshll.u32 %v6340_v6, %v1094_v25 }
  0xca   : > { %v1096_v22 = vshrl.u32 %v6338_v58, %v1095_v51  ;;  %v1107_v27 = vshrl.u32 %v6340_v6, %v1095_v51  ;;  %v1110_v37 = vshrl.u32 %v6356_v29, %v1095_v51  ;;  %763 = vbcast.lane.b32.xlu0 %v761_v23, 256  ;;  %vm1115_vm10 = vcmp.lt.s32.totalorder %v1093_v47, 4 }
  0xcb   : > { %v1099_v8 = vor.u32 %v1098_v7, %v1097_v56  ;;  %v1102_v43 = vor.u32 %v1101_v18, %v1100_v60  ;;  %v1105_v48 = vor.u32 %v1104_v10, %v1103_v2  ;;  %742 = vbcast.lane.b32.xlu1 %v740_v26, 256  ;;  %vm1309_vm11 = vcmp.gt.s32.totalorder %v1308_v50, 0  ;;  %v4367_v2 = vpop.eup %4366 }
  0xcc   : > { %v1108_v63 = vor.u32 %v1107_v27, %v1106_v5  ;;  %v1111_v59 = vor.u32 %v1110_v37, %v1109_v21  ;;  %vm1113_vm12 = vcmp.lt.s32.totalorder %v1093_v47, 2  ;;  %v1310_v60 = vsel %vm1309_vm11, %v1308_v50, 0 }
  0xcd   : > { %v1116_v3 = vsel %vm1112_vm8, %v1096_v22, %v1099_v8  ;;  %v1117_v25 = vsel %vm1115_vm10, %v1105_v48, 2102212464  ;;  %v1120_v32 = vsel %vm1112_vm8, %v1099_v8, %v1102_v43  ;;  %v1124_v58 = vsel %vm1112_vm8, %v1102_v43, %v1105_v48 }
  0xce   : > { %v1118_v41 = vsel %vm1114_vm9, %v1102_v43, %v1117_v25  ;;  %v1121_v6 = vsel %vm1115_vm10, %v1108_v63, 920167782  ;;  %v1125_v0 = vsel %vm1115_vm10, %v1111_v59, 1326507024  ;;  %1981 = vbcast.lane.b32.xlu0 %v1979_v35, 256  ;;  %v4883_v37 = vshrl.u32 %v1310_v60, 5 }
  0xcf   : > { %v1122_v51 = vsel %vm1114_vm9, %v1105_v48, %v1121_v6  ;;  %v1126_v56 = vsel %vm1114_vm9, %v1108_v63, %v1125_v0  ;;  %447 = vbcast.lane.b32.xlu1 %v445_v31, 256  ;;  %v1119_v23 = vsel %vm1113_vm12, %v1116_v3, %v1118_v41  ;;  %v1312_v48 = vand.u32 31, %v1310_v60 }
  0xd0   : > { %v1123_v26 = vsel %vm1113_vm12, %v1120_v32, %v1122_v51  ;;  %v1127_v53 = vsel %vm1113_vm12, %v1124_v58, %v1126_v56  ;;  %v1965_v0 = vrot.slane %v4789_v39, %v4636_v11  ;;  %v2007_v31 = vrot.slane %v4789_v39, %v4803_v46 }
  0xd1   : > { %v4886_v5 = vmul.u32.u64.low %v4862_v49, %v1127_v53  ;;  %v4887_v8 = vmul.u32.u64.high %v4862_v49, %v1127_v53, %v4886_v5  ;;  %v4890_v43 = vmul.u32.u64.low %v4862_v49, %v1123_v26  ;;  %v4891_v59 = vmul.u32.u64.high %v4862_v49, %v1123_v26, %v4890_v43 }
  0xd2   : > { %v1972_v32 = vrot.slane %v4789_v39, %v4645_v19  ;;  %v1135_v35 = vmul.u32 %v4862_v49, %v1119_v23  ;;  %v1306_v41 = vor.u32 8388608, %v4870_v55  ;;  %vm1330_vm13 = vcmp.lt.s32.totalorder %v4883_v37, 1 }
  0xd3   : > { %v6395_v47 = vrot.slane %v4789_v39, %v4748_v16  ;;  %v6396_v50 = vrot.slane %v4661_v30, %v4783_v36  ;;  %v4122_v58 = vadd.s32 4294967169, %v4866_v24  ;;  %v1313_v63 = vsub.s32 32, %v1312_v48 }
  0xd4   : > { %v6397_v3 = vmov 683565275   ;;  %v6398_v18 = vmov 2475754826   ;;  %v6399_v49 = vmov 2131351028   ;;  %vm1137_vm14 = vc.u32 %v4887_v8, %v4890_v43 }
  0xd5   : > { %1995 = vbcast.lane.b32.xlu0 %v6395_v47, 256  ;;  %749 = vbcast.lane.b32.xlu1 %v6396_v50, 256  ;;  %v1315_v7 = vshll.u32 %v6397_v3, %v1312_v48  ;;  %v1318_v10 = vshll.u32 %v6398_v18, %v1312_v48  ;;  %v1321_v6 = vshll.u32 %v6399_v49, %v1312_v48  ;;  %v1138_v55 = vadd.s32 1, %v4891_v59 }
  0xd6   : > { %v6400_v21 = vmov 2102212464   ;;  %vm1333_vm15 = vcmp.lt.s32.totalorder %v4883_v37, 4  ;;  %v1314_v30 = vshrl.u32 %v6397_v3, %v1313_v63  ;;  %v1316_v24 = vshrl.u32 %v6398_v18, %v1313_v63 }
  0xd7   : > { %v1324_v22 = vshll.u32 %v6400_v21, %v1312_v48  ;;  %v1319_v27 = vshrl.u32 %v6399_v49, %v1313_v63  ;;  %v1322_v25 = vshrl.u32 %v6400_v21, %v1313_v63  ;;  %v1139_v51 = vsel %vm1137_vm14, %v1138_v55, %v4891_v59 }
  0xd8   : > { %v6401_v56 = vmov 920167782   ;;  %v1328_v26 = vshrl.u32 %v6356_v29, %v1313_v63  ;;  %v6402_v53 = vrot.slane %v4789_v39, %v4783_v36  ;;  %v1140_v5 = vadd.s32 %v1139_v51, %v1135_v35 }
  0xd9   : > { %v1325_v60 = vshrl.u32 %v6401_v56, %v1313_v63  ;;  %v1327_v23 = vshll.u32 %v6401_v56, %v1312_v48  ;;  %v1317_v47 = vor.u32 %v1316_v24, %v1315_v7  ;;  %v1320_v50 = vor.u32 %v1319_v27, %v1318_v10  ;;  %1967 = vbcast.lane.b32.xlu1 %v1965_v0, 256 }
  0xda   : > { %2002 = vbcast.lane.b32.xlu0 %v6402_v53, 256  ;;  %v1323_v13 = vor.u32 %v1322_v25, %v1321_v6  ;;  %vm1332_vm0 = vcmp.lt.s32.totalorder %v4883_v37, 3  ;;  %v1346_v59 = vshll.u32 %v1306_v41, 8  ;;  %v1141_v55 = vadd.s32 536870912, %v1140_v5 }
  0xdb   : > { %v1326_v1 = vor.u32 %v1325_v60, %v1324_v22  ;;  %v1329_v42 = vor.u32 %v1328_v26, %v1327_v23  ;;  %vm1331_vm3 = vcmp.lt.s32.totalorder %v4883_v37, 2  ;;  %v1338_v63 = vsel %vm1330_vm13, %v1317_v47, %v1320_v50 }
  0xdc   : > { %v1335_v48 = vsel %vm1333_vm15, %v1323_v13, 2102212464  ;;  %v1334_v35 = vsel %vm1330_vm13, %v1314_v30, %v1317_v47  ;;  %v1342_v7 = vsel %vm1330_vm13, %v1320_v50, %v1323_v13  ;;  %v4943_v10 = vshrl.u32 %v1141_v55, 30 }
  0xdd   : > { %v1339_v0 = vsel %vm1333_vm15, %v1326_v1, 920167782  ;;  %v1343_v41 = vsel %vm1333_vm15, %v1329_v42, 1326507024  ;;  %v1336_v6 = vsel %vm1332_vm0, %v1320_v50, %v1335_v48  ;;  %1974 = vbcast.lane.b32.xlu1 %v1972_v32, 256  ;;  %v2014_v25 = vrot.slane %v4789_v39, %v4812_v52 }
  0xde   : > { %2009 = vbcast.lane.b32.xlu0 %v2007_v31, 256  ;;  %v1340_v22 = vsel %vm1332_vm0, %v1323_v13, %v1339_v0  ;;  %v1344_v24 = vsel %vm1332_vm0, %v1326_v1, %v1343_v41  ;;  %v4952_v51 = vmul.f32 %v4367_v2, %v4828_v62  ;;  %v1143_v42 = vshll.u32 %v4943_v10, 30 }
  0xdf   : > { %v1341_v27 = vsel %vm1331_vm3, %v1338_v63, %v1340_v22  ;;  %v1345_v30 = vsel %vm1331_vm3, %v1342_v7, %v1344_v24  ;;  %v1986_v13 = vrot.slane %v4789_v39, %v4698_v54  ;;  %v1337_v1 = vsel %vm1331_vm3, %v1334_v35, %v1336_v6 }
  0xe0   : > { %v4955_v31 = vmul.u32.u64.low %v1346_v59, %v1345_v30  ;;  %v4956_v60 = vmul.u32.u64.high %v1346_v59, %v1345_v30, %v4955_v31  ;;  %v4962_v32 = vmul.u32.u64.low %v1346_v59, %v1341_v27  ;;  %v4963_v23 = vmul.u32.u64.high %v1346_v59, %v1341_v27, %v4962_v32 }
  0xe1   : > { %v4966_v26 = vsub.s32 %v1140_v5, %v1143_v42  ;;  %1988 = vbcast.lane.b32.xlu1 %v1986_v13, 256  ;;  %v2517_v2 = vadd.s32 1, %v4122_v58  ;;  %v874_v53 = vrot.slane %v4952_v51, %v4636_v11  ;;  %v1406_v47 = vmul.f32 1.442695, %v4860_v44 }
  0xe2   : > { %2016 = vbcast.lane.b32.xlu0 %v2014_v25, 256  ;;  %v1353_v55 = vmul.u32 %v1346_v59, %v1337_v1  ;;  %vm1355_vm4 = vc.u32 %v4956_v60, %v4962_v32  ;;  %v881_v37 = vrot.slane %v4952_v51, %v4645_v19  ;;  %v1356_v48 = vadd.s32 1, %v4963_v23 }
  0xe3   : > { %v1146_v50 = vsub.s32 0, %v4966_v26  ;;  %v6347_v5 = vand.u32 2147483647, %v4822_v61  ;;  %vm2518_vm5 = vcmp.gt.s32.totalorder %v2517_v2, 0  ;;  %v649_v59 = vcombine.high %v4736_v9, %v4736_v9 }
  0xe4   : > { %v1357_v63 = vsel %vm1355_vm4, %v1356_v48, %v4963_v23  ;;  %v902_v35 = vrot.slane %v4952_v51, %v4748_v16  ;;  %v2519_v0 = vsel %vm2518_vm5, %v2517_v2, 0  ;;  %v888_v22 = vrot.slane %v4952_v51, %v4639_v15 }
  0xe5   : > { %v4103_v58 = vmin.u32 %v1146_v50, %v4966_v26  ;;  %883 = vbcast.lane.b32.xlu1 %v881_v37, 256  ;;  %v1358_v6 = vadd.s32 %v1357_v63, %v1353_v55  ;;  %v2521_v24 = vand.u32 31, %v2519_v0  ;;  %v2514_v27 = vand.u32 8388607, %v6347_v5 }
  0xe6   : > { %876 = vbcast.lane.b32.xlu0 %v874_v53, 256  ;;  %4368 = vpow2.f32 %v1406_v47  ;;  %v4997_v1 = vrot.slane %v649_v59, %v4636_v11  ;;  %v1136_v23 = vadd.s32 %v4890_v43, %v4887_v8  ;;  %v916_v2 = vrot.slane %v4952_v51, %v4803_v46 }
  0xe7   : > { %v1148_v41 = vclz %v4103_v58  ;;  %v1359_v31 = vadd.s32 536870912, %v1358_v6  ;;  %v2522_v13 = vsub.s32 32, %v2521_v24  ;;  %v895_v55 = vrot.slane %v4952_v51, %v4698_v54 }
  0xe8   : > { %v909_v37 = vrot.slane %v4952_v51, %v4783_v36  ;;  %v2515_v8 = vor.u32 8388608, %v2514_v27  ;;  %v5013_v43 = vshrl.u32 %v2519_v0, 5  ;;  %v2530_v7 = vshll.u32 %v6399_v49, %v2521_v24 }
  0xe9   : > { %v4104_v42 = vadd.s32 4294967294, %v1148_v41  ;;  %890 = vbcast.lane.b32.xlu1 %v888_v22, 256  ;;  %v5007_v47 = vshrl.u32 %v1359_v31, 30  ;;  %v2525_v58 = vshrl.u32 %v6398_v18, %v2522_v13  ;;  %v2528_v41 = vshrl.u32 %v6399_v49, %v2522_v13 }
  0xea   : > { %904 = vbcast.lane.b32.xlu0 %v902_v35, 256  ;;  %v2524_v22 = vshll.u32 %v6397_v3, %v2521_v24  ;;  %v2527_v31 = vshll.u32 %v6398_v18, %v2521_v24  ;;  %v2531_v25 = vshrl.u32 %v6400_v21, %v2522_v13  ;;  %v2536_v30 = vshll.u32 %v6401_v56, %v2521_v24 }
  0xeb   : > { %vm4105_vm6 = vcmp.lt.s32.totalorder %v4104_v42, 0  ;;  %6403 = vst [vmem:[#allocation17_spill] sm:$0xff] %v5007_v47  ;;  %v1361_v35 = vshll.u32 %v5007_v47, 30  ;;  %v2537_v44 = vshrl.u32 %v6356_v29, %v2522_v13  ;;  %vm2539_vm7 = vcmp.lt.s32.totalorder %v5013_v43, 1 }
  0xec   : > { %v1151_v48 = vsel %vm4105_vm6, 0, %v4104_v42  ;;  %v2534_v42 = vshrl.u32 %v6401_v56, %v2522_v13  ;;  %v2526_v47 = vor.u32 %v2525_v58, %v2524_v22  ;;  %v2529_v57 = vor.u32 %v2528_v41, %v2527_v31 }
  0xed   : > { %v1152_v59 = vsub.s32 32, %v1151_v48  ;;  %v1156_v63 = vsub.s32 4294967266, %v1151_v48  ;;  %897 = vbcast.lane.b32.xlu1 %v895_v55, 256  ;;  %v1153_v0 = vshll.u32 %v4966_v26, %v1151_v48  ;;  %v5024_v5 = vsub.s32 %v1358_v6, %v1361_v35 }
  0xee   : > { %918 = vbcast.lane.b32.xlu0 %v916_v2, 256  ;;  %v2533_v55 = vshll.u32 %v6400_v21, %v2521_v24  ;;  %v2532_v26 = vor.u32 %v2531_v25, %v2530_v7  ;;  %v2538_v48 = vor.u32 %v2537_v44, %v2536_v30  ;;  %v2760_v6 = vmul.f32 %v4789_v39, %v4789_v39 }
  0xef   : > { %v1154_v27 = vshrl.u32 %v1136_v23, %v1152_v59  ;;  %v1157_v2 = vadd.s32 127, %v1156_v63  ;;  %v1166_v63 = vsub.s32 4, %v4943_v10  ;;  %v923_v24 = vrot.slane %v4952_v51, %v4812_v52 }
  0xf0   : > { %v5029_v46 = vpop.eup %4368  ;;  %v2535_v23 = vor.u32 %v2534_v42, %v2533_v55  ;;  %v2555_v35 = vshll.u32 %v2515_v8, 8  ;;  %vm2541_vm8 = vcmp.lt.s32.totalorder %v5013_v43, 3  ;;  %vm2542_vm9 = vcmp.lt.s32.totalorder %v5013_v43, 4 }
  0xf1   : > { %v1155_v50 = vor.u32 %v1154_v27, %v1153_v0  ;;  %v1158_v53 = vshll.u32 %v1157_v2, 23  ;;  %911 = vbcast.lane.b32.xlu1 %v909_v37, 256  ;;  %v1364_v0 = vsub.s32 0, %v5024_v5  ;;  %v2523_v37 = vshrl.u32 %v6397_v3, %v2522_v13 }
  0xf2   : > { %v2547_v30 = vsel %vm2539_vm7, %v2526_v47, %v2529_v57  ;;  %v2544_v25 = vsel %vm2542_vm9, %v2532_v26, 2102212464  ;;  %v2551_v51 = vsel %vm2539_vm7, %v2529_v57, %v2532_v26  ;;  %v2552_v8 = vsel %vm2542_vm9, %v2538_v48, 1326507024 }
  0xf3   : > { %v1159_v59 = vor.u32 4788187, %v1158_v53  ;;  %v1162_v44 = vcvt.s32.f32 %v1155_v50  ;;  %v2548_v53 = vsel %vm2542_vm9, %v2535_v23, 920167782  ;;  %vm2540_vm10 = vcmp.lt.s32.totalorder %v5013_v43, 2 }
  0xf4   : > { %v2549_v13 = vsel %vm2541_vm8, %v2532_v26, %v2548_v53  ;;  %v2553_v50 = vsel %vm2541_vm8, %v2535_v23, %v2552_v8  ;;  %v4111_v41 = vmin.u32 %v1364_v0, %v5024_v5  ;;  %v2543_v22 = vsel %vm2539_vm7, %v2523_v37, %v2526_v47 }
  0xf5   : > { %v1160_v7 = vand.u32 2147483647, %v1159_v59  ;;  %925 = vbcast.lane.b32.xlu1 %v923_v24, 256  ;;  %v2550_v31 = vsel %vm2540_vm10, %v2547_v30, %v2549_v13  ;;  %v2554_v42 = vsel %vm2540_vm10, %v2551_v51, %v2553_v50  ;;  %v2545_v2 = vsel %vm2541_vm8, %v2529_v57, %v2544_v25 }
  0xf6   : > { %v5059_v55 = vmul.u32.u64.low %v2555_v35, %v2554_v42  ;;  %v5060_v26 = vmul.u32.u64.high %v2555_v35, %v2554_v42, %v5059_v55  ;;  %vm1082_vm11 = vcmp.lt.s32.totalorder %v4800_v45, 0  ;;  %v651_v47 = vcombine.high %v4751_v17, %v4751_v17 }
  0xf7   : > { %v1163_v58 = vmul.f32 %v1162_v44, %v1160_v7  ;;  %v5063_v23 = vmul.u32.u64.low %v2555_v35, %v2550_v31  ;;  %v5064_v48 = vmul.u32.u64.high %v2555_v35, %v2550_v31, %v5063_v23  ;;  %v6404_v59 = vand.u32 2147483647, %v4800_v45 }
  0xf8   : > { %v1167_v57 = vsel %vm1082_vm11, %v1166_v63, %v4943_v10  ;;  %v4130_v37 = vadd.f32 -1.0, %v4789_v39  ;;  %v1366_v44 = vclz %v4111_v41  ;;  %v2546_v30 = vsel %vm2540_vm10, %v2543_v22, %v2545_v2 }
  0xf9   : > { %v1164_v27 = vxor.u32 2147483648, %v1163_v58  ;;  %vm5071_vm12 = vcmp.le.f32.partialorder %v6404_v59, 0.7853982  ;;  %v3074_v25 = vand.u32 2139095040, %v4789_v39  ;;  %v2761_v53 = vmul.f32 -0.5, %v2760_v6 }
  0xfa   : > { %v6407_v51 = vcombine.high %v4731_v4, %v4731_v4  ;;  %vm2564_vm13 = vc.u32 %v5060_v26, %v5063_v23  ;;  %v2565_v43 = vadd.s32 1, %v5064_v48  ;;  %v2562_v13 = vmul.u32 %v2555_v35, %v2546_v30 }
  0xfb   : > { %v1165_v0 = vsel %vm1082_vm11, %v1164_v27, %v1163_v58  ;;  %v3075_v63 = vshrl.u32 %v3074_v25, 23  ;;  %v1169_v58 = vsel %vm5071_vm12, 0, %v1167_v57  ;;  %v2916_v50 = vmul.f32 %v4130_v37, %v4130_v37 }
  0xfc   : > { %v1168_v7 = vsel %vm5071_vm12, %v4800_v45, %v1165_v0  ;;  %v5087_v8 = vrot.slane %v6407_v51, %v4636_v11  ;;  %v6408_v41 = vcombine.high %v4745_v14, %v4745_v14  ;;  %v4112_v31 = vadd.s32 4294967294, %v1366_v44 }
  0xfd   : > { %4370 = vcosq.f32 %v1168_v7  ;;  %v2566_v42 = vsel %vm2564_vm13, %v2565_v43, %v5064_v48  ;;  %v4133_v27 = vadd.s32 4294967169, %v3075_v63  ;;  %v5104_v2 = vrot.slane %v651_v47, %v4636_v11 }
  0xfe   : > { %4372 = vsinq.f32 %v1168_v7  ;;  %v5100_v22 = vrot.slane %v6408_v41, %v4636_v11  ;;  %v2567_v55 = vadd.s32 %v2566_v42, %v2562_v13  ;;  %v2838_v59 = vmul.f32 -1.0, %v2760_v6 }
  0xff   : > { %v620_v35 = vcombine.high %v4773_v33, %v4773_v33  ;;  %v1173_v0 = vand.u32 3, %v1169_v58  ;;  %v2762_v57 = vmul.f32 1.442695, %v2761_v53  ;;  %v3081_v37 = vadd.s32 1, %v4133_v27 }
 0x100   : > { %v2568_v44 = vadd.s32 536870912, %v2567_v55  ;;  %v2917_v48 = vmul.f32 -0.5, %v2916_v50  ;;  %v6353_v30 = vand.u32 2147483647, %v4789_v39  ;;  %vm1172_vm14 = vweird.f32 %v4800_v45 }
 0x101   : > { %vm4113_vm15 = vcmp.lt.s32.totalorder %v4112_v31, 0  ;;  %v2994_v6 = vmul.f32 -1.0, %v2916_v50  ;;  %vm3082_vm0 = vcmp.gt.s32.totalorder %v3081_v37, 0  ;;  %v2839_v33 = vmul.f32 1.442695, %v2838_v59 }
 0x102   : > { %v2569_v25 = vshrl.u32 %v2568_v44, 30  ;;  %v3083_v51 = vsel %vm3082_vm0, %v3081_v37, 0  ;;  %v5117_v53 = vrot.slane %v620_v35, %v4648_v20  ;;  %vm1174_vm3 = vcmp.lt.s32.totalorder %v1173_v0, 2 }
 0x103   : > { %v1354_v43 = vadd.s32 %v4962_v32, %v4956_v60  ;;  %4374 = vpow2.f32 %v2762_v57  ;;  %v3085_v63 = vand.u32 31, %v3083_v51  ;;  %v5121_v13 = vsel %vm4113_vm15, 0, %v4112_v31 }
 0x104   : > { %6409 = vst [vmem:[#allocation18_spill] sm:$0xff] %v5117_v53  ;;  %v2570_v41 = vshll.u32 %v2569_v25, 30  ;;  %v2918_v42 = vmul.f32 1.442695, %v2917_v48  ;;  %v3078_v50 = vand.u32 8388607, %v6353_v30  ;;  %4376 = vpow2.f32 %v2839_v33 }
 0x105   : > { %vm1175_vm4 = vcmp.eq.s32.totalorder %v1173_v0, 0  ;;  %vm2509_vm5 = vcmp.lt.s32.totalorder %v4822_v61, 0  ;;  %v2995_v35 = vmul.f32 1.442695, %v2994_v6  ;;  %v5127_v37 = vmul.f32 2.0, %v4789_v39 }
 0x106   : > { %vm1078_vm6 = vcmp.lt.f32.partialorder %v4789_v39, 4.0  ;;  %vm1178_vm7 = vcmp.eq.s32.totalorder %v1173_v0, 2  ;;  %v1370_v32 = vsub.s32 32, %v5121_v13  ;;  %v5131_v31 = vsub.s32 %v2567_v55, %v2570_v41 }
 0x107   : > { %v4371_v58 = vpop.eup %4370  ;;  %v1374_v44 = vsub.s32 4294967266, %v5121_v13  ;;  %v3086_v48 = vsub.s32 32, %v3085_v63  ;;  %4378 = vpow2.f32 %v2918_v42  ;;  %v3079_v6 = vor.u32 8388608, %v3078_v50 }
 0x108   : > { %v4373_v27 = vpop.eup %4372  ;;  %v1179_v59 = vxor.u32 2147483648, %v4371_v58  ;;  %v2573_v47 = vsub.s32 0, %v5131_v31  ;;  %4380 = vpow2.f32 %v2995_v35  ;;  %v3252_v10 = vand.u32 2139095040, %v5127_v37 }
 0x109   : > { %v1176_v60 = vxor.u32 2147483648, %v4373_v27  ;;  %v5141_v41 = vshrl.u32 %v1354_v43, %v1370_v32  ;;  %v3089_v0 = vshrl.u32 %v6398_v18, %v3086_v48  ;;  %v2563_v42 = vadd.s32 %v5063_v23, %v5060_v26 }
 0x10a   : > { %v1180_v57 = vsel %vm1178_vm7, %v1179_v59, %v4373_v27  ;;  %v4123_v33 = vmin.u32 %v2573_v47, %v5131_v31  ;;  %v5144_v59 = vadd.s32 127, %v1374_v44  ;;  %v5150_v35 = vshll.u32 %v3079_v6, 8 }
 0x10b   : > { %v1177_v30 = vsel %vm1175_vm4, %v4371_v58, %v1176_v60  ;;  %v2593_v58 = vsub.s32 4, %v2569_v25  ;;  %v3088_v47 = vshll.u32 %v6397_v3, %v3085_v63  ;;  %v3091_v60 = vshll.u32 %v6398_v18, %v3085_v63 }
 0x10c   : > { %v1181_v7 = vsel %vm1174_vm3, %v1177_v30, %v1180_v57  ;;  %v3092_v30 = vshrl.u32 %v6399_v49, %v3086_v48  ;;  %v2575_v50 = vclz %v4123_v33  ;;  %v3253_v32 = vshrl.u32 %v3252_v10, 23 }
 0x10d   : > { %v1182_v55 = vsel %vm1172_vm14, nan, %v1181_v7  ;;  %v5153_v7 = vpop.eup %4374  ;;  %v5159_v44 = vsel %vm2509_vm5, %v2593_v58, %v2569_v25  ;;  %v3098_v26 = vshrl.u32 %v6401_v56, %v3086_v48  ;;  %v3087_v6 = vshrl.u32 %v6397_v3, %v3086_v48 }
 0x10e   : > { %v1183_v27 = vadd.f32 1.0, %v1182_v55  ;;  %6410 = vst [vmem:[#allocation19_spill] sm:$0xff] %v5153_v7  ;;  %v4124_v57 = vadd.s32 4294967294, %v2575_v50  ;;  %v5161_v55 = vshrl.u32 %v3083_v51, 5  ;;  %v3090_v33 = vor.u32 %v3089_v0, %v3088_v47  ;;  %v4377_v51 = vpop.eup %4376 }
 0x10f   : > { %v3095_v10 = vshrl.u32 %v6400_v21, %v3086_v48  ;;  %v3097_v25 = vshll.u32 %v6400_v21, %v3085_v63  ;;  %v3094_v50 = vshll.u32 %v6399_v49, %v3085_v63  ;;  %v5176_v45 = vshll.u32 %v6401_v56, %v3085_v63 }
 0x110   : > { %v1184_v43 = vmul.f32 0.5, %v1183_v27  ;;  %v5167_v27 = vor.u32 %v3092_v30, %v3091_v60  ;;  %vm4125_vm8 = vcmp.lt.s32.totalorder %v4124_v57, 0  ;;  %v6412_v63 = vrot.slane %v4731_v4, %v4636_v11 }
 0x111   : > { %v2578_v58 = vsel %vm4125_vm8, 0, %v4124_v57  ;;  %v5181_v0 = vpop.eup %4378  ;;  %v5187_v7 = vor.u32 %v3098_v26, %v3097_v25  ;;  %v6415_v53 = vmov 0.0   ;;  %v5200_v52 = vadd.s32 4294967169, %v3253_v32 }
 0x112   : > { %v1185_v23 = vsel %vm1078_vm6, %v1184_v43, 0.0  ;;  %v5179_v43 = vshrl.u32 %v6356_v29, %v3086_v48  ;;  %6411 = vst [vmem:[#allocation20_spill] sm:$0xff] %v5181_v0  ;;  %v2579_v30 = vsub.s32 32, %v2578_v58  ;;  %v2583_v47 = vsub.s32 4294967266, %v2578_v58  ;;  %v4381_v34 = vpop.eup %4380 }
 0x113   : > { %v5170_v24 = vmul.f32 %v4828_v62, %v1185_v23  ;;  %v399_v60 = vpop.permute.xlu0 %398  ;;  %v406_v23 = vpop.permute.xlu1 %405  ;;  %v6413_v29 = vrot.slane %v4745_v14, %v4636_v11  ;;  %v6414_v62 = vmov 1.0   ;;  %v2580_v26 = vshll.u32 %v5131_v31, %v2578_v58 }
 0x114   : > { %v539_v48 = vmul.f32 %v6412_v63, %v399_v60  ;;  %v2581_v25 = vshrl.u32 %v2563_v42, %v2579_v30  ;;  %v2584_v39 = vadd.s32 127, %v2583_v47  ;;  %v3096_v4 = vor.u32 %v3095_v10, %v3094_v50 }
 0x115   : > { %4189 = vmatmul.mubr.msk.f32.vlgmr.msra.gmra.mrb[0].mxu1 %vm345_vm2, %v5170_v24  ;;  %v2127_v57 = vrot.slane %v5170_v24, %v4636_v11  ;;  %v540_v0 = vmul.f32 %v6413_v29, %v406_v23  ;;  %v2134_v20 = vrot.slane %v5170_v24, %v4645_v19  ;;  %v2841_v14 = vmul.f32 %v4377_v51, %v5170_v24 }
 0x116   : > { %4197 = vmatpush3.msra.mxu1 %v6414_v62  ;;  %4198 = vmatprep.mubr.msk.f32.mxu1 %vm4512_vm1, %v6415_v53  ;;  %v3102_v29 = vor.u32 %v5179_v43, %v5176_v45  ;;  %vm3103_vm9 = vcmp.lt.s32.totalorder %v5161_v55, 1  ;;  %vm3104_vm10 = vcmp.lt.s32.totalorder %v5161_v55, 2  ;;  %v6416_v32 = vand.u32 2147483647, %v4822_v61 }
 0x117   : > { %2129 = vbcast.lane.b32.xlu0 %v2127_v57, 256  ;;  %4206 = vmatprep.subr.mxu1 %v6415_v53  ;;  %v2582_v42 = vor.u32 %v2581_v25, %v2580_v26  ;;  %v2585_v58 = vshll.u32 %v2584_v39, 23  ;;  %vm3106_vm12 = vcmp.lt.s32.totalorder %v5161_v55, 4  ;;  %v2148_v10 = vrot.slane %v5170_v24, %v4698_v54 }
 0x118   : > { %2136 = vbcast.lane.b32.xlu1 %v2134_v20, 256  ;;  %vm5211_vm11 = vcmp.le.f32.partialorder %v6416_v32, 0.7853982  ;;  %v2141_v20 = vrot.slane %v5170_v24, %v4639_v15  ;;  %v553_v45 = vpop.permute.xlu0 %552  ;;  %v5223_v50 = vmul.f32 %v5029_v46, %v5170_v24  ;;  %vm3105_vm13 = vcmp.lt.s32.totalorder %v5161_v55, 3 }
 0x119   : > { %4199 = vmatmul.mubr.msk.f32.vlgmr.msra.gmra.mrb[2].mxu1 %vm345_vm2, %v2841_v14  ;;  %v560_v51 = vpop.permute.xlu1 %559  ;;  %v3112_v39 = vsel %vm3106_vm12, %v5187_v7, 920167782  ;;  %v2586_v43 = vor.u32 4788187, %v2585_v58  ;;  %v6419_v30 = vrot.slane %v4736_v9, %v4636_v11  ;;  %v3107_v60 = vsel %vm3103_vm9, %v3087_v6, %v3090_v33 }
 0x11a   : > { %4207 = vmatpush3.msra.mxu1 %v6414_v62  ;;  %v3111_v46 = vsel %vm3103_vm9, %v3090_v33, %v5167_v27  ;;  %v2589_v23 = vcvt.s32.f32 %v2582_v42  ;;  %v6420_v57 = vrot.slane %v4751_v17, %v4636_v11  ;;  %4208 = vmatprep.mubr.msk.f32.mxu1 %vm4512_vm1, %v6415_v53  ;;  %v2997_v9 = vmul.f32 %v4381_v34, %v5170_v24 }
 0x11b   : > { %2143 = vbcast.lane.b32.xlu0 %v2141_v20, 256  ;;  %v693_v47 = vmul.f32 %v6419_v30, %v553_v45  ;;  %v3108_v26 = vsel %vm3106_vm12, %v3096_v4, 2102212464  ;;  %v2587_v25 = vand.u32 2147483647, %v2586_v43  ;;  %4216 = vmatprep.subr.mxu1 %v6415_v53  ;;  %v1420_v33 = vrot.slane %v5223_v50, %v4636_v11 }
 0x11c   : > { %2150 = vbcast.lane.b32.xlu1 %v2148_v10, 256  ;;  %v694_v63 = vmul.f32 %v6420_v57, %v560_v51  ;;  %v3113_v17 = vsel %vm3105_vm13, %v3096_v4, %v3112_v39  ;;  %v567_v32 = vpop.permute.xlu0 %566  ;;  %v1427_v34 = vrot.slane %v5223_v50, %v4645_v19  ;;  %v3115_v58 = vsel %vm3103_vm9, %v5167_v27, %v3096_v4 }
 0x11d   : > { %v5246_v6 = vadd.f32 %v693_v47, %v539_v48  ;;  %4209 = vmatmul.mubr.msk.f32.vlgmr.msra.gmra.mrb[4].mxu1 %vm345_vm2, %v2997_v9  ;;  %v413_v42 = vpop.permute.xlu1 %412  ;;  %v3114_v48 = vsel %vm3104_vm10, %v3111_v46, %v3113_v17  ;;  %v2590_v20 = vmul.f32 %v2589_v23, %v2587_v25  ;;  %v695_v45 = vmul.f32 %v4997_v1, %v567_v32 }
 0x11e   : > { %v5253_v14 = vadd.f32 %v694_v63, %v540_v0  ;;  %v541_v0 = vmul.f32 %v5087_v8, %v413_v42  ;;  %4217 = vmatpush3.msra.mxu1 %v6414_v62  ;;  %v3116_v10 = vsel %vm3106_vm12, %v3102_v29, 1326507024  ;;  %4218 = vmatprep.mubr.msk.f32.mxu1 %vm4512_vm1, %v6415_v53  ;;  %v3109_v19 = vsel %vm3105_vm13, %v5167_v27, %v3108_v26 }
 0x11f   : > { %1422 = vbcast.lane.b32.xlu0 %v1420_v33, 256  ;;  %v3117_v4 = vsel %vm3105_vm13, %v5187_v7, %v3116_v10  ;;  %v5277_v1 = vmul.u32.u64.low %v5150_v35, %v3114_v48  ;;  %v5278_v8 = vmul.u32.u64.high %v5150_v35, %v3114_v48, %v5277_v1  ;;  %v2591_v51 = vxor.u32 2147483648, %v2590_v20  ;;  %4226 = vmatprep.subr.mxu1 %v6415_v53 }
 0x120   : > { %1429 = vbcast.lane.b32.xlu1 %v1427_v34, 256  ;;  %v5281_v39 = vadd.f32 %v695_v45, %v541_v0  ;;  %v3118_v29 = vsel %vm3104_vm10, %v3115_v58, %v3117_v4  ;;  %v6421_v43 = vand.u32 2147483647, %v5127_v37  ;;  %v2596_v7 = vsel %vm5211_vm11, 0, %v5159_v44  ;;  %v420_v23 = vpop.permute.xlu0 %419 }
 0x121   : > { %v5294_v27 = vmul.u32.u64.low %v5150_v35, %v3118_v29  ;;  %v5295_v47 = vmul.u32.u64.high %v5150_v35, %v3118_v29, %v5294_v27  ;;  %v3259_v46 = vadd.s32 1, %v5200_v52  ;;  %v574_v57 = vpop.permute.xlu1 %573  ;;  %v2592_v63 = vsel %vm2509_vm5, %v2591_v51, %v2590_v20 }
 0x122   : > { %v5287_v30 = vand.u32 8388607, %v6421_v43  ;;  %v3110_v9 = vsel %vm3104_vm10, %v3107_v60, %v3109_v19  ;;  %v1434_v26 = vrot.slane %v5223_v50, %v4639_v15  ;;  %v542_v25 = vmul.f32 %v5100_v22, %v420_v23 }
 0x123   : > { %v2595_v44 = vsel %vm5211_vm11, %v4822_v61, %v2592_v63  ;;  %v3129_v33 = vadd.s32 1, %v5278_v8  ;;  %vm3260_vm14 = vcmp.gt.s32.totalorder %v3259_v46, 0  ;;  %v1441_v52 = vrot.slane %v5223_v50, %v4698_v54 }
 0x124   : > { %4382 = vcosq.f32 %v2595_v44  ;;  %v5311_v17 = vand.u32 3, %v2596_v7  ;;  %v3261_v55 = vsel %vm3260_vm14, %v3259_v46, 0  ;;  %1436 = vbcast.lane.b32.xlu0 %v1434_v26, 256  ;;  %v696_v60 = vmul.f32 %v5104_v2, %v574_v57  ;;  %v715_v31 = vpop.permute.xlu0 %714 }
 0x125   : > { %4384 = vsinq.f32 %v2595_v44  ;;  %v3126_v15 = vmul.u32 %v5150_v35, %v3110_v9  ;;  %vm3128_vm15 = vc.u32 %v5295_v47, %v5277_v1  ;;  %1443 = vbcast.lane.b32.xlu1 %v1441_v52, 256  ;;  %v1448_v22 = vrot.slane %v5223_v50, %v4748_v16  ;;  %v722_v32 = vpop.permute.xlu1 %721 }
 0x126   : > { %v3130_v54 = vsel %vm3128_vm15, %v3129_v33, %v5278_v8  ;;  %v3263_v34 = vand.u32 31, %v3261_v55  ;;  %v5320_v42 = vadd.f32 %v696_v60, %v542_v25  ;;  %v6422_v2 = vrot.slane %v4740_v12, %v4636_v11 }
 0x127   : > { %v6423_v35 = vshll.u32 %v5024_v5, %v5121_v13  ;;  %v1376_v20 = vshll.u32 %v5144_v59, 23  ;;  %v3131_v45 = vadd.s32 %v3130_v54, %v3126_v15  ;;  %v672_v0 = vrot.slane %v4787_v38, %v4636_v11 }
 0x128   : > { %v5325_v48 = vmul.f32 %v6422_v2, %v715_v31  ;;  %v3257_v10 = vor.u32 8388608, %v5287_v30  ;;  %v5337_v19 = vshrl.u32 %v3261_v55, 5  ;;  %v3264_v4 = vsub.s32 32, %v3263_v34  ;;  %1450 = vbcast.lane.b32.xlu0 %v1448_v22, 256  ;;  %v581_v29 = vpop.permute.xlu0 %580 }
 0x129   : > { %v5331_v58 = vor.u32 %v5141_v41, %v6423_v35  ;;  %v518_v8 = vrot.slane %v4793_v40, %v4636_v11  ;;  %v3132_v51 = vadd.s32 536870912, %v3131_v45  ;;  %v3266_v5 = vshll.u32 %v6397_v3, %v3263_v34  ;;  %v5344_v43 = vpop.permute.xlu1 %426 }
 0x12a   : > { %v3269_v13 = vshll.u32 %v6398_v18, %v3263_v34  ;;  %v3272_v41 = vshll.u32 %v6399_v49, %v3263_v34  ;;  %vm2601_vm0 = vcmp.lt.s32.totalorder %v5311_v17, 2  ;;  %v3267_v30 = vshrl.u32 %v6398_v18, %v3264_v4 }
 0x12b   : > { %v3270_v7 = vshrl.u32 %v6399_v49, %v3264_v4  ;;  %v3273_v27 = vshrl.u32 %v6400_v21, %v3264_v4  ;;  %v3275_v46 = vshll.u32 %v6400_v21, %v3263_v34  ;;  %vm2599_vm3 = vweird.f32 %v4822_v61 }
 0x12c   : > { %v5352_v23 = vshrl.u32 %v3132_v51, 30  ;;  %v3276_v57 = vshrl.u32 %v6401_v56, %v3264_v4  ;;  %v6424_v63 = vmov 1326507024   ;;  %v1455_v26 = vrot.slane %v5223_v50, %v4783_v36  ;;  %v5366_v31 = vpop.permute.xlu0 %587 }
 0x12d   : > { %v3279_v9 = vshrl.u32 %v6424_v63, %v3264_v4  ;;  %v3268_v25 = vor.u32 %v3267_v30, %v3266_v5  ;;  %v3271_v44 = vor.u32 %v3270_v7, %v3269_v13  ;;  %v3278_v33 = vshll.u32 %v6401_v56, %v3263_v34  ;;  %v5368_v54 = vpop.permute.xlu1 %728  ;;  %v6426_v13 = vld [vmem:[#allocation11_spill] sm:$0xff] }
 0x12e   : > { %v6425_v52 = vrot.slane %v4765_v28, %v4636_v11  ;;  %vm2602_vm4 = vcmp.eq.s32.totalorder %v5311_v17, 0  ;;  %v3134_v60 = vshll.u32 %v5352_v23, 30  ;;  %v3274_v15 = vor.u32 %v3273_v27, %v3272_v41  ;;  %1457 = vbcast.lane.b32.xlu1 %v1455_v26, 256  ;;  %v4383_v2 = vpop.eup %4382 }
 0x12f   : > { %v3277_v22 = vor.u32 %v3276_v57, %v3275_v46  ;;  %vm2605_vm5 = vcmp.eq.s32.totalorder %v5311_v17, 2  ;;  %v3280_v34 = vor.u32 %v3279_v9, %v3278_v33  ;;  %vm3281_vm6 = vcmp.lt.s32.totalorder %v5337_v19, 1 }
 0x130   : > { %v5362_v55 = vmul.f32 %v6425_v52, %v722_v32  ;;  %v5372_v35 = vshll.u32 %v3257_v10, 8  ;;  %v4385_v32 = vpop.eup %4384  ;;  %v2606_v51 = vxor.u32 2147483648, %v4383_v2  ;;  %v5374_v5 = vsub.s32 %v3131_v45, %v3134_v60  ;;  %v5385_v9 = vpop.permute.xlu0 %594 }
 0x131   : > { %vm3283_vm7 = vcmp.lt.s32.totalorder %v5337_v19, 3  ;;  %vm3284_vm8 = vcmp.lt.s32.totalorder %v5337_v19, 4  ;;  %vm2505_vm9 = vcmp.lt.f32.partialorder %v6426_v13, 3.0  ;;  %v2603_v41 = vxor.u32 2147483648, %v4385_v32  ;;  %v5387_v26 = vpop.permute.xlu1 %433 }
 0x132   : > { %v3265_v30 = vshrl.u32 %v6397_v3, %v3264_v4  ;;  %v3289_v7 = vsel %vm3281_vm6, %v3268_v25, %v3271_v44  ;;  %v3290_v27 = vsel %vm3284_vm8, %v3277_v22, 920167782  ;;  %v2607_v46 = vsel %vm2605_vm5, %v2606_v51, %v4385_v32 }
 0x133   : > { %v3137_v10 = vsub.s32 0, %v5374_v5  ;;  %v3286_v57 = vsel %vm3284_vm8, %v3274_v15, 2102212464  ;;  %v3291_v45 = vsel %vm3283_vm7, %v3274_v15, %v3290_v27  ;;  %v2604_v33 = vsel %vm2602_vm4, %v4383_v2, %v2603_v41 }
 0x134   : > { %vm3282_vm10 = vcmp.lt.s32.totalorder %v5337_v19, 2  ;;  %v3293_v4 = vsel %vm3281_vm6, %v3271_v44, %v3274_v15  ;;  %v3294_v52 = vsel %vm3284_vm8, %v3280_v34, 1326507024  ;;  %v2608_v60 = vsel %vm2601_vm0, %v2604_v33, %v2607_v46  ;;  %v6427_v34 = vld [vmem:[#allocation12_spill] sm:$0xff]  ;;  %v5414_v61 = vpop.permute.xlu0 %601 }
 0x135   : > { %v4134_v32 = vmin.u32 %v3137_v10, %v5374_v5  ;;  %v3285_v51 = vsel %vm3281_vm6, %v3265_v30, %v3268_v25  ;;  %v3292_v27 = vsel %vm3282_vm10, %v3289_v7, %v3291_v45  ;;  %v2609_v2 = vsel %vm2599_vm3, nan, %v2608_v60  ;;  %v5416_v7 = vpop.permute.xlu1 %735 }
 0x136   : > { %v3287_v41 = vsel %vm3283_vm7, %v3271_v44, %v3286_v57  ;;  %v3295_v15 = vsel %vm3283_vm7, %v3277_v22, %v3294_v52  ;;  %v1462_v17 = vrot.slane %v5223_v50, %v6427_v34  ;;  %v2610_v46 = vadd.f32 1.0, %v2609_v2  ;;  %v6428_v52 = vld [vmem:[#allocation13_spill] sm:$0xff]  ;;  %v6429_v2 = vld [vmem:[#allocation18_spill] sm:$0xff] }
 0x137   : > { %v3139_v10 = vclz %v4134_v32  ;;  %v3296_v25 = vsel %vm3282_vm10, %v3293_v4, %v3295_v15  ;;  %v697_v30 = vmul.f32 %v672_v0, %v581_v29  ;;  %v1469_v60 = vrot.slane %v5223_v50, %v6428_v52 }
 0x138   : > { %v5419_v44 = vmul.u32.u64.low %v5372_v35, %v3296_v25  ;;  %v5420_v57 = vmul.u32.u64.high %v5372_v35, %v3296_v25, %v5419_v44  ;;  %v5423_v22 = vmul.u32.u64.low %v5372_v35, %v3292_v27  ;;  %v5424_v45 = vmul.u32.u64.high %v5372_v35, %v3292_v27, %v5423_v22  ;;  %1464 = vbcast.lane.b32.xlu0 %v1462_v17, 256 }
 0x139   : > { %v2611_v33 = vmul.f32 0.5, %v2610_v46  ;;  %v4135_v4 = vadd.s32 4294967294, %v3139_v10  ;;  %v543_v0 = vmul.f32 %v518_v8, %v5344_v43  ;;  %v5435_v29 = vor.u32 4788187, %v1376_v20  ;;  %1471 = vbcast.lane.b32.xlu1 %v1469_v60, 256  ;;  %v5449_v20 = vpop.permute.xlu0 %756  ;;  %v5451_v19 = vpop.permute.xlu1 %440  ;;  %v6430_v8 = vld [vmem:[#allocation14_spill] sm:$0xff] }
 0x13a   : > { %v3288_v32 = vsel %vm3282_vm10, %v3285_v51, %v3287_v41  ;;  %v2155_v27 = vrot.slane %v5170_v24, %v4748_v16  ;;  %v676_v15 = vrot.slane %v6429_v2, %v4636_v11  ;;  %v3127_v17 = vadd.s32 %v5277_v1, %v5295_v47 }
 0x13b   : > { %v2612_v50 = vsel %vm2505_vm9, %v2611_v33, 0.0  ;;  %vm4136_vm11 = vcmp.lt.s32.totalorder %v4135_v4, 0  ;;  %v5447_v59 = vadd.f32 %v697_v30, %v543_v0  ;;  %vm3306_vm12 = vc.u32 %v5420_v57, %v5423_v22  ;;  %v6432_v33 = vld [vmem:[#allocation6_spill] sm:$0xff] }
 0x13c   : > { %v2613_v43 = vmul.f32 %v6430_v8, %v2612_v50  ;;  %v3142_v16 = vsel %vm4136_vm11, 0, %v4135_v4  ;;  %2157 = vbcast.lane.b32.xlu0 %v2155_v27, 256  ;;  %v6431_v51 = vcombine.high %v4740_v12, %v4740_v12  ;;  %v3304_v46 = vmul.u32 %v5372_v35, %v3288_v32  ;;  %v6433_v12 = vld [vmem:[#allocation10_spill] sm:$0xff]  ;;  %v6435_v27 = vld [vmem:[#allocation19_spill] sm:$0xff] }
 0x13d   : > { %v3143_v47 = vsub.s32 32, %v3142_v16  ;;  %v3147_v41 = vsub.s32 4294967266, %v3142_v16  ;;  %v3307_v10 = vadd.s32 1, %v5424_v45  ;;  %v2162_v25 = vrot.slane %v5170_v24, %v4783_v36  ;;  %v5486_v32 = vpop.permute.xlu1 %742 }
 0x13e   : > { %v826_v1 = vrot.slane %v6431_v51, %v4636_v11  ;;  %4184 = vmatmul.mubr.msk.f32.vlgmr.msra.gmra.mrb[0].mxu0 %vm345_vm2, %v2613_v43  ;;  %v2169_v44 = vrot.slane %v5170_v24, %v6427_v34  ;;  %v6434_v4 = vcombine.high %v6433_v12, %v6433_v12  ;;  %v3144_v35 = vshll.u32 %v5374_v5, %v3142_v16  ;;  %v5484_v34 = vpop.permute.xlu0 %763 }
 0x13f   : > { %4192 = vmatpush3.msra.mxu0 %v6414_v62  ;;  %4193 = vmatprep.mubr.msk.f32.mxu0 %vm4512_vm1, %v6415_v53  ;;  %v3145_v36 = vshrl.u32 %v3127_v17, %v3143_v47  ;;  %v3148_v0 = vadd.s32 127, %v3147_v41  ;;  %v2764_v50 = vmul.f32 %v6435_v27, %v5170_v24  ;;  %v6436_v17 = vld [vmem:[#allocation8_spill] sm:$0xff]  ;;  %v2176_v41 = vrot.slane %v5170_v24, %v6428_v52 }
 0x140   : > { %v5466_v30 = vmul.f32 %v826_v1, %v5368_v54  ;;  %v5474_v60 = vrot.slane %v6434_v4, %v6432_v33  ;;  %v3308_v54 = vsel %vm3306_vm12, %v3307_v10, %v5424_v45  ;;  %4201 = vmatprep.subr.mxu0 %v6415_v53  ;;  %2164 = vbcast.lane.b32.xlu1 %v2162_v25, 256  ;;  %4386 = vrsqrt.f32 %v6436_v17  ;;  %v6437_v10 = vld [vmem:[#allocation7_spill] sm:$0xff] }
 0x141   : > { %v3309_v43 = vadd.s32 %v3308_v54, %v3304_v46  ;;  %v3146_v16 = vor.u32 %v3145_v36, %v3144_v35  ;;  %v3149_v51 = vshll.u32 %v3148_v0, 23  ;;  %v698_v45 = vmul.f32 %v676_v15, %v5366_v31  ;;  %2171 = vbcast.lane.b32.xlu0 %v2169_v44, 256  ;;  %v448_v15 = vpop.permute.xlu1 %447  ;;  %v6438_v44 = vld [vmem:[#allocation20_spill] sm:$0xff] }
 0x142   : > { %v522_v5 = vrot.slane %v5474_v60, %v4636_v11  ;;  %v650_v1 = vcombine.high %v4787_v38, %v4787_v38  ;;  %4194 = vmatmul.mubr.msk.f32.vlgmr.msra.gmra.mrb[2].mxu0 %vm345_vm2, %v2764_v50  ;;  %v5503_v25 = vrot.slane %v6437_v10, %v6432_v33  ;;  %v1378_v12 = vand.u32 2147483647, %v5435_v29  ;;  %v5522_v54 = vpop.permute.xlu0 %1981 }
 0x143   : > { %v3310_v47 = vadd.s32 536870912, %v3309_v43  ;;  %v1380_v31 = vcvt.s32.f32 %v5331_v58  ;;  %4202 = vmatpush3.msra.mxu0 %v6414_v62  ;;  %4203 = vmatprep.mubr.msk.f32.mxu0 %vm4512_vm1, %v6415_v53  ;;  %v3150_v38 = vor.u32 4788187, %v3149_v51  ;;  %v2920_v52 = vmul.f32 %v6438_v44, %v5170_v24 }
 0x144   : > { %v544_v46 = vmul.f32 %v522_v5, %v5387_v26  ;;  %4211 = vmatprep.subr.mxu0 %v6415_v53  ;;  %2178 = vbcast.lane.b32.xlu1 %v2176_v41, 256  ;;  %v496_v58 = vcombine.high %v4793_v40, %v4793_v40  ;;  %v3153_v35 = vcvt.s32.f32 %v3146_v16  ;;  %v3157_v36 = vsub.s32 4, %v5352_v23 }
 0x145   : > { %v5513_v26 = vshrl.u32 %v3310_v47, 30  ;;  %v3151_v29 = vand.u32 2147483647, %v3150_v38  ;;  %v782_v0 = vcombine.high %v6437_v10, %v6437_v10  ;;  %v680_v50 = vrot.slane %v650_v1, %v4636_v11 }
 0x146   : > { %v5515_v4 = vadd.f32 %v698_v45, %v544_v46  ;;  %4204 = vmatmul.mubr.msk.f32.vlgmr.msra.gmra.mrb[4].mxu0 %vm345_vm2, %v2920_v52  ;;  %v652_v5 = vcombine.high %v6429_v2, %v6429_v2  ;;  %v526_v40 = vrot.slane %v496_v58, %v4636_v11  ;;  %v6439_v45 = vld [vmem:[#allocation16_spill] sm:$0xff]  ;;  %v1381_v2 = vmul.f32 %v1380_v31, %v1378_v12 }
 0x147   : > { %v3312_v27 = vshll.u32 %v5513_v26, 30  ;;  %4212 = vmatpush3.msra.mxu0 %v6414_v62  ;;  %4213 = vmatprep.mubr.msk.f32.mxu0 %vm4512_vm1, %v6415_v53  ;;  %v3154_v16 = vmul.f32 %v3153_v35, %v3151_v29  ;;  %v5534_v51 = vrot.slane %v782_v0, %v6432_v33  ;;  %vm1300_vm13 = vcmp.lt.s32.totalorder %v6439_v45, 0  ;;  %v5549_v44 = vpop.permute.xlu1 %749  ;;  %v5561_v0 = vpop.permute.xlu0 %1995 }
 0x148   : > { %v699_v1 = vmul.f32 %v680_v50, %v5385_v9  ;;  %v545_v41 = vmul.f32 %v526_v40, %v5451_v19  ;;  %4221 = vmatprep.subr.mxu0 %v6415_v53  ;;  %v6440_v46 = vand.u32 2147483647, %v6426_v13  ;;  %vm3073_vm15 = vcmp.lt.s32.totalorder %v6426_v13, 0 }
 0x149   : > { %v5537_v47 = vsub.s32 %v3309_v43, %v3312_v27  ;;  %v3155_v38 = vxor.u32 2147483648, %v3154_v16  ;;  %v3158_v52 = vsel %vm3073_vm15, %v3157_v36, %v5352_v23  ;;  %v684_v19 = vrot.slane %v652_v5, %v4636_v11 }
 0x14a   : > { %vm5544_vm14 = vcmp.le.f32.partialorder %v6440_v46, 0.7853982  ;;  %v4387_v43 = vpop.eup %4386  ;;  %v5554_v58 = vadd.f32 %v699_v1, %v545_v41  ;;  %v834_v31 = vrot.slane %v5503_v25, %v4636_v11  ;;  %v498_v35 = vcombine.high %v5474_v60, %v5474_v60 }
 0x14b   : > { %v3315_v9 = vsub.s32 0, %v5537_v47  ;;  %v3156_v12 = vsel %vm3073_vm15, %v3155_v38, %v3154_v16  ;;  %v373_v29 = vmul.f32 %v4387_v43, %v6436_v17  ;;  %vm374_vm0 = vcmp.eq.f32.partialorder %v6436_v17, inf }
 0x14c   : > { %v3159_v23 = vsel %vm5544_vm14, %v6426_v13, %v3156_v12  ;;  %v377_v27 = vand.u32 2147483648, %v6436_v17  ;;  %v859_v50 = vmul.f32 %v834_v31, %v5486_v32  ;;  %vm376_vm3 = vcmp.eq.f32.partialorder %v6436_v17, 0.0  ;;  %v5580_v32 = vpop.permute.xlu1 %1967 }
 0x14d   : > { %v4139_v36 = vmin.u32 %v3315_v9, %v5537_v47  ;;  %4388 = vcosq.f32 %v3159_v23  ;;  %v375_v5 = vsel %vm374_vm0, %v6436_v17, %v373_v29  ;;  %v530_v16 = vrot.slane %v498_v35, %v4636_v11 }
 0x14e   : > { %4390 = vsinq.f32 %v3159_v23  ;;  %v5572_v40 = vsel %vm376_vm3, %v377_v27, %v375_v5  ;;  %v1382_v1 = vxor.u32 2147483648, %v1381_v2  ;;  %v700_v41 = vmul.f32 %v684_v19, %v5414_v61 }
 0x14f   : > { %v3317_v60 = vclz %v4139_v36  ;;  %v2026_v46 = vrot.slane %v5572_v40, %v6432_v33  ;;  %v2019_v38 = vcombine.high %v5572_v40, %v5572_v40  ;;  %v546_v9 = vmul.f32 %v530_v16, %v448_v15 }
 0x150   : > { %v5584_v12 = vadd.f32 %v5325_v48, %v5246_v6  ;;  %v5588_v31 = vadd.f32 %v5362_v55, %v5253_v14  ;;  %v6443_v61 = vand.u32 2147483647, %v6439_v45  ;;  %v3160_v29 = vsel %vm5544_vm14, 0, %v3158_v52  ;;  %v5602_v6 = vpop.permute.xlu0 %2002 }
 0x151   : > { %v4140_v43 = vadd.s32 4294967294, %v3317_v60  ;;  %v5599_v35 = vrot.slane %v2026_v46, %v6432_v33  ;;  %v2033_v15 = vrot.slane %v2019_v38, %v6432_v33  ;;  %v5604_v48 = vadd.f32 %v700_v41, %v546_v9 }
 0x152   : > { %vm5592_vm4 = vcmp.le.f32.partialorder %v6443_v61, 0.7853982  ;;  %v2034_v14 = vcombine.high %v2026_v46, %v2026_v46  ;;  %v5607_v55 = vadd.f32 %v859_v50, %v5447_v59  ;;  %v1383_v23 = vsel %vm1300_vm13, %v1382_v1, %v1381_v2  ;;  %v5620_v59 = vpop.permute.xlu1 %1974 }
 0x153   : > { %vm4141_vm5 = vcmp.lt.s32.totalorder %v4140_v43, 0  ;;  %v5612_v10 = vrot.slane %v2033_v15, %v6432_v33  ;;  %v2035_v52 = vcombine.high %v2033_v15, %v2033_v15  ;;  %v3305_v27 = vadd.s32 %v5423_v22, %v5420_v57  ;;  %6446 = vst [vmem:[#allocation11_spill] sm:$0xff] %v5620_v59 }
 0x154   : > { %v3320_v36 = vsel %vm4141_vm5, 0, %v4140_v43  ;;  %v390_v16 = vmax.f32 %v5572_v40, 1e-12  ;;  %v3164_v41 = vand.u32 3, %v3160_v29  ;;  %v5624_v38 = vrot.slane %v2034_v14, %v6432_v33  ;;  %v5629_v22 = vpop.permute.xlu0 %2009 }
 0x155   : > { %v3321_v5 = vsub.s32 32, %v3320_v36  ;;  %v3325_v60 = vsub.s32 4294967266, %v3320_v36  ;;  %v5618_v46 = vrot.slane %v2035_v52, %v6432_v33  ;;  %v3322_v2 = vshll.u32 %v5537_v47, %v3320_v36  ;;  %v6447_v47 = vld [vmem:[#allocation17_spill] sm:$0xff] }
 0x156   : > { %v1386_v57 = vsel %vm5592_vm4, %v6439_v45, %v1383_v23  ;;  %4392 = vrcp.f32 %v390_v16  ;;  %vm3169_vm6 = vcmp.eq.s32.totalorder %v3164_v41, 2  ;;  %v1384_v36 = vsub.s32 4, %v6447_v47 }
 0x157   : > { %v3323_v50 = vshrl.u32 %v3305_v27, %v3321_v5  ;;  %v3326_v1 = vadd.s32 127, %v3325_v60  ;;  %v4389_v43 = vpop.eup %4388  ;;  %vm3166_vm7 = vcmp.eq.s32.totalorder %v3164_v41, 0  ;;  %4394 = vcosq.f32 %v1386_v57  ;;  %v5632_v60 = vpop.permute.xlu1 %1988 }
 0x158   : > { %v4391_v9 = vpop.eup %4390  ;;  %v3170_v61 = vxor.u32 2147483648, %v4389_v43  ;;  %vm3165_vm8 = vcmp.lt.s32.totalorder %v3164_v41, 2  ;;  %6448 = vst [vmem:[#allocation12_spill] sm:$0xff] %v5632_v60  ;;  %vm3163_vm9 = vweird.f32 %v6426_v13  ;;  %4396 = vsinq.f32 %v1386_v57  ;;  %v5635_v16 = vpop.permute.xlu0 %2016 }
 0x159   : > { %v3324_v29 = vor.u32 %v3323_v50, %v3322_v2  ;;  %v3327_v15 = vshll.u32 %v3326_v1, 23  ;;  %v3167_v52 = vxor.u32 2147483648, %v4391_v9  ;;  %6449 = vst [vmem:[#allocation13_spill] sm:$0xff] %v5635_v16  ;;  %v1385_v50 = vsel %vm1300_vm13, %v1384_v36, %v6447_v47 }
 0x15a   : > { %v3171_v27 = vsel %vm3169_vm6, %v3170_v61, %v4391_v9  ;;  %v1387_v13 = vsel %vm5592_vm4, 0, %v1385_v50  ;;  %vm3251_vm10 = vcmp.lt.s32.totalorder %v5127_v37, 0  ;;  %v6450_v61 = vand.u32 2147483647, %v5127_v37 }
 0x15b   : > { %v3328_v14 = vor.u32 4788187, %v3327_v15  ;;  %v3168_v5 = vsel %vm3166_vm7, %v4389_v43, %v3167_v52  ;;  %v3331_v59 = vcvt.s32.f32 %v3324_v29  ;;  %v884_v43 = vpop.permute.xlu1 %883  ;;  %v3335_v19 = vsub.s32 4, %v5513_v26 }
 0x15c   : > { %v3172_v23 = vsel %vm3165_vm8, %v3168_v5, %v3171_v27  ;;  %vm5650_vm11 = vcmp.le.f32.partialorder %v6450_v61, 0.7853982  ;;  %v877_v15 = vpop.permute.xlu0 %876  ;;  %v1391_v52 = vand.u32 3, %v1387_v13  ;;  %v6453_v5 = vld [vmem:[#allocation9_spill] sm:$0xff]  ;;  %vm1390_vm14 = vweird.f32 %v6439_v45 }
 0x15d   : > { %v3329_v17 = vand.u32 2147483647, %v3328_v14  ;;  %v3173_v2 = vsel %vm3163_vm9, nan, %v3172_v23  ;;  %v3336_v27 = vsel %vm3251_vm10, %v3335_v19, %v5513_v26  ;;  %v1413_v23 = vmul.f32 -0.1, %v6453_v5 }
 0x15e   : > { %v3174_v1 = vmul.f32 %v3173_v2, %v5170_v24  ;;  %vm1393_vm12 = vcmp.eq.s32.totalorder %v1391_v52, 0  ;;  %vm1396_vm13 = vcmp.eq.s32.totalorder %v1391_v52, 2  ;;  %v813_v19 = vcombine.high %v4765_v28, %v4765_v28 }
 0x15f   : > { %v3332_v9 = vmul.f32 %v3331_v59, %v3329_v17  ;;  %v891_v50 = vpop.permute.xlu1 %890  ;;  %v865_v5 = vadd.f32 %v5466_v30, %v5281_v39  ;;  %vm1392_vm15 = vcmp.lt.s32.totalorder %v1391_v52, 2  ;;  %vm3341_vm5 = vweird.f32 %v5127_v37 }
 0x160   : > { %4214 = vmatmul.mubr.msk.f32.vlgmr.msra.gmra.mrb[6].mxu0 %vm345_vm2, %v3174_v1  ;;  %v4393_v57 = vpop.eup %4392 }
 0x161   : > { %v3333_v41 = vxor.u32 2147483648, %v3332_v9  ;;  %4222 = vmatpush3.msra.mxu0 %v6414_v62  ;;  %4223 = vmatprep.mubr.msk.f32.mxu0 %vm4512_vm1, %v6415_v53  ;;  %v4395_v47 = vpop.eup %4394  ;;  %v392_v36 = vmul.f32 %v4393_v57, %v6430_v8  ;;  %v927_v57 = vmul.f32 %v877_v15, %v5584_v12  ;;  %v929_v28 = vmul.f32 %v891_v50, %v865_v5 }
 0x162   : > { %4231 = vmatprep.subr.mxu0 %v6415_v53  ;;  %v4397_v14 = vpop.eup %4396  ;;  %v1397_v1 = vxor.u32 2147483648, %v4395_v47 }
 0x163   : > { %v3334_v17 = vsel %vm3251_vm10, %v3333_v41, %v3332_v9  ;;  %v943_v2 = vrot.slane %v392_v36, %v6432_v33  ;;  %v936_v9 = vcombine.high %v392_v36, %v392_v36  ;;  %v3338_v41 = vsel %vm5650_vm11, 0, %v3336_v27  ;;  %v898_v16 = vpop.permute.xlu1 %897 }
 0x164   : > { %v3337_v59 = vsel %vm5650_vm11, %v5127_v37, %v3334_v17  ;;  %v905_v17 = vpop.permute.xlu0 %904  ;;  %v1394_v26 = vxor.u32 2147483648, %v4397_v14  ;;  %v928_v27 = vmul.f32 %v884_v43, %v5588_v31  ;;  %v3342_v12 = vand.u32 3, %v3338_v41 }
 0x165   : > { %4398 = vcosq.f32 %v3337_v59  ;;  %v959_v13 = vrot.slane %v943_v2, %v6432_v33  ;;  %v951_v61 = vcombine.high %v943_v2, %v943_v2  ;;  %v931_v2 = vmul.f32 %v905_v17, %v5607_v55 }
 0x166   : > { %4400 = vsinq.f32 %v3337_v59  ;;  %v5674_v59 = vrot.slane %v936_v9, %v6432_v33  ;;  %v1398_v31 = vsel %vm1396_vm13, %v1397_v1, %v4397_v14  ;;  %v812_v43 = vcombine.high %v5503_v25, %v5503_v25 }
 0x167   : > { %v988_v36 = vrot.slane %v959_v13, %v4636_v11  ;;  %v973_v29 = vrot.slane %v951_v61, %v6432_v33  ;;  %v981_v60 = vcombine.high %v959_v13, %v959_v13  ;;  %v1395_v50 = vsel %vm1393_vm12, %v4395_v47, %v1394_v26 }
 0x168   : > { %v966_v15 = vrot.slane %v5674_v59, %v6432_v33  ;;  %vm3347_vm0 = vcmp.eq.s32.totalorder %v3342_v12, 2  ;;  %vm3344_vm3 = vcmp.eq.s32.totalorder %v3342_v12, 0  ;;  %v814_v25 = vcombine.high %v5534_v51, %v5534_v51 }
 0x169   : > { %v5685_v9 = vmul.f32 %v988_v36, %v927_v57  ;;  %v992_v39 = vrot.slane %v973_v29, %v4636_v11  ;;  %v996_v30 = vrot.slane %v981_v60, %v4636_v11  ;;  %v830_v60 = vrot.slane %v813_v19, %v4636_v11 }
 0x16a   : > { %v1004_v41 = vrot.slane %v966_v15, %v4636_v11  ;;  %v838_v1 = vrot.slane %v5534_v51, %v4636_v11  ;;  %v1399_v47 = vsel %vm1392_vm15, %v1395_v50, %v1398_v31  ;;  %vm3343_vm4 = vcmp.lt.s32.totalorder %v3342_v12, 2 }
 0x16b   : > { %v5694_v57 = vmul.f32 %v992_v39, %v928_v27  ;;  %v5696_v17 = vmul.f32 %v996_v30, %v929_v28  ;;  %v842_v27 = vrot.slane %v812_v43, %v4636_v11  ;;  %v858_v19 = vmul.f32 %v830_v60, %v5416_v7  ;;  %v912_v39 = vpop.permute.xlu1 %911 }
 0x16c   : > { %v5699_v36 = vmul.f32 %v1004_v41, %v931_v2  ;;  %v860_v2 = vmul.f32 %v838_v1, %v5549_v44  ;;  %v1400_v51 = vsel %vm1390_vm14, nan, %v1399_v47  ;;  %v846_v12 = vrot.slane %v814_v25, %v4636_v11 }
 0x16d   : > { %v861_v41 = vmul.f32 %v842_v27, %v5449_v20  ;;  %v1414_v31 = vmul.f32 1.442695, %v1413_v23  ;;  %v866_v44 = vadd.f32 %v858_v19, %v5320_v42  ;;  %v983_v43 = vcombine.high %v973_v29, %v973_v29 }
 0x16e   : > { %v862_v7 = vmul.f32 %v846_v12, %v5484_v34  ;;  %v868_v20 = vadd.f32 %v860_v2, %v5515_v4 }
 0x16f   : > { %v4399_v61 = vpop.eup %4398  ;;  %v869_v37 = vadd.f32 %v861_v41, %v5554_v58  ;;  %v1000_v58 = vrot.slane %v983_v43, %v4636_v11  ;;  %v930_v34 = vmul.f32 %v898_v16, %v866_v44  ;;  %v926_v23 = vpop.permute.xlu1 %925  ;;  %4402 = vpow2.f32 %v1414_v31 }
 0x170   : > { %v4401_v55 = vpop.eup %4400  ;;  %v3348_v13 = vxor.u32 2147483648, %v4399_v61  ;;  %v870_v42 = vadd.f32 %v862_v7, %v5604_v48  ;;  %v6454_v48 = vld [vmem:[#allocation15_spill] sm:$0xff] }
 0x171   : > { %v3345_v5 = vxor.u32 2147483648, %v4401_v55  ;;  %vm1296_vm6 = vcmp.lt.f32.partialorder %v6454_v48, 4.0 }
 0x172   : > { %v3349_v14 = vsel %vm3347_vm0, %v3348_v13, %v4401_v55  ;;  %v982_v55 = vcombine.high %v966_v15, %v966_v15  ;;  %v1401_v15 = vadd.f32 1.0, %v1400_v51  ;;  %v932_v13 = vmul.f32 %v912_v39, %v868_v20 }
 0x173   : > { %v3346_v26 = vsel %vm3344_vm3, %v4399_v61, %v3345_v5  ;;  %v919_v61 = vpop.permute.xlu0 %918  ;;  %v5735_v5 = vmul.f32 0.7853982, %v5572_v40  ;;  %v934_v25 = vmul.f32 %v926_v23, %v870_v42 }
 0x174   : > { %v3350_v28 = vsel %vm3343_vm4, %v3346_v26, %v3349_v14  ;;  %v1012_v45 = vrot.slane %v982_v55, %v4636_v11  ;;  %v933_v50 = vmul.f32 %v919_v61, %v869_v37  ;;  %v1402_v60 = vmul.f32 0.5, %v1401_v15 }
 0x175   : > { %v3351_v30 = vsel %vm3341_vm5, nan, %v3350_v28  ;;  %v1192_v1 = vand.u32 2139095040, %v5735_v5  ;;  %v1189_v55 = vand.u32 2147483647, %v5735_v5  ;;  %vm1191_vm14 = vcmp.lt.s32.totalorder %v5735_v5, 0 }
 0x176   : > { %v3352_v52 = vmul.f32 %v3351_v30, %v5170_v24  ;;  %v952_v24 = vcombine.high %v5674_v59, %v5674_v59  ;;  %v5729_v4 = vmul.f32 %v1012_v45, %v933_v50  ;;  %v5732_v59 = vmul.f32 %v1000_v58, %v930_v34 }
 0x177   : > { %v1193_v27 = vshrl.u32 %v1192_v1, 23  ;;  %v1403_v28 = vsel %vm1296_vm6, %v1402_v60, 0.0  ;;  %v1196_v61 = vand.u32 8388607, %v1189_v55  ;;  %vm5806_vm15 = vcmp.le.f32.partialorder %v1189_v55, 0.7853982 }
 0x178   : > { %4219 = vmatmul.mubr.msk.f32.vlgmr.msra.gmra.mrb[6].mxu1 %vm345_vm2, %v3352_v52  ;;  %v980_v29 = vrot.slane %v952_v24, %v6432_v33  ;;  %v1404_v39 = vmul.f32 %v6430_v8, %v1403_v28  ;;  %vm1281_vm5 = vweird.f32 %v5735_v5  ;;  %vm1187_vm6 = vcmp.lt.f32.partialorder %v5572_v40, 4.0 }
 0x179   : > { %4227 = vmatpush3.msra.mxu1 %v6414_v62  ;;  %4228 = vmatprep.mubr.msk.f32.mxu1 %vm4512_vm1, %v6415_v53  ;;  %v4106_v2 = vadd.s32 4294967169, %v1193_v27  ;;  %v4403_v41 = vpop.eup %4402  ;;  %v1197_v42 = vor.u32 8388608, %v1196_v61 }
 0x17a   : > { %4236 = vmatprep.subr.mxu1 %v6415_v53  ;;  %v1008_v14 = vrot.slane %v980_v29, %v4636_v11  ;;  %v984_v16 = vcombine.high %v980_v29, %v980_v29  ;;  %v5747_v12 = vmul.f32 %v4403_v41, %v1404_v39 }
 0x17b   : > { %v1199_v30 = vadd.s32 1, %v4106_v2 }
 0x17c   : > { %v5740_v47 = vmul.f32 %v1008_v14, %v932_v13  ;;  %v1016_v26 = vrot.slane %v984_v16, %v4636_v11 }
 0x17d   : > { %vm1200_vm7 = vcmp.gt.s32.totalorder %v1199_v30, 0 }
 0x17e   : > { %v5743_v19 = vmul.f32 %v1016_v26, %v934_v25  ;;  %v1201_v51 = vsel %vm1200_vm7, %v1199_v30, 0  ;;  %vm1661_vm7 = vcmask 1041409  }
 0x17f   : > { %v1203_v52 = vand.u32 31, %v1201_v51  ;;  %v1202_v37 = vshrl.u32 %v1201_v51, 5 }
 0x181   : > { %v1204_v31 = vsub.s32 32, %v1203_v52  ;;  %v1206_v7 = vshll.u32 %v6397_v3, %v1203_v52  ;;  %v1209_v44 = vshll.u32 %v6398_v18, %v1203_v52  ;;  %v1212_v15 = vshll.u32 %v6399_v49, %v1203_v52 }
 0x182   : > { %v1215_v50 = vshll.u32 %v6400_v21, %v1203_v52  ;;  %v1218_v58 = vshll.u32 %v6401_v56, %v1203_v52  ;;  %vm1221_vm8 = vcmp.lt.s32.totalorder %v1202_v37, 1  ;;  %vm1224_vm9 = vcmp.lt.s32.totalorder %v1202_v37, 4 }
 0x183   : > { %v1207_v43 = vshrl.u32 %v6398_v18, %v1204_v31  ;;  %v1210_v20 = vshrl.u32 %v6399_v49, %v1204_v31  ;;  %v1213_v45 = vshrl.u32 %v6400_v21, %v1204_v31  ;;  %v1216_v24 = vshrl.u32 %v6401_v56, %v1204_v31 }
 0x184   : > { %v1219_v34 = vshrl.u32 %v6424_v63, %v1204_v31  ;;  %v1205_v25 = vshrl.u32 %v6397_v3, %v1204_v31  ;;  %vm1223_vm10 = vcmp.lt.s32.totalorder %v1202_v37, 3  ;;  %vm1222_vm11 = vcmp.lt.s32.totalorder %v1202_v37, 2 }
 0x185   : > { %v1208_v23 = vor.u32 %v1207_v43, %v1206_v7  ;;  %v1211_v29 = vor.u32 %v1210_v20, %v1209_v44  ;;  %v1214_v13 = vor.u32 %v1213_v45, %v1212_v15  ;;  %v1217_v60 = vor.u32 %v1216_v24, %v1215_v50 }
 0x186   : > { %v1220_v18 = vor.u32 %v1219_v34, %v1218_v58  ;;  %v1237_v63 = vshll.u32 %v1197_v42, 8  ;;  %v2064_v20 = vcombine.high %v5599_v35, %v5599_v35  ;;  %v2071_v24 = vrot.slane %v5599_v35, %v4636_v11 }
 0x187   : > { %v1226_v14 = vsel %vm1224_vm9, %v1214_v13, 2102212464  ;;  %v1229_v49 = vsel %vm1221_vm8, %v1208_v23, %v1211_v29  ;;  %v1233_v16 = vsel %vm1221_vm8, %v1211_v29, %v1214_v13  ;;  %v1230_v21 = vsel %vm1224_vm9, %v1217_v60, 920167782 }
 0x188   : > { %v1234_v48 = vsel %vm1224_vm9, %v1220_v18, 1326507024  ;;  %v1231_v56 = vsel %vm1223_vm10, %v1214_v13, %v1230_v21  ;;  %v1225_v26 = vsel %vm1221_vm8, %v1205_v25, %v1208_v23  ;;  %v1227_v27 = vsel %vm1223_vm10, %v1211_v29, %v1226_v14 }
 0x189   : > { %v1235_v1 = vsel %vm1223_vm10, %v1217_v60, %v1234_v48  ;;  %v1232_v28 = vsel %vm1222_vm11, %v1229_v49, %v1231_v56  ;;  %v1228_v52 = vsel %vm1222_vm11, %v1225_v26, %v1227_v27  ;;  %v2079_v50 = vrot.slane %v2064_v20, %v4636_v11  ;;  %v6456_v27 = vld [vmem:[#allocation13_spill] sm:$0xff] }
 0x18a   : > { %v1236_v2 = vsel %vm1222_vm11, %v1233_v16, %v1235_v1  ;;  %v5765_v41 = vmul.u32.u64.low %v1237_v63, %v1232_v28  ;;  %v5766_v51 = vmul.u32.u64.high %v1237_v63, %v1232_v28, %v5765_v41  ;;  %v1244_v61 = vmul.u32 %v1237_v63, %v1228_v52 }
 0x18b   : > { %v5762_v39 = vmul.u32.u64.low %v1237_v63, %v1236_v2  ;;  %v5763_v30 = vmul.u32.u64.high %v1237_v63, %v1236_v2, %v5762_v39  ;;  %v2110_v34 = vadd.f32 %v2079_v50, %v5522_v54  ;;  %v2108_v42 = vadd.f32 %v2071_v24, %v5580_v32  ;;  %v6455_v63 = vld [vmem:[#allocation11_spill] sm:$0xff] }
 0x18c   : > { %v1247_v3 = vadd.s32 1, %v5766_v51  ;;  %v2065_v23 = vcombine.high %v5612_v10, %v5612_v10  ;;  %v2087_v13 = vrot.slane %v5612_v10, %v4636_v11  ;;  %v2067_v60 = vcombine.high %v5618_v46, %v5618_v46 }
 0x18d   : > { %vm1246_vm12 = vc.u32 %v5763_v30, %v5765_v41  ;;  %v2091_v35 = vrot.slane %v5618_v46, %v4636_v11  ;;  %v2118_v49 = vmul.f32 0.5, %v2110_v34  ;;  %v2116_v54 = vmul.f32 0.5, %v2108_v42 }
 0x18e   : > { %v1248_v31 = vsel %vm1246_vm12, %v1247_v3, %v5766_v51  ;;  %v2112_v14 = vadd.f32 %v2087_v13, %v5561_v0  ;;  %v2095_v32 = vrot.slane %v2065_v23, %v4636_v11  ;;  %v2075_v25 = vrot.slane %v5624_v38, %v4636_v11  ;;  %v6457_v13 = vld [vmem:[#allocation12_spill] sm:$0xff] }
 0x18f   : > { %v1249_v37 = vadd.s32 %v1248_v31, %v1244_v61  ;;  %v2113_v16 = vadd.f32 %v2091_v35, %v5602_v6  ;;  %v2099_v10 = vrot.slane %v2067_v60, %v4636_v11  ;;  %v1245_v0 = vadd.s32 %v5765_v41, %v5763_v30 }
 0x190   : > { %v2114_v48 = vadd.f32 %v2095_v32, %v5629_v22  ;;  %v2120_v46 = vmul.f32 0.5, %v2112_v14  ;;  %v2109_v26 = vadd.f32 %v2075_v25, %v6455_v63  ;;  %v4116_v51 = vadd.f32 -1.0, %v2118_v49 }
 0x191   : > { %v1250_v7 = vadd.s32 536870912, %v1249_v37  ;;  %v2115_v28 = vadd.f32 %v2099_v10, %v6456_v27  ;;  %v2121_v52 = vmul.f32 0.5, %v2113_v16  ;;  %v4114_v3 = vadd.f32 -1.0, %v2116_v54 }
 0x192   : > { %v2122_v61 = vmul.f32 0.5, %v2114_v48  ;;  %v2066_v31 = vcombine.high %v5624_v38, %v5624_v38  ;;  %v4118_v30 = vadd.f32 -1.0, %v2120_v46  ;;  %v2117_v41 = vmul.f32 0.5, %v2109_v26 }
 0x193   : > { %v5771_v44 = vshrl.u32 %v1250_v7, 30  ;;  %v2123_v7 = vmul.f32 0.5, %v2115_v28  ;;  %v2296_v20 = vmul.f32 %v4116_v51, %v4116_v51  ;;  %v2294_v50 = vmul.f32 %v4114_v3, %v4114_v3 }
 0x194   : > { %v4120_v24 = vadd.f32 -1.0, %v2122_v61  ;;  %v2298_v42 = vmul.f32 %v4118_v30, %v4118_v30  ;;  %v4115_v23 = vadd.f32 -1.0, %v2117_v41  ;;  %v6460_v61 = vld [vmem:[#allocation8_spill] sm:$0xff]  ;;  %v4094_v30 = vclamps-f32 %v5685_v9, 1.0 }
 0x195   : > { %v1252_v43 = vshll.u32 %v5771_v44, 30  ;;  %v2302_v14 = vmul.f32 -0.3, %v2294_v50  ;;  %v2304_v35 = vmul.f32 -0.3, %v2296_v20  ;;  %v4095_v41 = vclamps-f32 %v5694_v57, 1.0 }
 0x196   : > { %v2300_v49 = vmul.f32 %v4120_v24, %v4120_v24  ;;  %v2306_v32 = vmul.f32 -0.3, %v2298_v42  ;;  %v2295_v16 = vmul.f32 %v4115_v23, %v4115_v23  ;;  %v1678_v24 = vmul.f32 -1.0, %v4094_v30 }
 0x197   : > { %v1253_v15 = vsub.s32 %v1249_v37, %v1252_v43  ;;  %v2314_v63 = vmul.f32 1.442695, %v2304_v35  ;;  %v4100_v9 = vclamps-f32 %v5729_v4, 1.0  ;;  %v4097_v57 = vclamps-f32 %v5732_v59, 1.0  ;;  %v5836_v59 = vpop.permute.xlu0 %2129 }
 0x198   : > { %v2308_v26 = vmul.f32 -0.3, %v2300_v49  ;;  %v2318_v27 = vmul.f32 1.442695, %v2306_v32  ;;  %v2303_v28 = vmul.f32 -0.3, %v2295_v16 }
 0x199   : > { %v1255_v45 = vsub.s32 0, %v1253_v15  ;;  %v1681_v49 = vmul.f32 -1.0, %v4097_v57  ;;  %vm1663_vm8 = vcmask 1042434   ;;  %vm1665_vm9 = vcmask 1043459  }
 0x19a   : > { %v2322_v51 = vmul.f32 1.442695, %v2308_v26  ;;  %vm1667_vm10 = vcmask 1044484   ;;  %vm1669_vm11 = vcmask 1045509   ;;  %vm1671_vm12 = vcmask 1046534  }
 0x19b   : > { %v4107_v58 = vmin.u32 %v1255_v45, %v1253_v15  ;;  %v4119_v45 = vadd.f32 -1.0, %v2121_v52  ;;  %v2312_v52 = vmul.f32 1.442695, %v2303_v28 }
 0x19d   : > { %v1257_v29 = vclz %v4107_v58 }
 0x19f   : > { %v4108_v18 = vadd.s32 4294967294, %v1257_v29  ;;  %v4121_v29 = vadd.f32 -1.0, %v2123_v7  ;;  %v4096_v7 = vclamps-f32 %v5696_v17, 1.0 }
 0x1a1   : > { %vm4109_vm13 = vcmp.lt.s32.totalorder %v4108_v18, 0  ;;  %v2301_v25 = vmul.f32 %v4121_v29, %v4121_v29  ;;  %v1680_v23 = vmul.f32 -1.0, %v4096_v7 }
 0x1a2   : > { %v1260_v21 = vsel %vm4109_vm13, 0, %v4108_v18  ;;  %v2299_v18 = vmul.f32 %v4119_v45, %v4119_v45  ;;  %vm1673_vm13 = vcmask 1047559  }
 0x1a3   : > { %v1261_v56 = vsub.s32 32, %v1260_v21  ;;  %v1265_v1 = vsub.s32 4294967266, %v1260_v21  ;;  %v1262_v2 = vshll.u32 %v1253_v15, %v1260_v21  ;;  %v2083_v15 = vrot.slane %v2066_v31, %v4636_v11 }
 0x1a4   : > { %v2309_v55 = vmul.f32 -0.3, %v2301_v25  ;;  %v1409_v31 = vmul.f32 -0.1, %v6460_v61  ;;  %v5845_v16 = vadd.f32 1.0, %v1680_v23  ;;  %v5849_v21 = vadd.f32 1.0, %v4094_v30  ;;  %v2144_v61 = vpop.permute.xlu0 %2143 }
 0x1a5   : > { %v1263_v39 = vshrl.u32 %v1245_v0, %v1261_v56  ;;  %v1266_v6 = vadd.s32 127, %v1265_v1  ;;  %v2111_v60 = vadd.f32 %v2083_v15, %v6457_v13  ;;  %v1275_v0 = vsub.s32 4, %v5771_v44 }
 0x1a6   : > { %v2307_v56 = vmul.f32 -0.3, %v2299_v18  ;;  %v2310_v1 = vmul.f32 1.442695, %v2302_v14  ;;  %v1410_v20 = vmul.f32 1.442695, %v1409_v31 }
 0x1a7   : > { %v1264_v22 = vor.u32 %v1263_v39, %v1262_v2  ;;  %v1267_v37 = vshll.u32 %v1266_v6, 23  ;;  %v2119_v10 = vmul.f32 0.5, %v2111_v60  ;;  %v1276_v39 = vsel %vm1191_vm14, %v1275_v0, %v5771_v44 }
 0x1a8   : > { %v2320_v6 = vmul.f32 1.442695, %v2307_v56  ;;  %v1278_v3 = vsel %vm5806_vm15, 0, %v1276_v39  ;;  %v4098_v44 = vclamps-f32 %v5699_v36, 1.0  ;;  %v1679_v15 = vmul.f32 -1.0, %v4095_v41 }
 0x1a9   : > { %v1268_v43 = vor.u32 4788187, %v1267_v37  ;;  %v1271_v34 = vcvt.s32.f32 %v1264_v22  ;;  %v4117_v2 = vadd.f32 -1.0, %v2119_v10  ;;  %v2324_v22 = vmul.f32 1.442695, %v2309_v55 }
 0x1aa   : > { %v4099_v36 = vclamps-f32 %v5740_v47, 1.0  ;;  %v4101_v13 = vclamps-f32 %v5743_v19, 1.0  ;;  %v5834_v14 = vadd.f32 1.0, %v1678_v24  ;;  %v1684_v47 = vmul.f32 -1.0, %v4100_v9 }
 0x1ab   : > { %v1269_v58 = vand.u32 2147483647, %v1268_v43  ;;  %v2297_v37 = vmul.f32 %v4117_v2, %v4117_v2  ;;  %v1282_v43 = vand.u32 3, %v1278_v3  ;;  %v5841_v19 = vadd.f32 1.0, %v1679_v15  ;;  %v2137_v3 = vpop.permute.xlu1 %2136 }
 0x1ac   : > { %v1685_v0 = vmul.f32 -1.0, %v4101_v13  ;;  %v5865_v28 = vadd.f32 1.0, %v1684_v47  ;;  %v5867_v55 = vadd.f32 1.0, %v1681_v49  ;;  %v5884_v31 = vadd.f32 1.0, %v4097_v57 }
 0x1ad   : > { %v1272_v38 = vmul.f32 %v1271_v34, %v1269_v58  ;;  %v2305_v50 = vmul.f32 -0.3, %v2297_v37  ;;  %v1682_v34 = vmul.f32 -1.0, %v4098_v44  ;;  %vm1287_vm0 = vcmp.eq.s32.totalorder %v1282_v43, 2 }
 0x1ae   : > { %vm1284_vm3 = vcmp.eq.s32.totalorder %v1282_v43, 0  ;;  %vm1283_vm4 = vcmp.lt.s32.totalorder %v1282_v43, 2  ;;  %6464 = vst [vmem:[#allocation19_spill] sm:$0xff] %v5865_v28  ;;  %v5888_v37 = vadd.f32 1.0, %v1685_v0  ;;  %v5911_v24 = vadd.f32 1.0, %v4101_v13 }
 0x1af   : > { %v1273_v54 = vxor.u32 2147483648, %v1272_v38  ;;  %v2316_v18 = vmul.f32 1.442695, %v2305_v50  ;;  %v5843_v32 = vadd.f32 1.0, %v1682_v34  ;;  %v5909_v50 = vadd.f32 1.0, %v4099_v36 }
 0x1b0   : > { %6466 = vst [vmem:[#allocation20_spill] sm:$0xff] %v5888_v37  ;;  %6469 = vst [vmem:[#allocation9_spill] sm:$0xff] %v5911_v24  ;;  %v5928_v23 = vmul.f32 %v5884_v31, %v5884_v31 }
 0x1b1   : > { %v1274_v48 = vsel %vm1191_vm14, %v1273_v54, %v1272_v38  ;;  %vm3927_vm14 = vcmask 15360  }
 0x1b2   : > { %v1277_v46 = vsel %vm5806_vm15, %v5735_v5, %v1274_v48  ;;  %v1683_v48 = vmul.f32 -1.0, %v4099_v36  ;;  %v5855_v5 = vmul.f32 %v5834_v14, %v5834_v14  ;;  %vm3929_vm15 = vcmask 23552  }
 0x1b3   : > { %4404 = vcosq.f32 %v1277_v46 }
 0x1b4   : > { %4406 = vsinq.f32 %v1277_v46  ;;  %v5857_v46 = vadd.f32 1.0, %v4095_v41  ;;  %v5890_v41 = vadd.f32 1.0, %v4100_v9 }
 0x1b5   : > { %4408 = vpow2.f32 %v2310_v1 }
 0x1b6   : > { %4410 = vpow2.f32 %v2314_v63  ;;  %v5859_v63 = vadd.f32 1.0, %v4098_v44  ;;  %6467 = vst [vmem:[#allocation16_spill] sm:$0xff] %v5890_v41  ;;  %v5899_v40 = vmul.f32 %v5857_v46, %v5857_v46 }
 0x1b7   : > { %4412 = vpow2.f32 %v2318_v27  ;;  %v5863_v27 = vadd.f32 1.0, %v4096_v7  ;;  %v5895_v7 = vmul.f32 %v5849_v21, %v5849_v21 }
 0x1b8   : > { %4414 = vpow2.f32 %v2320_v6  ;;  %v5873_v6 = vmul.f32 %v5841_v19, %v5841_v19  ;;  %v5932_v36 = vmul.f32 %v5859_v63, %v5859_v63 }
 0x1b9   : > { %4416 = vpow2.f32 %v2322_v51  ;;  %v5877_v51 = vmul.f32 %v5843_v32, %v5843_v32 }
 0x1ba   : > { %4418 = vpow2.f32 %v2312_v52  ;;  %v5881_v52 = vmul.f32 %v5845_v16, %v5845_v16 }
 0x1bb   : > { %4420 = vpow2.f32 %v2324_v22  ;;  %v5886_v22 = vadd.f32 1.0, %v1683_v48  ;;  %v5949_v48 = vmul.f32 %v5911_v24, %v5911_v24 }
 0x1bc   : > { %4422 = vpow2.f32 %v1410_v20  ;;  %v5903_v20 = vmul.f32 %v5865_v28, %v5865_v28 }
 0x1bd   : > { %v4405_v45 = vpop.eup %4404  ;;  %4424 = vpow2.f32 %v2316_v18  ;;  %v5920_v57 = vmul.f32 %v5886_v22, %v5886_v22  ;;  %6474 = vst [vmem:[#allocation8_spill] sm:$0xff] %v5949_v48 }
 0x1be   : > { %v4407_v58 = vpop.eup %4406  ;;  %v1288_v42 = vxor.u32 2147483648, %v4405_v45  ;;  %6468 = vst [vmem:[#allocation17_spill] sm:$0xff] %v5903_v20 }
 0x1bf   : > { %v1285_v29 = vxor.u32 2147483648, %v4407_v58  ;;  %v5829_v17 = vpop.eup %4408 }
 0x1c0   : > { %v1289_v60 = vsel %vm1287_vm0, %v1288_v42, %v4407_v58  ;;  %v5832_v38 = vpop.eup %4410  ;;  %v5916_v58 = vmul.f32 %v5863_v27, %v5863_v27  ;;  %v5924_v42 = vmul.f32 %v5888_v37, %v5888_v37  ;;  %vm3931_vm0 = vcmask 31744  }
 0x1c1   : > { %v1286_v4 = vsel %vm1284_vm3, %v4405_v45, %v1285_v29  ;;  %v5838_v35 = vpop.eup %4412  ;;  %v5907_v45 = vmul.f32 %v5867_v55, %v5867_v55  ;;  %vm3933_vm3 = vcmask 39936  }
 0x1c2   : > { %6461 = vst [vmem:[#allocation18_spill] sm:$0xff] %v5838_v35  ;;  %v1290_v54 = vsel %vm1283_vm4, %v1286_v4, %v1289_v60  ;;  %v5847_v10 = vpop.eup %4414  ;;  %6470 = vst [vmem:[#allocation15_spill] sm:$0xff] %v5924_v42  ;;  %v2151_v60 = vpop.permute.xlu1 %2150  ;;  %vm3935_vm4 = vcmask 48128  }
 0x1c3   : > { %v1291_v25 = vsel %vm1281_vm5, nan, %v1290_v54  ;;  %6462 = vst [vmem:[#allocation6_spill] sm:$0xff] %v5847_v10  ;;  %v5851_v1 = vpop.eup %4416  ;;  %v1423_v4 = vpop.permute.xlu0 %1422  ;;  %v5941_v54 = vmul.f32 %v5909_v50, %v5909_v50  ;;  %vm3937_vm5 = vcmask 56320  }
 0x1c4   : > { %v1292_v56 = vadd.f32 1.0, %v1291_v25  ;;  %6463 = vst [vmem:[#allocation10_spill] sm:$0xff] %v5851_v1  ;;  %v5861_v26 = vpop.eup %4418  ;;  %v5945_v25 = vmul.f32 %v5890_v41, %v5890_v41 }
 0x1c5   : > { %v5869_v39 = vpop.eup %4420  ;;  %6472 = vst [vmem:[#allocation13_spill] sm:$0xff] %v5941_v54 }
 0x1c6   : > { %v1293_v2 = vmul.f32 0.5, %v1292_v56  ;;  %6465 = vst [vmem:[#allocation7_spill] sm:$0xff] %v5869_v39  ;;  %v4423_v43 = vpop.eup %4422  ;;  %6473 = vst [vmem:[#allocation12_spill] sm:$0xff] %v5945_v25 }
 0x1c7   : > { %v4425_v0 = vpop.eup %4424  ;;  %v1437_v25 = vpop.permute.xlu0 %1436 }
 0x1c8   : > { %v1294_v30 = vsel %vm1187_vm6, %v1293_v2, 0.0  ;;  %vm3940_vm6 = vcmask 72704  }
 0x1c9   : > { %v1295_v44 = vmul.f32 %v6430_v8, %v1294_v30 }
 0x1cb   : > { %v2188_v15 = vrot.slane %v1295_v44, %v6432_v33  ;;  %v1412_v34 = vmul.f32 %v4423_v43, %v1295_v44  ;;  %v2181_v9 = vcombine.high %v1295_v44, %v1295_v44 }
 0x1cd   : > { %v2204_v29 = vrot.slane %v2188_v15, %v6432_v33  ;;  %v2196_v13 = vcombine.high %v2188_v15, %v2188_v15  ;;  %v1481_v18 = vrot.slane %v1412_v34, %v6432_v33  ;;  %v1474_v47 = vcombine.high %v1412_v34, %v1412_v34 }
 0x1ce   : > { %v5937_v49 = vrot.slane %v2181_v9, %v6432_v33 }
 0x1cf   : > { %v2233_v56 = vrot.slane %v2204_v29, %v4636_v11  ;;  %v2218_v2 = vrot.slane %v2196_v13, %v6432_v33  ;;  %v2226_v30 = vcombine.high %v2204_v29, %v2204_v29  ;;  %v1497_v44 = vrot.slane %v1481_v18, %v6432_v33 }
 0x1d0   : > { %6471 = vst [vmem:[#allocation11_spill] sm:$0xff] %v5937_v49  ;;  %v1489_v43 = vcombine.high %v1481_v18, %v1481_v18  ;;  %v5955_v15 = vrot.slane %v1474_v47, %v6432_v33  ;;  %v5959_v34 = vrot.slane %v5937_v49, %v6432_v33 }
 0x1d1   : > { %v2270_v39 = vmul.f32 %v2233_v56, %v5836_v59  ;;  %v2237_v53 = vrot.slane %v2218_v2, %v4636_v11  ;;  %v2241_v13 = vrot.slane %v2226_v30, %v4636_v11  ;;  %v2228_v29 = vcombine.high %v2218_v2, %v2218_v2  ;;  %v1430_v56 = vpop.permute.xlu1 %1429 }
 0x1d2   : > { %v1526_v62 = vrot.slane %v1497_v44, %v4636_v11  ;;  %v1511_v18 = vrot.slane %v1489_v43, %v6432_v33  ;;  %v1519_v47 = vcombine.high %v1497_v44, %v1497_v44  ;;  %v5970_v1 = vrot.slane %v5955_v15, %v6432_v33 }
 0x1d3   : > { %v2278_v10 = vmul.f32 %v6430_v8, %v2270_v39  ;;  %v2271_v48 = vmul.f32 %v2237_v53, %v2137_v3  ;;  %v2272_v9 = vmul.f32 %v2241_v13, %v2144_v61  ;;  %v2245_v59 = vrot.slane %v2228_v29, %v4636_v11 }
 0x1d4   : > { %v1563_v49 = vmul.f32 %v1526_v62, %v1423_v4  ;;  %v1530_v2 = vrot.slane %v1511_v18, %v4636_v11  ;;  %v1534_v30 = vrot.slane %v1519_v47, %v4636_v11  ;;  %v1521_v54 = vcombine.high %v1511_v18, %v1511_v18 }
 0x1d5   : > { %v2326_v44 = vmul.f32 %v5829_v17, %v2278_v10  ;;  %v2279_v43 = vmul.f32 %v6430_v8, %v2271_v48  ;;  %v2280_v35 = vmul.f32 %v6430_v8, %v2272_v9  ;;  %v2273_v42 = vmul.f32 %v2245_v59, %v2151_v60 }
 0x1d6   : > { %v5980_v53 = vmul.f32 %v1563_v49, %v5747_v12  ;;  %v5982_v39 = vmul.f32 %v1530_v2, %v1430_v56  ;;  %v5984_v3 = vmul.f32 %v1534_v30, %v1437_v25  ;;  %v5987_v62 = vrot.slane %v1521_v54, %v4636_v11 }
 0x1d7   : > { %v2334_v61 = vmul.f32 %v2326_v44, %v5849_v21  ;;  %v2418_v4 = vmul.f32 %v2326_v44, %v5895_v7  ;;  %v2327_v17 = vmul.f32 %v5861_v26, %v2279_v43  ;;  %v2328_v10 = vmul.f32 %v5832_v38, %v2280_v35 }
 0x1d8   : > { %v2281_v60 = vmul.f32 %v6430_v8, %v2273_v42  ;;  %v1587_v49 = vmul.f32 %v5849_v21, %v5980_v53  ;;  %v5998_v25 = vmul.f32 %v5834_v14, %v5980_v53  ;;  %v6002_v54 = vmul.f32 %v5895_v7, %v5980_v53 }
 0x1d9   : > { %v2344_v48 = vsel %vm345_vm2, %v2334_v61, 0.0  ;;  %v2428_v9 = vsel %vm345_vm2, %v2418_v4, 0.0  ;;  %v2335_v26 = vmul.f32 %v2327_v17, %v5857_v46  ;;  %v2419_v38 = vmul.f32 %v2327_v17, %v5899_v40 }
 0x1da   : > { %v2345_v35 = vrot.slane %v2344_v48, 4  ;;  %v2429_v42 = vrot.slane %v2428_v9, 4  ;;  %v2336_v21 = vmul.f32 %v2328_v10, %v5863_v27  ;;  %v2420_v13 = vmul.f32 %v2328_v10, %v5916_v58 }
 0x1db   : > { %v2351_v14 = vsel %vm345_vm2, %v2335_v26, 0.0  ;;  %v2435_v29 = vsel %vm345_vm2, %v2419_v38, 0.0  ;;  %v2329_v7 = vmul.f32 %v4425_v0, %v2281_v60  ;;  %v6013_v18 = vsel %vm345_vm2, %v1587_v49, 0.0 }
 0x1dc   : > { %v2346_v47 = vadd.f32 %v2345_v35, %v2344_v48  ;;  %v2430_v59 = vadd.f32 %v2429_v42, %v2428_v9  ;;  %v2352_v56 = vrot.slane %v2351_v14, 4  ;;  %v2436_v2 = vrot.slane %v2435_v29, 4 }
 0x1dd   : > { %v2358_v30 = vsel %vm345_vm2, %v2336_v21, 0.0  ;;  %v2442_v44 = vsel %vm345_vm2, %v2420_v13, 0.0  ;;  %v2337_v43 = vmul.f32 %v2329_v7, %v5884_v31  ;;  %v2421_v61 = vmul.f32 %v2329_v7, %v5928_v23 }
 0x1de   : > { %v2347_v4 = vrot.slane %v2346_v47, 2  ;;  %v2431_v17 = vrot.slane %v2430_v59, 2  ;;  %v2353_v10 = vadd.f32 %v2352_v56, %v2351_v14  ;;  %v2437_v0 = vadd.f32 %v2436_v2, %v2435_v29 }
 0x1df   : > { %v2359_v49 = vrot.slane %v2358_v30, 4  ;;  %v2443_v26 = vrot.slane %v2442_v44, 4  ;;  %v2365_v48 = vsel %vm345_vm2, %v2337_v43, 0.0  ;;  %v2449_v9 = vsel %vm345_vm2, %v2421_v61, 0.0 }
 0x1e0   : > { %v2348_v35 = vadd.f32 %v2347_v4, %v2346_v47  ;;  %v2432_v42 = vadd.f32 %v2431_v17, %v2430_v59  ;;  %v2354_v21 = vrot.slane %v2353_v10, 2  ;;  %v2438_v13 = vrot.slane %v2437_v0, 2 }
 0x1e1   : > { %v2360_v7 = vadd.f32 %v2359_v49, %v2358_v30  ;;  %v2444_v8 = vadd.f32 %v2443_v26, %v2442_v44  ;;  %v2366_v37 = vrot.slane %v2365_v48, 4  ;;  %v2450_v14 = vrot.slane %v2449_v9, 4 }
 0x1e2   : > { %v2349_v29 = vrot.slane %v2348_v35, 1  ;;  %v2433_v56 = vrot.slane %v2432_v42, 1  ;;  %v2355_v2 = vadd.f32 %v2354_v21, %v2353_v10  ;;  %v2439_v24 = vadd.f32 %v2438_v13, %v2437_v0 }
 0x1e3   : > { %v2361_v43 = vrot.slane %v2360_v7, 2  ;;  %v2445_v20 = vrot.slane %v2444_v8, 2  ;;  %v2367_v61 = vadd.f32 %v2366_v37, %v2365_v48  ;;  %v1598_v0 = vrot.slane %v6013_v18, 4 }
 0x1e4   : > { %v2434_v47 = vadd.f32 %v2433_v56, %v2432_v42  ;;  %v2356_v59 = vrot.slane %v2355_v2, 1  ;;  %v2440_v4 = vrot.slane %v2439_v24, 1  ;;  %v1704_v37 = vsel %vm345_vm2, %v5998_v25, 0.0 }
 0x1e5   : > { %v2362_v30 = vadd.f32 %v2361_v43, %v2360_v7  ;;  %v2446_v44 = vadd.f32 %v2445_v20, %v2444_v8  ;;  %v2368_v49 = vrot.slane %v2367_v61, 2  ;;  %v1599_v8 = vadd.f32 %v1598_v0, %v6013_v18 }
 0x1e6   : > { %v2357_v41 = vadd.f32 %v2356_v59, %v2355_v2  ;;  %v2441_v10 = vadd.f32 %v2440_v4, %v2439_v24  ;;  %v1705_v20 = vrot.slane %v1704_v37, 4  ;;  %v1796_v43 = vsel %vm345_vm2, %v6002_v54, 0.0 }
 0x1e7   : > { %v2363_v48 = vrot.slane %v2362_v30, 1  ;;  %v1600_v25 = vrot.slane %v1599_v8, 2  ;;  %v1797_v4 = vrot.slane %v1796_v43, 4 }
 0x1e8   : > { %v2756_v60 = vpop.f32.mrb[0].mxu1  ;;  %v1706_v2 = vadd.f32 %v1705_v20, %v1704_v37 }
 0x1e9   : > { %v4190_v38 = vpop.f32.mrb[1].mxu1  ;;  %3874 = vrot.lane.b32.xlu0 %v2756_v60, %s4519_s26  ;;  %v2350_v60 = vadd.f32 %v2349_v29, %v2348_v35  ;;  %v2369_v35 = vadd.f32 %v2368_v49, %v2367_v61  ;;  %v2364_v24 = vadd.f32 %v2363_v48, %v2362_v30  ;;  %s264_s26 = scalar_lea.vmem [#allocation3], %s4086_s22 }
 0x1ea   : > { %v2451_v38 = vadd.f32 %v2450_v14, %v2449_v9  ;;  %v2447_v9 = vrot.slane %v2446_v44, 1  ;;  %v1707_v59 = vrot.slane %v1706_v2, 2 }
 0x1eb   : > { %v2408_v13 = vsel %vm1661_vm7, %v2357_v41, %v2350_v60  ;;  %v2370_v29 = vrot.slane %v2369_v35, 1  ;;  %v1878_v41 = vmul.f32 %v5855_v5, %v5980_v53  ;;  %v1572_v5 = vmul.f32 %v5982_v39, %v5747_v12 }
 0x1ec   : > { %v2911_v28 = vpop.f32.mrb[2].mxu1  ;;  %v2452_v26 = vrot.slane %v2451_v38, 2  ;;  %v2448_v14 = vadd.f32 %v2447_v9, %v2446_v44  ;;  %v2409_v61 = vsel %vm1663_vm8, %v2364_v24, %v2408_v13  ;;  %v1708_v49 = vadd.f32 %v1707_v59, %v1706_v2 }
 0x1ed   : > { %v4200_v17 = vpop.f32.mrb[3].mxu1  ;;  %3882 = vrot.lane.b32.xlu0 %v2911_v28, %s4520_s29  ;;  %v2492_v28 = vsel %vm1661_vm7, %v2441_v10, %v2434_v47  ;;  %v1601_v47 = vadd.f32 %v1600_v25, %v1599_v8  ;;  %v1573_v10 = vmul.f32 %v5984_v3, %v5747_v12  ;;  %v1588_v37 = vmul.f32 %v5857_v46, %v1572_v5  ;;  %s3968_s29 = sshll.u32 %s264_s26, 4  ;;  %s6276_s29 = int_to_ptr.vmem [resolvable:$true] %s3968_s29 }
 0x1ee   : > { %v2453_v42 = vadd.f32 %v2452_v26, %v2451_v38  ;;  %v2493_v18 = vsel %vm1663_vm8, %v2448_v14, %v2492_v28  ;;  %v2371_v38 = vadd.f32 %v2370_v29, %v2369_v35  ;;  %v1888_v17 = vsel %vm345_vm2, %v1878_v41, 0.0 }
 0x1ef   : > { %v1889_v54 = vrot.slane %v1888_v17, 4  ;;  %v1602_v53 = vrot.slane %v1601_v47, 1  ;;  %v1798_v26 = vadd.f32 %v1797_v4, %v1796_v43  ;;  %v1695_v48 = vmul.f32 %v5841_v19, %v1572_v5 }
 0x1f0   : > { %v3067_v21 = vpop.f32.mrb[4].mxu1  ;;  %v2454_v56 = vrot.slane %v2453_v42, 1  ;;  %v6035_v30 = vsel %vm1665_vm9, %v2371_v38, %v2409_v61  ;;  %v1787_v9 = vmul.f32 %v5899_v40, %v1572_v5  ;;  %v1879_v13 = vmul.f32 %v5873_v6, %v1572_v5 }
 0x1f1   : > { %v4210_v7 = vpop.f32.mrb[5].mxu1  ;;  %3890 = vrot.lane.b32.xlu0 %v3067_v21, %s4521_s30  ;;  %v1890_v0 = vadd.f32 %v1889_v54, %v1888_v17  ;;  %v1603_v35 = vadd.f32 %v1602_v53, %v1601_v47  ;;  %v1799_v21 = vrot.slane %v1798_v26, 2  ;;  %v1604_v39 = vsel %vm345_vm2, %v1588_v37, 0.0 }
 0x1f2   : > { %v2455_v60 = vadd.f32 %v2454_v56, %v2453_v42  ;;  %v1709_v42 = vrot.slane %v1708_v49, 1  ;;  %v1711_v8 = vsel %vm345_vm2, %v1695_v48, 0.0  ;;  %v1803_v20 = vsel %vm345_vm2, %v1787_v9, 0.0 }
 0x1f3   : > { %v1891_v28 = vrot.slane %v1890_v0, 2  ;;  %v1800_v7 = vadd.f32 %v1799_v21, %v1798_v26  ;;  %v1605_v24 = vrot.slane %v1604_v39, 4  ;;  %v1712_v46 = vrot.slane %v1711_v8, 4 }
 0x1f4   : > { %v6038_v44 = vsel %vm1665_vm9, %v2455_v60, %v2493_v18  ;;  %v1710_v3 = vadd.f32 %v1709_v42, %v1708_v49  ;;  %v1804_v19 = vrot.slane %v1803_v20, 4  ;;  %v1895_v40 = vsel %vm345_vm2, %v1879_v13, 0.0 }
 0x1f5   : > { %v1892_v14 = vadd.f32 %v1891_v28, %v1890_v0  ;;  %v1589_v29 = vmul.f32 %v5863_v27, %v1573_v10  ;;  %v1801_v56 = vrot.slane %v1800_v7, 1  ;;  %v1606_v25 = vadd.f32 %v1605_v24, %v1604_v39 }
 0x1f6   : > { %v1713_v6 = vadd.f32 %v1712_v46, %v1711_v8  ;;  %v1896_v2 = vrot.slane %v1895_v40, 4  ;;  %v1805_v41 = vadd.f32 %v1804_v19, %v1803_v20  ;;  %v1696_v18 = vmul.f32 %v5845_v16, %v1573_v10 }
 0x1f7   : > { %v1893_v43 = vrot.slane %v1892_v14, 1  ;;  %v1611_v61 = vsel %vm345_vm2, %v1589_v29, 0.0  ;;  %v1802_v38 = vadd.f32 %v1801_v56, %v1800_v7  ;;  %v1607_v60 = vrot.slane %v1606_v25, 2  ;;  %v1444_v56 = vpop.permute.xlu1 %1443 }
 0x1f8   : > { %v1714_v47 = vrot.slane %v1713_v6, 2  ;;  %v1897_v59 = vadd.f32 %v1896_v2, %v1895_v40  ;;  %v1806_v17 = vrot.slane %v1805_v41, 2  ;;  %v1612_v54 = vrot.slane %v1611_v61, 4 }
 0x1f9   : > { %v1894_v4 = vadd.f32 %v1893_v43, %v1892_v14  ;;  %v1718_v5 = vsel %vm345_vm2, %v1696_v18, 0.0  ;;  %v1608_v27 = vadd.f32 %v1607_v60, %v1606_v25  ;;  %v1788_v48 = vmul.f32 %v5916_v58, %v1573_v10  ;;  %v1451_v18 = vpop.permute.xlu0 %1450 }
 0x1fa   : > { %v1715_v53 = vadd.f32 %v1714_v47, %v1713_v6  ;;  %v1898_v49 = vrot.slane %v1897_v59, 2  ;;  %v1719_v26 = vrot.slane %v1718_v5, 4  ;;  %v1807_v0 = vadd.f32 %v1806_v17, %v1805_v41 }
 0x1fb   : > { %v1613_v37 = vadd.f32 %v1612_v54, %v1611_v61  ;;  %v1880_v9 = vmul.f32 %v5881_v52, %v1573_v10  ;;  %v1609_v16 = vrot.slane %v1608_v27, 1  ;;  %v1810_v8 = vsel %vm345_vm2, %v1788_v48, 0.0 }
 0x1fc   : > { %v1716_v42 = vrot.slane %v1715_v53, 1  ;;  %v1899_v21 = vadd.f32 %v1898_v49, %v1897_v59  ;;  %v1720_v13 = vadd.f32 %v1719_v26, %v1718_v5  ;;  %v1808_v28 = vrot.slane %v1807_v0, 1 }
 0x1fd   : > { %v1614_v39 = vrot.slane %v1613_v37, 2  ;;  %v1902_v20 = vsel %vm345_vm2, %v1880_v9, 0.0  ;;  %v1610_v7 = vadd.f32 %v1609_v16, %v1608_v27  ;;  %v1811_v29 = vrot.slane %v1810_v8, 4 }
 0x1fe   : > { %v1717_v24 = vadd.f32 %v1716_v42, %v1715_v53  ;;  %v1900_v46 = vrot.slane %v1899_v21, 1  ;;  %v1721_v14 = vrot.slane %v1720_v13, 2  ;;  %v1809_v19 = vadd.f32 %v1808_v28, %v1807_v0 }
 0x1ff   : > { %v1615_v40 = vadd.f32 %v1614_v39, %v1613_v37  ;;  %v1903_v58 = vrot.slane %v1902_v20, 4  ;;  %v1662_v52 = vsel %vm1661_vm7, %v1610_v7, %v1603_v35  ;;  %v1812_v41 = vadd.f32 %v1811_v29, %v1810_v8 }
 0x200   : > { %v1768_v10 = vsel %vm1661_vm7, %v1717_v24, %v1710_v3  ;;  %v1901_v25 = vadd.f32 %v1900_v46, %v1899_v21  ;;  %v1722_v6 = vadd.f32 %v1721_v14, %v1720_v13  ;;  %v1860_v2 = vsel %vm1661_vm7, %v1809_v19, %v1802_v38 }
 0x201   : > { %v1616_v43 = vrot.slane %v1615_v40, 1  ;;  %v1904_v61 = vadd.f32 %v1903_v58, %v1902_v20  ;;  %v1566_v59 = vmul.f32 %v5987_v62, %v1444_v56  ;;  %v1542_v17 = vrot.slane %v5970_v1, %v4636_v11 }
 0x202   : > { %v1952_v60 = vsel %vm1661_vm7, %v1901_v25, %v1894_v4  ;;  %v1723_v47 = vrot.slane %v1722_v6, 1  ;;  %v1813_v35 = vrot.slane %v1812_v41, 2  ;;  %v1490_v3 = vcombine.high %v5955_v15, %v5955_v15 }
 0x203   : > { %v1617_v54 = vadd.f32 %v1616_v43, %v1615_v40  ;;  %v1905_v5 = vrot.slane %v1904_v61, 2  ;;  %v1574_v38 = vmul.f32 %v1566_v59, %v5747_v12  ;;  %v1567_v53 = vmul.f32 %v1542_v17, %v1451_v18 }
 0x204   : > { %v1724_v27 = vadd.f32 %v1723_v47, %v1722_v6  ;;  %v1520_v49 = vcombine.high %v5970_v1, %v5970_v1  ;;  %v1814_v62 = vadd.f32 %v1813_v35, %v1812_v41  ;;  %v6076_v0 = vrot.slane %v1490_v3, %v6432_v33 }
 0x205   : > { %v6073_v4 = vsel %vm1663_vm8, %v1617_v54, %v1662_v52  ;;  %v1906_v26 = vadd.f32 %v1905_v5, %v1904_v61  ;;  %v1590_v15 = vmul.f32 %v5884_v31, %v1574_v38  ;;  %v1697_v48 = vmul.f32 %v5867_v55, %v1574_v38 }
 0x206   : > { %v6079_v37 = vsel %vm1663_vm8, %v1724_v27, %v1768_v10  ;;  %v1789_v9 = vmul.f32 %v5928_v23, %v1574_v38  ;;  %v1815_v16 = vrot.slane %v1814_v62, 1  ;;  %v1881_v21 = vmul.f32 %v5907_v45, %v1574_v38  ;;  %v1458_v10 = vpop.permute.xlu1 %1457 }
 0x207   : > { %v1907_v42 = vrot.slane %v1906_v26, 1  ;;  %v6086_v13 = vmul.f32 %v1567_v53, %v5747_v12  ;;  %v1618_v28 = vsel %vm345_vm2, %v1590_v15, 0.0  ;;  %v1725_v39 = vsel %vm345_vm2, %v1697_v48, 0.0 }
 0x208   : > { %v1817_v8 = vsel %vm345_vm2, %v1789_v9, 0.0  ;;  %v1546_v31 = vrot.slane %v6076_v0, %v4636_v11  ;;  %v1816_v55 = vadd.f32 %v1815_v16, %v1814_v62  ;;  %v1619_v7 = vrot.slane %v1618_v28, 4 }
 0x209   : > { %v1908_v23 = vadd.f32 %v1907_v42, %v1906_v26  ;;  %v1726_v24 = vrot.slane %v1725_v39, 4  ;;  %v1818_v45 = vrot.slane %v1817_v8, 4  ;;  %v1909_v14 = vsel %vm345_vm2, %v1881_v21, 0.0 }
 0x20a   : > { %v1591_v19 = vmul.f32 %v5859_v63, %v6086_v13  ;;  %v1698_v40 = vmul.f32 %v5843_v32, %v6086_v13  ;;  %v1861_v29 = vsel %vm1663_vm8, %v1816_v55, %v1860_v2  ;;  %v1620_v56 = vadd.f32 %v1619_v7, %v1618_v28 }
 0x20b   : > { %v6102_v58 = vsel %vm1663_vm8, %v1908_v23, %v1952_v60  ;;  %v1727_v52 = vadd.f32 %v1726_v24, %v1725_v39  ;;  %v1819_v25 = vadd.f32 %v1818_v45, %v1817_v8  ;;  %v1910_v6 = vrot.slane %v1909_v14, 4 }
 0x20c   : > { %v1625_v43 = vsel %vm345_vm2, %v1591_v19, 0.0  ;;  %v1732_v41 = vsel %vm345_vm2, %v1698_v40, 0.0  ;;  %v1621_v18 = vrot.slane %v1620_v56, 2  ;;  %v1882_v54 = vmul.f32 %v5877_v51, %v6086_v13  ;;  %v1465_v40 = vpop.permute.xlu0 %1464 }
 0x20d   : > { %v1728_v47 = vrot.slane %v1727_v52, 2  ;;  %v1626_v59 = vrot.slane %v1625_v43, 4  ;;  %v1733_v17 = vrot.slane %v1732_v41, 4  ;;  %v1820_v2 = vrot.slane %v1819_v25, 2 }
 0x20e   : > { %v1911_v60 = vadd.f32 %v1910_v6, %v1909_v14  ;;  %v1568_v35 = vmul.f32 %v1546_v31, %v1458_v10  ;;  %v1622_v5 = vadd.f32 %v1621_v18, %v1620_v56  ;;  %v1916_v26 = vsel %vm345_vm2, %v1882_v54, 0.0 }
 0x20f   : > { %v1729_v3 = vadd.f32 %v1728_v47, %v1727_v52  ;;  %v1627_v27 = vadd.f32 %v1626_v59, %v1625_v43  ;;  %v1734_v38 = vadd.f32 %v1733_v17, %v1732_v41  ;;  %v1821_v53 = vadd.f32 %v1820_v2, %v1819_v25 }
 0x210   : > { %v1912_v62 = vrot.slane %v1911_v60, 2  ;;  %v6110_v15 = vmul.f32 %v1568_v35, %v5747_v12  ;;  %v1623_v9 = vrot.slane %v1622_v5, 1  ;;  %v1917_v8 = vrot.slane %v1916_v26, 4 }
 0x211   : > { %v6093_v20 = vpop.f32.mrb[0].mxu0  ;;  %v1730_v16 = vrot.slane %v1729_v3, 1  ;;  %v1628_v42 = vrot.slane %v1627_v27, 2  ;;  %v1735_v21 = vrot.slane %v1734_v38, 2  ;;  %v1822_v51 = vrot.slane %v1821_v53, 1 }
 0x212   : > { %v4185_v46 = vpop.f32.mrb[1].mxu0  ;;  %v1913_v39 = vadd.f32 %v1912_v62, %v1911_v60  ;;  %v1592_v31 = vmul.f32 %v5909_v50, %v6110_v15  ;;  %v1624_v55 = vadd.f32 %v1623_v9, %v1622_v5  ;;  %v1918_v14 = vadd.f32 %v1917_v8, %v1916_v26  ;;  %v1472_v9 = vpop.permute.xlu1 %1471 }
 0x213   : > { %v1731_v23 = vadd.f32 %v1730_v16, %v1729_v3  ;;  %v1629_v7 = vadd.f32 %v1628_v42, %v1627_v27  ;;  %v1736_v24 = vadd.f32 %v1735_v21, %v1734_v38  ;;  %v1823_v46 = vadd.f32 %v1822_v51, %v1821_v53 }
 0x214   : > { %v1914_v45 = vrot.slane %v1913_v39, 1  ;;  %v1632_v19 = vsel %vm345_vm2, %v1592_v31, 0.0  ;;  %v1666_v56 = vsel %vm1665_vm9, %v1624_v55, %v6073_v4  ;;  %v1919_v41 = vrot.slane %v1918_v14, 2  ;;  %v6476_v55 = vld [vmem:[#allocation19_spill] sm:$0xff] }
 0x215   : > { %v2834_v61 = vpop.f32.mrb[2].mxu0  ;;  %v1770_v52 = vsel %vm1665_vm9, %v1731_v23, %v6079_v37  ;;  %v1630_v10 = vrot.slane %v1629_v7, 1  ;;  %v1737_v25 = vrot.slane %v1736_v24, 1  ;;  %v6120_v6 = vsel %vm1665_vm9, %v1823_v46, %v1861_v29 }
 0x216   : > { %v4195_v32 = vpop.f32.mrb[3].mxu0  ;;  %3878 = vrot.lane.b32.xlu1 %v2834_v61, %s4522_s5  ;;  %v1915_v43 = vadd.f32 %v1914_v45, %v1913_v39  ;;  %v1633_v61 = vrot.slane %v1632_v19, 4  ;;  %v1699_v59 = vmul.f32 %v5886_v22, %v6110_v15  ;;  %v1883_v4 = vmul.f32 %v5920_v57, %v6110_v15 }
 0x217   : > { %v1631_v18 = vadd.f32 %v1630_v10, %v1629_v7  ;;  %v1738_v47 = vadd.f32 %v1737_v25, %v1736_v24  ;;  %v1920_v17 = vadd.f32 %v1919_v41, %v1918_v14  ;;  %v1550_v29 = vrot.slane %v1520_v49, %v4636_v11  ;;  %v6477_v7 = vld [vmem:[#allocation17_spill] sm:$0xff] }
 0x218   : > { %v1954_v37 = vsel %vm1665_vm9, %v1915_v43, %v6102_v58  ;;  %v1634_v32 = vadd.f32 %v1633_v61, %v1632_v19  ;;  %v1739_v54 = vsel %vm345_vm2, %v1699_v59, 0.0  ;;  %v1923_v22 = vsel %vm345_vm2, %v1883_v4, 0.0  ;;  %v2158_v58 = vpop.permute.xlu0 %2157  ;;  %v6478_v4 = vld [vmem:[#allocation9_spill] sm:$0xff] }
 0x219   : > { %v2990_v48 = vpop.f32.mrb[4].mxu0  ;;  %v1668_v2 = vsel %vm1667_vm10, %v1631_v18, %v1666_v56  ;;  %v1771_v60 = vsel %vm1667_vm10, %v1738_v47, %v1770_v52  ;;  %v1921_v35 = vrot.slane %v1920_v17, 1  ;;  %v1740_v5 = vrot.slane %v1739_v54, 4 }
 0x21a   : > { %v4205_v28 = vpop.f32.mrb[5].mxu0  ;;  %3886 = vrot.lane.b32.xlu1 %v2990_v48, %s4523_s6  ;;  %v1635_v57 = vrot.slane %v1634_v32, 2  ;;  %v1924_v3 = vrot.slane %v1923_v22, 4  ;;  %v1569_v27 = vmul.f32 %v1550_v29, %v1465_v40  ;;  %v1522_v38 = vcombine.high %v6076_v0, %v6076_v0  ;;  %s6274_s6 = scalar_lea.hbm %s6325_s4, %s4150_s24 }
 0x21b   : > { %v2249_v1 = vrot.slane %v5959_v34, %v4636_v11  ;;  %v1790_v49 = vmul.f32 %v5932_v36, %v6086_v13  ;;  %v1922_v53 = vadd.f32 %v1921_v35, %v1920_v17  ;;  %v1741_v26 = vadd.f32 %v1740_v5, %v1739_v54  ;;  %v6475_v13 = vld [vmem:[#allocation16_spill] sm:$0xff] }
 0x21c   : > { %v1636_v62 = vadd.f32 %v1635_v57, %v1634_v32  ;;  %v1925_v48 = vadd.f32 %v1924_v3, %v1923_v22  ;;  %v6143_v16 = vmul.f32 %v1569_v27, %v5747_v12  ;;  %v1554_v42 = vrot.slane %v1522_v38, %v4636_v11  ;;  %v6479_v17 = vld [vmem:[#allocation20_spill] sm:$0xff] }
 0x21d   : > { %v1824_v21 = vsel %vm345_vm2, %v1790_v49, 0.0  ;;  %v2274_v28 = vmul.f32 %v2249_v1, %v2158_v58  ;;  %v1955_v0 = vsel %vm1667_vm10, %v1922_v53, %v1954_v37  ;;  %v1742_v39 = vrot.slane %v1741_v26, 2 }
 0x21e   : > { %v1637_v51 = vrot.slane %v1636_v62, 1  ;;  %v1926_v8 = vrot.slane %v1925_v48, 2  ;;  %v1593_v31 = vmul.f32 %v6475_v13, %v6143_v16  ;;  %v1700_v23 = vmul.f32 %v6476_v55, %v6143_v16  ;;  %v6481_v55 = vld [vmem:[#allocation14_spill] sm:$0xff] }
 0x21f   : > { %v1884_v24 = vmul.f32 %v6477_v7, %v6143_v16  ;;  %v1570_v46 = vmul.f32 %v1554_v42, %v1472_v9  ;;  %v1743_v14 = vadd.f32 %v1742_v39, %v1741_v26  ;;  %v1825_v40 = vrot.slane %v1824_v21, 4 }
 0x220   : > { %v1638_v45 = vadd.f32 %v1637_v51, %v1636_v62  ;;  %v1927_v19 = vadd.f32 %v1926_v8, %v1925_v48  ;;  %v1639_v56 = vsel %vm345_vm2, %v1593_v31, 0.0  ;;  %v1746_v52 = vsel %vm345_vm2, %v1700_v23, 0.0 }
 0x221   : > { %v1930_v10 = vsel %vm345_vm2, %v1884_v24, 0.0  ;;  %v6158_v25 = vmul.f32 %v1570_v46, %v5747_v12  ;;  %v1744_v41 = vrot.slane %v1743_v14, 1  ;;  %v1640_v18 = vrot.slane %v1639_v56, 4  ;;  %v6480_v12 = vld [vmem:[#allocation15_spill] sm:$0xff] }
 0x222   : > { %v1670_v43 = vsel %vm1669_vm11, %v1638_v45, %v1668_v2  ;;  %v1928_v61 = vrot.slane %v1927_v19, 1  ;;  %v1747_v47 = vrot.slane %v1746_v52, 4  ;;  %v1931_v59 = vrot.slane %v1930_v10, 4 }
 0x223   : > { %v1594_v37 = vmul.f32 %v6478_v4, %v6158_v25  ;;  %v1701_v32 = vmul.f32 %v6479_v17, %v6158_v25  ;;  %v1745_v29 = vadd.f32 %v1744_v41, %v1743_v14  ;;  %v1641_v22 = vadd.f32 %v1640_v18, %v1639_v56  ;;  %v6482_v56 = vld [vmem:[#allocation18_spill] sm:$0xff] }
 0x224   : > { %v1929_v54 = vadd.f32 %v1928_v61, %v1927_v19  ;;  %v1885_v35 = vmul.f32 %v6480_v12, %v6158_v25  ;;  %v1748_v57 = vadd.f32 %v1747_v47, %v1746_v52  ;;  %v1932_v2 = vadd.f32 %v1931_v59, %v1930_v10 }
 0x225   : > { %v1646_v5 = vsel %vm345_vm2, %v1594_v37, 0.0  ;;  %v1753_v3 = vsel %vm345_vm2, %v1701_v32, 0.0  ;;  %v1772_v58 = vsel %vm1669_vm11, %v1745_v29, %v1771_v60  ;;  %v1642_v38 = vrot.slane %v1641_v22, 2 }
 0x226   : > { %v1956_v27 = vsel %vm1669_vm11, %v1929_v54, %v1955_v0  ;;  %v1647_v1 = vrot.slane %v1646_v5, 4  ;;  %v1749_v49 = vrot.slane %v1748_v57, 2  ;;  %v1933_v53 = vrot.slane %v1932_v2, 2 }
 0x227   : > { %v1754_v62 = vrot.slane %v1753_v3, 4  ;;  %v1937_v26 = vsel %vm345_vm2, %v1885_v35, 0.0  ;;  %v1643_v48 = vadd.f32 %v1642_v38, %v1641_v22  ;;  %v1826_v51 = vadd.f32 %v1825_v40, %v1824_v21 }
 0x228   : > { %v1648_v9 = vadd.f32 %v1647_v1, %v1646_v5  ;;  %v1938_v42 = vrot.slane %v1937_v26, 4  ;;  %v1750_v39 = vadd.f32 %v1749_v49, %v1748_v57  ;;  %v1934_v8 = vadd.f32 %v1933_v53, %v1932_v2  ;;  %v1595_v57 = vld [vmem:[#allocation2] sm:$0xff]  ;;  %v1703_v1 = vld [vmem:[#allocation2 + $0x8] sm:$0xff] }
 0x229   : > { %v1755_v31 = vadd.f32 %v1754_v62, %v1753_v3  ;;  %v2282_v23 = vmul.f32 %v6481_v55, %v2274_v28  ;;  %v1644_v60 = vrot.slane %v1643_v48, 1  ;;  %v1827_v24 = vrot.slane %v1826_v51, 2  ;;  %v6484_v62 = vld [vmem:[#allocation11_spill] sm:$0xff] }
 0x22a   : > { %v1649_v7 = vrot.slane %v1648_v9, 2  ;;  %v1939_v0 = vadd.f32 %v1938_v42, %v1937_v26  ;;  %v1751_v45 = vrot.slane %v1750_v39, 1  ;;  %v1935_v14 = vrot.slane %v1934_v8, 1  ;;  %v1887_v26 = vld [vmem:[#allocation2 + $0x18] sm:$0xff] }
 0x22b   : > { %v1756_v19 = vrot.slane %v1755_v31, 2  ;;  %v2330_v52 = vmul.f32 %v6482_v56, %v2282_v23  ;;  %v1645_v41 = vadd.f32 %v1644_v60, %v1643_v48  ;;  %v1828_v61 = vadd.f32 %v1827_v24, %v1826_v51  ;;  %v6486_v56 = vld [vmem:[#allocation12_spill] sm:$0xff] }
 0x22c   : > { %v1650_v21 = vadd.f32 %v1649_v7, %v1648_v9  ;;  %v1940_v40 = vrot.slane %v1939_v0, 2  ;;  %v1752_v18 = vadd.f32 %v1751_v45, %v1750_v39  ;;  %v1936_v47 = vadd.f32 %v1935_v14, %v1934_v8 }
 0x22d   : > { %v1757_v28 = vadd.f32 %v1756_v19, %v1755_v31  ;;  %v2338_v59 = vmul.f32 %v2330_v52, %v5859_v63  ;;  %v1672_v37 = vsel %vm1671_vm12, %v1645_v41, %v1670_v43  ;;  %v1829_v29 = vrot.slane %v1828_v61, 1  ;;  %v6483_v43 = vld [vmem:[#allocation13_spill] sm:$0xff]  ;;  %v2165_v31 = vpop.permute.xlu1 %2164  ;;  %v2172_v19 = vpop.permute.xlu0 %2171 }
 0x22e   : > { %v1651_v17 = vrot.slane %v1650_v21, 1  ;;  %v1941_v32 = vadd.f32 %v1940_v40, %v1939_v0  ;;  %v1773_v54 = vsel %vm1671_vm12, %v1752_v18, %v1772_v58  ;;  %v1957_v22 = vsel %vm1671_vm12, %v1936_v47, %v1956_v27 }
 0x22f   : > { %v1758_v12 = vrot.slane %v1757_v28, 1  ;;  %v2372_v35 = vsel %vm345_vm2, %v2338_v59, 0.0  ;;  %v1830_v3 = vadd.f32 %v1829_v29, %v1828_v61  ;;  %v2422_v63 = vmul.f32 %v2330_v52, %v5932_v36 }
 0x230   : > { %v1652_v2 = vadd.f32 %v1651_v17, %v1650_v21  ;;  %v1942_v5 = vrot.slane %v1941_v32, 1  ;;  %v2373_v38 = vrot.slane %v2372_v35, 4  ;;  %v1791_v53 = vmul.f32 %v6483_v43, %v6110_v15 }
 0x231   : > { %v1759_v49 = vadd.f32 %v1758_v12, %v1757_v28  ;;  %v6485_v58 = vcombine.high %v6484_v62, %v6484_v62  ;;  %v6189_v42 = vsel %vm1667_vm10, %v1830_v3, %v6120_v6  ;;  %v2456_v8 = vsel %vm345_vm2, %v2422_v63, 0.0  ;;  %v2179_v29 = vpop.permute.xlu1 %2178 }
 0x232   : > { %v1674_v48 = vsel %vm1673_vm13, %v1652_v2, %v1672_v37  ;;  %v1943_v9 = vadd.f32 %v1942_v5, %v1941_v32  ;;  %v2374_v51 = vadd.f32 %v2373_v38, %v2372_v35  ;;  %v1831_v15 = vsel %vm345_vm2, %v1791_v53, 0.0 }
 0x233   : > { %v3244_v46 = vpop.f32.mrb[6].mxu0  ;;  %v2225_v27 = vrot.slane %v6485_v58, %v6432_v33  ;;  %v1676_v39 = vadd.f32 %v1674_v48, %v1595_v57  ;;  %v1774_v36 = vsel %vm1673_vm13, %v1759_v49, %v1773_v54  ;;  %v2457_v7 = vrot.slane %v2456_v8, 4  ;;  %v6488_v57 = vld [vmem:[#allocation6_spill] sm:$0xff] }
 0x234   : > { %v4215_v10 = vpop.f32.mrb[7].mxu0  ;;  %3894 = vrot.lane.b32.xlu1 %v3244_v46, %s4524_s7  ;;  %v1776_v23 = vadd.f32 %v1774_v36, %v1703_v1  ;;  %v1958_v33 = vsel %vm1673_vm13, %v1943_v9, %v1957_v22  ;;  %v2375_v60 = vrot.slane %v2374_v51, 2  ;;  %v1832_v24 = vrot.slane %v1831_v15, 4  ;;  %v6489_v9 = vld [vmem:[#allocation10_spill] sm:$0xff]  ;;  %s3954_s7 = scalar_lea.sflag [#allocation4], %s262_s21 }
 0x235   : > { %1677 = vst.msk [vmem:[#allocation2] sm:$0xff] %vm345_vm2, %v1676_v39  ;;  %v1960_v0 = vadd.f32 %v1958_v33, %v1887_v26  ;;  %v2253_v6 = vrot.slane %v2225_v27, %v4636_v11  ;;  %v2227_v46 = vcombine.high %v5959_v34, %v5959_v34  ;;  %v2458_v14 = vadd.f32 %v2457_v7, %v2456_v8  ;;  %v6487_v10 = vld [vmem:[#allocation8_spill] sm:$0xff] }
 0x236   : > { %1777 = vst.msk [vmem:[#allocation2 + $0x8] sm:$0xff] %vm345_vm2, %v1776_v23  ;;  %v2376_v45 = vadd.f32 %v2375_v60, %v2374_v51  ;;  %v1792_v52 = vmul.f32 %v6486_v56, %v6143_v16  ;;  %v1793_v41 = vmul.f32 %v6487_v10, %v6158_v25  ;;  %v1833_v21 = vadd.f32 %v1832_v24, %v1831_v15 }
 0x237   : > { %1961 = vst.msk [vmem:[#allocation2 + $0x18] sm:$0xff] %vm345_vm2, %v1960_v0  ;;  %v2275_v40 = vmul.f32 %v2253_v6, %v2165_v31  ;;  %v2257_v61 = vrot.slane %v2227_v46, %v4636_v11  ;;  %v2229_v18 = vcombine.high %v2225_v27, %v2225_v27  ;;  %v2459_v34 = vrot.slane %v2458_v14, 2 }
 0x238   : > { %v2377_v47 = vrot.slane %v2376_v45, 1  ;;  %v1838_v28 = vsel %vm345_vm2, %v1792_v52, 0.0  ;;  %v1845_v59 = vsel %vm345_vm2, %v1793_v41, 0.0  ;;  %v1834_v37 = vrot.slane %v1833_v21, 2 }
 0x239   : > { %v2283_v17 = vmul.f32 %v6481_v55, %v2275_v40  ;;  %v1839_v16 = vrot.slane %v1838_v28, 4  ;;  %v2276_v32 = vmul.f32 %v2257_v61, %v2172_v19  ;;  %v2460_v54 = vadd.f32 %v2459_v34, %v2458_v14  ;;  %v6492_v19 = vld [vmem:[#allocation7_spill] sm:$0xff] }
 0x23a   : > { %v2378_v25 = vadd.f32 %v2377_v47, %v2376_v45  ;;  %v1846_v22 = vrot.slane %v1845_v59, 4  ;;  %v2261_v12 = vrot.slane %v2229_v18, %v4636_v11  ;;  %v1835_v35 = vadd.f32 %v1834_v37, %v1833_v21  ;;  %v1795_v37 = vld [vmem:[#allocation2 + $0x10] sm:$0xff] }
 0x23b   : > { %v2331_v2 = vmul.f32 %v6488_v57, %v2283_v17  ;;  %v1840_v5 = vadd.f32 %v1839_v16, %v1838_v28  ;;  %v2284_v3 = vmul.f32 %v6481_v55, %v2276_v32  ;;  %v2461_v1 = vrot.slane %v2460_v54, 1 }
 0x23c   : > { %v6214_v38 = vsel %vm1667_vm10, %v2378_v25, %v6035_v30  ;;  %v1847_v49 = vadd.f32 %v1846_v22, %v1845_v59  ;;  %v2277_v63 = vmul.f32 %v2261_v12, %v2179_v29  ;;  %v3426_v53 = vld [vmem:[#allocation2] sm:$0xff]  ;;  %v1836_v62 = vrot.slane %v1835_v35, 1 }
 0x23d   : > { %v2339_v58 = vmul.f32 %v2331_v2, %v5909_v50  ;;  %v2423_v27 = vmul.f32 %v2331_v2, %v6483_v43  ;;  %v1841_v11 = vrot.slane %v1840_v5, 2  ;;  %4224 = vmatmul.mubr.msk.f32.vlgmr.msra.gmra.mrb[8].mxu0 %vm345_vm2, %v3426_v53  ;;  %v3500_v26 = vld [vmem:[#allocation2 + $0x8] sm:$0xff]  ;;  %v2462_v48 = vadd.f32 %v2461_v1, %v2460_v54 }
 0x23e   : > { %v2332_v51 = vmul.f32 %v6489_v9, %v2284_v3  ;;  %v1848_v39 = vrot.slane %v1847_v49, 2  ;;  %v2285_v30 = vmul.f32 %v6481_v55, %v2277_v63  ;;  %4229 = vmatmul.mubr.msk.f32.vlgmr.msra.gmra.mrb[8].mxu1 %vm345_vm2, %v3500_v26  ;;  %v6490_v36 = vmov 1.0   ;;  %v3649_v46 = vld [vmem:[#allocation2 + $0x18] sm:$0xff] }
 0x23f   : > { %4232 = vmatpush3.msra.mxu0 %v6490_v36  ;;  %v1837_v8 = vadd.f32 %v1836_v62, %v1835_v35  ;;  %v2379_v15 = vsel %vm345_vm2, %v2339_v58, 0.0  ;;  %v2463_v50 = vsel %vm345_vm2, %v2423_v27, 0.0  ;;  %v1842_v43 = vadd.f32 %v1841_v11, %v1840_v5  ;;  %4237 = vmatpush3.msra.mxu1 %v6490_v36 }
 0x240   : > { %v6491_v31 = vmov 0.0   ;;  %v2495_v23 = vsel %vm1667_vm10, %v2462_v48, %v6038_v44  ;;  %v2380_v33 = vrot.slane %v2379_v15, 4  ;;  %v2464_v55 = vrot.slane %v2463_v50, 4 }
 0x241   : > { %4233 = vmatprep.mubr.msk.f32.mxu0 %vm4512_vm1, %v6491_v31  ;;  %v2340_v60 = vmul.f32 %v2332_v51, %v6475_v13  ;;  %4238 = vmatprep.mubr.msk.f32.mxu1 %vm4512_vm1, %v6491_v31  ;;  %v1864_v7 = vsel %vm1669_vm11, %v1837_v8, %v6189_v42  ;;  %v1843_v0 = vrot.slane %v1842_v43, 1  ;;  %v2424_v24 = vmul.f32 %v2332_v51, %v6486_v56 }
 0x242   : > { %4246 = vmatprep.subr.mxu1 %v6491_v31  ;;  %v1849_v6 = vadd.f32 %v1848_v39, %v1847_v49  ;;  %4241 = vmatprep.subr.mxu0 %v6491_v31  ;;  %v2381_v45 = vadd.f32 %v2380_v33, %v2379_v15  ;;  %v2465_v14 = vadd.f32 %v2464_v55, %v2463_v50  ;;  %v2343_v55 = vld [vmem:[#allocation2 + $0x20] sm:$0xff]  ;;  %vm3942_vm7 = vcmask 80896  }
 0x243   : > { %v2386_v13 = vsel %vm345_vm2, %v2340_v60, 0.0  ;;  %v2333_v52 = vmul.f32 %v6492_v19, %v2285_v30  ;;  %4239 = vmatmul.mubr.msk.f32.vlgmr.msra.gmra.mrb[10].mxu1 %vm345_vm2, %v3649_v46  ;;  %v1844_v42 = vadd.f32 %v1843_v0, %v1842_v43  ;;  %v2470_v56 = vsel %vm345_vm2, %v2424_v24, 0.0 }
 0x244   : > { %v2387_v21 = vrot.slane %v2386_v13, 4  ;;  %v1850_v40 = vrot.slane %v1849_v6, 1  ;;  %4247 = vmatpush3.msra.mxu1 %v6490_v36  ;;  %4248 = vmatprep.mubr.msk.f32.mxu1 %vm4512_vm1, %v6491_v31  ;;  %v2382_v61 = vrot.slane %v2381_v45, 2  ;;  %v2466_v18 = vrot.slane %v2465_v14, 2 }
 0x245   : > { %v2471_v47 = vrot.slane %v2470_v56, 4  ;;  %v2341_v34 = vmul.f32 %v2333_v52, %v6478_v4  ;;  %v1865_v28 = vsel %vm1671_vm12, %v1844_v42, %v1864_v7  ;;  %v2425_v16 = vmul.f32 %v2333_v52, %v6487_v10 }
 0x246   : > { %v2388_v59 = vadd.f32 %v2387_v21, %v2386_v13  ;;  %v1851_v17 = vadd.f32 %v1850_v40, %v1849_v6  ;;  %v2383_v32 = vadd.f32 %v2382_v61, %v2381_v45  ;;  %v2467_v29 = vadd.f32 %v2466_v18, %v2465_v14 }
 0x247   : > { %v2472_v25 = vadd.f32 %v2471_v47, %v2470_v56  ;;  %v2393_v54 = vsel %vm345_vm2, %v2341_v34, 0.0  ;;  %v2477_v57 = vsel %vm345_vm2, %v2425_v16, 0.0  ;;  %vm3944_vm8 = vcmask 89088  }
 0x248   : > { %v2389_v22 = vrot.slane %v2388_v59, 2  ;;  %v1866_v12 = vsel %vm1673_vm13, %v1851_v17, %v1865_v28  ;;  %v2394_v35 = vrot.slane %v2393_v54, 4  ;;  %v2384_v2 = vrot.slane %v2383_v32, 1 }
 0x249   : > { %v2468_v4 = vrot.slane %v2467_v29, 1  ;;  %v2473_v5 = vrot.slane %v2472_v25, 2  ;;  %v1868_v3 = vadd.f32 %v1866_v12, %v1795_v37  ;;  %v2478_v63 = vrot.slane %v2477_v57, 4 }
 0x24a   : > { %v2390_v1 = vadd.f32 %v2389_v22, %v2388_v59  ;;  %v2395_v49 = vadd.f32 %v2394_v35, %v2393_v54  ;;  %v2385_v53 = vadd.f32 %v2384_v2, %v2383_v32  ;;  %vm3946_vm9 = vcmask 97280  }
 0x24b   : > { %v3422_v44 = vpop.f32.mrb[6].mxu1  ;;  %v2469_v10 = vadd.f32 %v2468_v4, %v2467_v29  ;;  %v2474_v62 = vadd.f32 %v2473_v5, %v2472_v25  ;;  %1869 = vst.msk [vmem:[#allocation2 + $0x10] sm:$0xff] %vm345_vm2, %v1868_v3  ;;  %v2479_v11 = vadd.f32 %v2478_v63, %v2477_v57  ;;  %vm3948_vm10 = vcmask 105472  }
 0x24c   : > { %v4220_v41 = vpop.f32.mrb[7].mxu1  ;;  %3898 = vrot.lane.b32.xlu0 %v3422_v44, %s4525_s8  ;;  %v2391_v58 = vrot.slane %v2390_v1, 1  ;;  %v2396_v27 = vrot.slane %v2395_v49, 2  ;;  %v2412_v26 = vsel %vm1669_vm11, %v2385_v53, %v6214_v38  ;;  %v2427_v38 = vld [vmem:[#allocation2 + $0x28] sm:$0xff]  ;;  %s4426_s8 = scalar_lea.vmem %s6276_s29, 128 }
 0x24d   : > { %v2496_v48 = vsel %vm1669_vm11, %v2469_v10, %v2495_v23  ;;  %v2475_v9 = vrot.slane %v2474_v62, 1  ;;  %v2480_v30 = vrot.slane %v2479_v11, 2  ;;  %vm3950_vm11 = vcmask 113664   ;;  %p4427_p12 = scmp.ne.s32.totalorder %s6276_s29, %s4426_s8 }
 0x24e   : > { %v2392_v51 = vadd.f32 %v2391_v58, %v2390_v1  ;;  %v2397_v39 = vadd.f32 %v2396_v27, %v2395_v49 }
 0x24f   : > { %v2476_v8 = vadd.f32 %v2475_v9, %v2474_v62  ;;  %v2481_v43 = vadd.f32 %v2480_v30, %v2479_v11  ;;  %p4428_p13 = pnand %p4427_p12, %p4598_p4 }
 0x250   : > { %v2413_v15 = vsel %vm1671_vm12, %v2392_v51, %v2412_v26  ;;  %v2398_v50 = vrot.slane %v2397_v39, 1 }
 0x251   : > { %v2497_v33 = vsel %vm1671_vm12, %v2476_v8, %v2496_v48  ;;  %v2482_v7 = vrot.slane %v2481_v43, 1  ;;  %p4429_p0 = pneg %p4428_p13 }
 0x252   : > { %v2399_v60 = vadd.f32 %v2398_v50, %v2397_v39  ;;  %v3574_v0 = vld [vmem:[#allocation2 + $0x10] sm:$0xff] }
 0x253   : > { %4234 = vmatmul.mubr.msk.f32.vlgmr.msra.gmra.mrb[10].mxu0 %vm345_vm2, %v3574_v0  ;;  %v2483_v24 = vadd.f32 %v2482_v7, %v2481_v43 }
 0x254   : > { %v2414_v23 = vsel %vm1673_vm13, %v2399_v60, %v2413_v15  ;;  %4242 = vmatpush3.msra.mxu0 %v6490_v36  ;;  %4243 = vmatprep.mubr.msk.f32.mxu0 %vm4512_vm1, %v6491_v31  ;;  %vm3925_vm1 = vcmask 7168  }
 0x255   : > { %v2416_v6 = vadd.f32 %v2414_v23, %v2343_v55  ;;  %v2498_v46 = vsel %vm1673_vm13, %v2483_v24, %v2497_v33 }
 0x256   : > { %v2500_v44 = vadd.f32 %v2498_v46, %v2427_v38 }
 0x257   : > { %2417 = vst.msk [vmem:[#allocation2 + $0x20] sm:$0xff] %vm345_vm2, %v2416_v6 }
 0x258   : > { %2501 = vst.msk [vmem:[#allocation2 + $0x28] sm:$0xff] %vm345_vm2, %v2500_v44 }
 0x25b   : > { %v3875_v59 = vpop.permute.xlu0 %3874 }
 0x25c   : > { %v3926_v32 = vsel %vm3925_vm1, %v6093_v20, %v3875_v59 }
 0x25e   : > { %v3724_v45 = vld [vmem:[#allocation2 + $0x20] sm:$0xff] }
 0x25f   : > { %4244 = vmatmul.mubr.msk.f32.vlgmr.msra.gmra.mrb[12].mxu0 %vm345_vm2, %v3724_v45  ;;  %v3798_v14 = vld [vmem:[#allocation2 + $0x28] sm:$0xff]  ;;  %v3883_v17 = vpop.permute.xlu0 %3882 }
 0x260   : > { %4249 = vmatmul.mubr.msk.f32.vlgmr.msra.gmra.mrb[12].mxu1 %vm345_vm2, %v3798_v14 }
 0x263   : > { %v3891_v25 = vpop.permute.xlu0 %3890 }
 0x288   : > { %v3879_v37 = vpop.permute.xlu1 %3878 }
 0x289   : > { %v3928_v29 = vsel %vm3927_vm14, %v3926_v32, %v3879_v37 }
 0x28a   : > { %v3930_v54 = vsel %vm3929_vm15, %v3928_v29, %v3883_v17 }
 0x28c   : > { %v3887_v16 = vpop.permute.xlu1 %3886 }
 0x28d   : > { %v3932_v22 = vsel %vm3931_vm0, %v3930_v54, %v3887_v16 }
 0x28e   : > { %v3934_v35 = vsel %vm3933_vm3, %v3932_v22, %v3891_v25 }
 0x2a6   : > { %v3895_v12 = vpop.permute.xlu1 %3894 }
 0x2a7   : > { %v3936_v2 = vsel %vm3935_vm4, %v3934_v35, %v3895_v12 }
 0x2be   : > { %v3899_v57 = vpop.permute.xlu0 %3898 }
 0x2bf   : > { %v3938_v5 = vsel %vm3937_vm5, %v3936_v2, %v3899_v57 }
 0x310   : > { %v3496_v13 = vpop.f32.mrb[8].mxu0 }
 0x311   : > { %v3570_v19 = vpop.f32.mrb[8].mxu1  ;;  %3902 = vrot.lane.b32.xlu1 %v3496_v13, %s4526_s9  ;;  %v4225_v36 = vpop.f32.mrb[9].mxu0  ;;  %s4430_s9 = sshll.u32 %s4532_s18, 4  ;;  %s4431_s9 = int_to_ptr.vmem [resolvable:$false] %s4430_s9 }
 0x312   : > { %3906 = vrot.lane.b32.xlu0 %v3570_v19, %s4527_s10  ;;  %v4230_v31 = vpop.f32.mrb[9].mxu1  ;;  %s4432_s10 = scalar_lea.vmem %s4431_s9, 256  ;;  %p4433_p1 = scmp.lt.s32.totalorder %s6276_s29, %s4431_s9 }
 0x313   : > { %p4434_p2 = scmp.lt.s32.totalorder %s4432_s10, %s4426_s8 }
 0x315   : > { %p4435_p3 = por %p4434_p2, %p4433_p1 }
 0x316   : > { %v3719_v52 = vpop.f32.mrb[10].mxu1 }
 0x317   : > { %v3723_v41 = vmul.f32 0.5, %v3719_v52  ;;  %v4240_v42 = vpop.f32.mrb[11].mxu1  ;;  %p4436_p5 = pnand %p4435_p3, %p4429_p0 }
 0x319   : > { %3914 = vrot.lane.b32.xlu0 %v3723_v41, %s4528_s11 }
 0x326   : > { %v3644_v21 = vpop.f32.mrb[10].mxu0 }
 0x327   : > { %v3648_v56 = vmul.f32 0.5, %v3644_v21  ;;  %v4235_v40 = vpop.f32.mrb[11].mxu0 }
 0x329   : > { %3910 = vrot.lane.b32.xlu1 %v3648_v56, %s4529_s12 }
 0x332   : > { %v3794_v61 = vpop.f32.mrb[12].mxu0 }
 0x333   : > { %3918 = vrot.lane.b32.xlu1 %v3794_v61, %s4530_s13  ;;  %v4245_v18 = vpop.f32.mrb[13].mxu0  ;;  %v3868_v47 = vpop.f32.mrb[12].mxu1 }
 0x334   : > { %v3872_v34 = vmul.f32 0.5, %v3868_v47  ;;  %v4250_v28 = vpop.f32.mrb[13].mxu1 }
 0x336   : > { %3922 = vrot.lane.b32.xlu0 %v3872_v34, %s4531_s14 }
 0x383   : > { %v3903_v4 = vpop.permute.xlu1 %3902 }
 0x384   : > { %v3907_v3 = vpop.permute.xlu0 %3906  ;;  %v3939_v20 = vsel %vm345_vm2, %v3938_v5, %v3903_v4 }
 0x385   : > { %v3941_v49 = vsel %vm3940_vm6, %v3939_v20, %v3907_v3 }
 0x38b   : > { %v3915_v63 = vpop.permute.xlu0 %3914 }
 0x39b   : > { %v3911_v1 = vpop.permute.xlu1 %3910 }
 0x39c   : > { %v3943_v53 = vsel %vm3942_vm7, %v3941_v49, %v3911_v1 }
 0x39d   : > { %v3945_v62 = vsel %vm3944_vm8, %v3943_v53, %v3915_v63 }
 0x3a5   : > { %v3919_v10 = vpop.permute.xlu1 %3918 }
 0x3a6   : > { %v3947_v58 = vsel %vm3946_vm9, %v3945_v62, %v3919_v10 }
 0x3a8   : > { %v3923_v27 = vpop.permute.xlu0 %3922 }
 0x3a9   : > { %v3949_v11 = vsel %vm3948_vm10, %v3947_v58, %v3923_v27 }
 0x3aa   : > { %v3951_v26 = vsel %vm3950_vm11, %v3949_v11, 0.0 }
 0x3ab   : > { %3952 = vst [vmem:[%s264_s26] sm:$0xff] %v3951_v26 }
 0x3ac   : > { %4439 = shalt.err (!%p4436_p5)
}
 0x3ad   : > { %s4440_s11 = scalar_lea.hbm %s6274_s6, 128  ;;  %s4444_s14 = scalar_lea.hbm %s6325_s4, 256 }
 0x3ae   : > { %p4441_p6 = scmp.ne.s32.totalorder %s6274_s6, %s4440_s11  ;;  %p4445_p10 = scmp.lt.u32.totalorder %s6274_s6, %s6325_s4 }
 0x3af   : > { %p4446_p11 = scmp.lt.u32.totalorder %s4444_s14, %s4440_s11  ;;  %p4448_p13 = scmp.lt.u32.totalorder %s4440_s11, %s6274_s6 }
 0x3b0   : > { %p4442_p7 = pnand %p4441_p6, %p4598_p4 }
 0x3b1   : > { %p4447_p12 = por %p4446_p11, %p4445_p10 }
 0x3b2   : > { %p4443_p9 = pneg %p4442_p7 }
 0x3b3   : > { %p4449_p0 = por %p4448_p13, %p4447_p12 }
 0x3b5   : > { %p4450_p1 = pnand %p4449_p0, %p4443_p9 }
 0x3b7   : > { %4453 = shalt.err (!%p4450_p1)
}
 0x3b8   : > { %4275 = dma.vmem_to_hbm [thread:$0]  (%p4598_p4), %s6276_s29, 128, %s6274_s6, %s3954_s7  }
 0x3b9 PF: > { %p4281_p2 = scmp.ge.s32.totalorder %s4504_s20, 2  ;;  %s3980_s24 = sand.u32 1, %s4484_s15  }
 0x3ba   : > { %s3981_s26 = scalar_lea.sflag [#allocation4], %s3980_s24 }
 0x3bb   : > { %p4278_p3 = pnand %p4281_p2, %p4605_p8 }
 0x3bd   : > { %4479 = dma.done.wait (!%p4278_p3), %s3981_s26, 128  }
 0x3be   : > { %4481 = vsyncadd (!%p4278_p3), %s3981_s26, 4294967168  ;;  %s17_s20 = sadd.s32 1, %s4504_s20   ;;  %s6493_s15 = smov %s4488_s16 }
 0x3bf   : > { %p14_p5 = scmp.ge.s32.totalorder %s17_s20, 4   ;;  %s6494_s16 = smov %s4492_s17 }
 0x3c0   : > { %s6495_s17 = smov %s4611_s28  ;;  %s6496_s18 = smov %s4500_s19 }
 0x3c1   : > { %s6497_s19 = smov %s6499_s23  ;;  %16 = sbr.rel (!%p14_p5) target bundleno = 4 (0x4), region = 93 }
 0x3c8   :  { %3986 = vsyncpa [#allocation4], 1 }
 0x3c9   :  { %3988 = vsyncpa [#allocation4 + $0x1], 1 }

</bundles_post_ra>
